<compile_context>
chip_gen: v7x
topology: tpu7x:2x2x1
jax: 0.10.0
libtpu: 0.0.40
codegen_flags: <defaults>
</compile_context>

<pallas_src>
import jax
import jax.numpy as jnp
import numpy as np
from jax.experimental import pallas as pl
from jax.experimental.pallas import tpu as pltpu

# ------------------------- model hyper-parameters ---------------------------
N_EMBED = 128                  # matches the module (n_embed = 128)
NUM_EXPERTS = 8
TOP_K = 2
CAPACITY_FACTOR = 1.0
HIDDEN = 4 * N_EMBED           # expert MLP hidden size
EH = NUM_EXPERTS * HIDDEN      # fused contraction width (8 * 512 = 4096)


# ------------------------------ Pallas kernel -------------------------------
def fused_moe_kernel(x_ref, w1_ref, b1_ref, w2_ref, b2_ref, sel_ref, comb_ref,
                     out_ref):
    """All experts fused: (TM,D)x(D,E*H) matmul, in-kernel gate expansion,
    (TM,E*H)x(E*H,D) matmul, plus combine @ b2 for the gate-weighted bias."""
    # (TM, D) @ (D, E*H) -> (TM, E*H): all experts' first layers at once.
    h = jnp.dot(x_ref[...], w1_ref[...], preferred_element_type=jnp.float32)
    # bf16 elementwise chain (bias + ReLU + gate) to halve VPU vreg traffic.
    h = jnp.maximum(h.astype(jnp.bfloat16) + b1_ref[...], 0.0)
    # Expand the (TM, E) combine to a (TM, E*H) gate ON THE MXU via a resident
    # block-diagonal ones matrix; replaces the former 2 MiB/tile gate_exp DMA.
    gate = jnp.dot(comb_ref[...].astype(jnp.bfloat16), sel_ref[...],
                   preferred_element_type=jnp.float32).astype(jnp.bfloat16)
    # (TM, E*H) @ (E*H, D) -> (TM, D): all experts' second layers + expert sum.
    y = jnp.dot(h * gate, w2_ref[...], preferred_element_type=jnp.float32)
    # gate-weighted second bias: sum_e combine[t,e] * b2[e,:]  ==  combine @ b2.
    y = y + jnp.dot(comb_ref[...], b2_ref[...],
                    preferred_element_type=jnp.float32)
    out_ref[...] = y


def run_fused_experts(x_bf16, w1_flat, b1_flat, w2_flat, b2_mat, sel, combine,
                      token_tile):
    n_pad, d = x_bf16.shape
    grid = (n_pad // token_tile,)
    grid_spec = pltpu.PrefetchScalarGridSpec(
        num_scalar_prefetch=0,
        grid=grid,                                                   # token tiles
        in_specs=[
            pl.BlockSpec((token_tile, d), lambda i: (i, 0)),         # x tile (bf16)
            # Constant index_maps below: DMA'd once, resident across the grid.
            pl.BlockSpec((d, EH), lambda i: (0, 0)),                 # W1 flat (bf16)
            pl.BlockSpec((1, EH), lambda i: (0, 0)),                 # b1 flat (bf16)
            pl.BlockSpec((EH, d), lambda i: (0, 0)),                 # W2 flat (bf16)
            pl.BlockSpec((NUM_EXPERTS, d), lambda i: (0, 0)),        # b2 (f32)
            pl.BlockSpec((NUM_EXPERTS, EH), lambda i: (0, 0)),       # block-diag sel
            pl.BlockSpec((token_tile, NUM_EXPERTS), lambda i: (i, 0)),  # combine
        ],
        out_specs=pl.BlockSpec((token_tile, d), lambda i: (i, 0)),   # lane-dense out
    )
    return pl.pallas_call(
        fused_moe_kernel,
        out_shape=jax.ShapeDtypeStruct((n_pad, d), jnp.float32),
        grid_spec=grid_spec,
        compiler_params=pltpu.CompilerParams(
            dimension_semantics=("parallel",),      # tiles shard across TCs (v7x)
            vmem_limit_bytes=48 * 1024 * 1024,      # above v5e/v7x scoped defaults
        ),
    )(x_bf16, w1_flat, b1_flat, w2_flat, b2_mat, sel, combine)


# ------------------------------ router (glue) -------------------------------
def router_combine(flat_x, params, noise_key, expert_capacity):
    """combine (N, E): gating weight if token routed to expert AND within that
    expert's capacity (first-come-first-served in flat token order), else 0."""
    logits = flat_x @ params["w_route"].T + params["b_route"]          # (N, E)
    noise_logits = flat_x @ params["w_noise"].T + params["b_noise"]    # (N, E)
    noise = jax.random.normal(noise_key, logits.shape, logits.dtype)
    noisy = logits + noise * jax.nn.softplus(noise_logits)

    _, top_idx = jax.lax.top_k(noisy, TOP_K)                           # (N, k)
    routed = jnp.any(
        jax.nn.one_hot(top_idx, NUM_EXPERTS, dtype=bool), axis=1)      # (N, E)

    sparse_logits = jnp.where(routed, noisy, -jnp.inf)
    gating = jax.nn.softmax(sparse_logits, axis=-1)                    # (N, E)

    rank = jnp.cumsum(routed.astype(jnp.int32), axis=0)                # 1-based
    keep = routed & (rank <= expert_capacity)
    return jnp.where(keep, gating, 0.0)


# ------------------------------ full forward --------------------------------
def _choose_token_tile(n):
    if n >= 256:
        return 256   # sweet spot on v5e; sweep up to 512 on v6e/v7x for huge N
    return max(8, ((n + 7) // 8) * 8)   # tiny N: one sublane-aligned tile


def sparse_moe_forward(x, params, noise_key):
    B, S, D = x.shape
    N = B * S
    flat_x = x.reshape(N, D)
    expert_capacity = int(N * TOP_K / NUM_EXPERTS * CAPACITY_FACTOR)

    combine = router_combine(flat_x, params, noise_key, expert_capacity)  # (N,E)

    # Layout plumbing (once, outside the kernel): W1 (E,D,H) -> (D, E*H),
    # W2 (E,H,D) -> (E*H, D); column/row (e*H + j) <-> expert e, hidden unit j.
    w1_flat = jnp.transpose(params["w1"], (1, 0, 2)).reshape(D, EH)
    w1_flat = w1_flat.astype(jnp.bfloat16)
    b1_flat = params["b1"].reshape(1, EH).astype(jnp.bfloat16)
    w2_flat = params["w2"].reshape(EH, D).astype(jnp.bfloat16)
    b2_mat = params["b2"].reshape(NUM_EXPERTS, D)
    # block-diagonal ones: sel[e, e*H + j] = 1 (used in-kernel to expand gates)
    sel = jnp.repeat(jnp.eye(NUM_EXPERTS, dtype=jnp.bfloat16), HIDDEN, axis=1)

    token_tile = _choose_token_tile(N)
    n_pad = pl.cdiv(N, token_tile) * token_tile
    pad = n_pad - N
    x_bf = flat_x.astype(jnp.bfloat16)
    comb_p = combine
    if pad:                              # tail tokens: pad with zeros (combine == 0
        x_bf = jnp.pad(x_bf, ((0, pad), (0, 0)))     # => padded rows output zero),
        comb_p = jnp.pad(combine, ((0, pad), (0, 0)))  # slice them off below.

    out = run_fused_experts(x_bf, w1_flat, b1_flat, w2_flat, b2_mat, sel,
                            comb_p, token_tile)
    return out[:N].reshape(B, S, D), combine


def reference_forward(flat_x, params, combine):
    """Pure-JAX per-expert loop mirroring the PyTorch structure, using the same
    dtype order as the kernel (bf16 operands/elementwise, f32 accumulation)."""
    x_bf = flat_x.astype(jnp.bfloat16)
    acc = jnp.zeros(flat_x.shape, jnp.float32)
    for e in range(NUM_EXPERTS):
        g = combine[:, e:e + 1]                                          # (N, 1)
        g_bf = g.astype(jnp.bfloat16)
        h = jnp.dot(x_bf, params["w1"][e].astype(jnp.bfloat16),
                    preferred_element_type=jnp.float32)
        h = jnp.maximum(h.astype(jnp.bfloat16)
                        + params["b1"][e].astype(jnp.bfloat16), 0.0)
        y = jnp.dot(h * g_bf, params["w2"][e].astype(jnp.bfloat16),
                    preferred_element_type=jnp.float32)
        acc = acc + y + g * params["b2"][e]
    return acc


# ------------------------------ parameter init ------------------------------
def init_params(key):
    ks = jax.random.split(key, 8)

    def linear(k, fan_in, shape):
        bound = 1.0 / np.sqrt(fan_in)
        return jax.random.uniform(k, shape, jnp.float32, -bound, bound)

    return {
        # router: nn.Linear(n_embed, num_experts) -> weight (E, D), bias (E,)
        "w_route": linear(ks[0], N_EMBED, (NUM_EXPERTS, N_EMBED)),
        "b_route": linear(ks[1], N_EMBED, (NUM_EXPERTS,)),
        "w_noise": linear(ks[2], N_EMBED, (NUM_EXPERTS, N_EMBED)),
        "b_noise": linear(ks[3], N_EMBED, (NUM_EXPERTS,)),
        # experts, pre-transposed for x @ W
        "w1": linear(ks[4], N_EMBED, (NUM_EXPERTS, N_EMBED, HIDDEN)),
        "b1": linear(ks[5], N_EMBED, (NUM_EXPERTS, 1, HIDDEN)),
        "w2": linear(ks[6], HIDDEN, (NUM_EXPERTS, HIDDEN, N_EMBED)),
        "b2": linear(ks[7], HIDDEN, (NUM_EXPERTS, 1, N_EMBED)),
    }


# ----------------------------------- main ------------------------------------
if __name__ == "__main__":
    key = jax.random.PRNGKey(0)
    k_param, k_x, k_noise, k_x2, k_noise2 = jax.random.split(key, 5)

    params = init_params(k_param)

    # primary small-shape run (n_embed = 128 per the module)
    B, S = 2, 8                  # N = 16 tokens
    x = jax.random.normal(k_x, (B, S, N_EMBED), jnp.float32)
    out, combine = sparse_moe_forward(x, params, k_noise)
    out = jax.block_until_ready(out)
    assert out.shape == (B, S, N_EMBED)

    ref = reference_forward(x.reshape(-1, N_EMBED), params, combine)
    np.testing.assert_allclose(np.asarray(out).reshape(-1, N_EMBED),
                               np.asarray(ref), rtol=5e-3, atol=5e-3)

    # second run exercising the padded-tail path (N not a multiple of 8 / tile)
    B2, S2 = 3, 7                # N = 21 tokens -> padded to 24 inside the wrapper
    x2 = jax.random.normal(k_x2, (B2, S2, N_EMBED), jnp.float32)
    out2, combine2 = sparse_moe_forward(x2, params, k_noise2)
    out2 = jax.block_until_ready(out2)
    ref2 = reference_forward(x2.reshape(-1, N_EMBED), params, combine2)
    np.testing.assert_allclose(np.asarray(out2).reshape(-1, N_EMBED),
                               np.asarray(ref2), rtol=5e-3, atol=5e-3)

    print("KERNEL_OK")
</pallas_src>

<mosaic_0001>
module attributes {stable_mosaic.version = 11 : i64} {
  func.func @fused_moe_kernel(%arg0: i32, %arg1: memref<16x128xbf16, #tpu.memory_space<vmem>>, %arg2: memref<128x4096xbf16, #tpu.memory_space<vmem>>, %arg3: memref<1x4096xbf16, #tpu.memory_space<vmem>>, %arg4: memref<4096x128xbf16, #tpu.memory_space<vmem>>, %arg5: memref<8x128xf32, #tpu.memory_space<vmem>>, %arg6: memref<8x4096xbf16, #tpu.memory_space<vmem>>, %arg7: memref<16x8xf32, #tpu.memory_space<vmem>>, %arg8: memref<16x128xf32, #tpu.memory_space<vmem>>) attributes {dimension_semantics = [#tpu.dimension_semantics<parallel>], iteration_bounds = array<i64: 1>, scalar_prefetch = 0 : i64, scratch_operands = 0 : i64, tpu.core_type = #tpu.core_type<tc>, window_params = [{transform_indices = @transform_0, window_bounds = array<i64: 16, 128>}, {pipeline_mode = #tpu.pipeline_mode<synchronous>, transform_indices = @transform_1, window_bounds = array<i64: 128, 4096>}, {pipeline_mode = #tpu.pipeline_mode<synchronous>, transform_indices = @transform_2, window_bounds = array<i64: 1, 4096>}, {pipeline_mode = #tpu.pipeline_mode<synchronous>, transform_indices = @transform_3, window_bounds = array<i64: 4096, 128>}, {pipeline_mode = #tpu.pipeline_mode<synchronous>, transform_indices = @transform_4, window_bounds = array<i64: 8, 128>}, {pipeline_mode = #tpu.pipeline_mode<synchronous>, transform_indices = @transform_5, window_bounds = array<i64: 8, 4096>}, {transform_indices = @transform_6, window_bounds = array<i64: 16, 8>}, {transform_indices = @transform_7, window_bounds = array<i64: 16, 128>}]} {
    %c0 = arith.constant 0 : index
    %c0_0 = arith.constant 0 : index
    %0 = vector.load %arg1[%c0, %c0_0] : memref<16x128xbf16, #tpu.memory_space<vmem>>, vector<16x128xbf16>
    %c0_1 = arith.constant 0 : index
    %c0_2 = arith.constant 0 : index
    %1 = vector.load %arg2[%c0_1, %c0_2] : memref<128x4096xbf16, #tpu.memory_space<vmem>>, vector<128x4096xbf16>
    %cst = arith.constant dense<0.000000e+00> : vector<16x4096xf32>
    %2 = tpu.matmul %0, %1, %cst {dimension_numbers = #tpu.dot_dimension_numbers<[1], [0], [0], [1], [0, 0, 1, 1], [], []>} : vector<16x128xbf16>, vector<128x4096xbf16>, vector<16x4096xf32> -> vector<16x4096xf32>
    %3 = arith.truncf %2 : vector<16x4096xf32> to vector<16x4096xbf16>
    %c0_3 = arith.constant 0 : index
    %c0_4 = arith.constant 0 : index
    %4 = vector.load %arg3[%c0_3, %c0_4] : memref<1x4096xbf16, #tpu.memory_space<vmem>>, vector<1x4096xbf16>
    %5 = vector.broadcast %4 : vector<1x4096xbf16> to vector<16x4096xbf16>
    %6 = arith.addf %3, %5 : vector<16x4096xbf16>
    %cst_5 = arith.constant 0.000000e+00 : bf16
    %7 = vector.broadcast %cst_5 : bf16 to vector<16x4096xbf16>
    %8 = arith.maximumf %6, %7 : vector<16x4096xbf16>
    %c0_6 = arith.constant 0 : index
    %c0_7 = arith.constant 0 : index
    %9 = vector.load %arg7[%c0_6, %c0_7] : memref<16x8xf32, #tpu.memory_space<vmem>>, vector<16x8xf32>
    %10 = arith.truncf %9 : vector<16x8xf32> to vector<16x8xbf16>
    %c0_8 = arith.constant 0 : index
    %c0_9 = arith.constant 0 : index
    %11 = vector.load %arg6[%c0_8, %c0_9] : memref<8x4096xbf16, #tpu.memory_space<vmem>>, vector<8x4096xbf16>
    %cst_10 = arith.constant dense<0.000000e+00> : vector<16x4096xf32>
    %12 = tpu.matmul %10, %11, %cst_10 {dimension_numbers = #tpu.dot_dimension_numbers<[1], [0], [0], [1], [0, 0, 1, 1], [], []>} : vector<16x8xbf16>, vector<8x4096xbf16>, vector<16x4096xf32> -> vector<16x4096xf32>
    %13 = arith.truncf %12 : vector<16x4096xf32> to vector<16x4096xbf16>
    %14 = arith.mulf %8, %13 : vector<16x4096xbf16>
    %c0_11 = arith.constant 0 : index
    %c0_12 = arith.constant 0 : index
    %15 = vector.load %arg4[%c0_11, %c0_12] : memref<4096x128xbf16, #tpu.memory_space<vmem>>, vector<4096x128xbf16>
    %cst_13 = arith.constant dense<0.000000e+00> : vector<16x128xf32>
    %16 = tpu.matmul %14, %15, %cst_13 {dimension_numbers = #tpu.dot_dimension_numbers<[1], [0], [0], [1], [0, 0, 1, 1], [], []>} : vector<16x4096xbf16>, vector<4096x128xbf16>, vector<16x128xf32> -> vector<16x128xf32>
    %c0_14 = arith.constant 0 : index
    %c0_15 = arith.constant 0 : index
    %17 = vector.load %arg7[%c0_14, %c0_15] : memref<16x8xf32, #tpu.memory_space<vmem>>, vector<16x8xf32>
    %c0_16 = arith.constant 0 : index
    %c0_17 = arith.constant 0 : index
    %18 = vector.load %arg5[%c0_16, %c0_17] : memref<8x128xf32, #tpu.memory_space<vmem>>, vector<8x128xf32>
    %cst_18 = arith.constant dense<0.000000e+00> : vector<16x128xf32>
    %19 = tpu.matmul %17, %18, %cst_18 {dimension_numbers = #tpu.dot_dimension_numbers<[1], [0], [0], [1], [0, 0, 1, 1], [], []>} : vector<16x8xf32>, vector<8x128xf32>, vector<16x128xf32> -> vector<16x128xf32>
    %20 = arith.addf %16, %19 : vector<16x128xf32>
    %c0_19 = arith.constant 0 : index
    %c0_20 = arith.constant 0 : index
    %21 = vector.load %arg8[%c0_19, %c0_20] : memref<16x128xf32, #tpu.memory_space<vmem>>, vector<16x128xf32>
    tpu.vector_store %arg8[%c0_19, %c0_20], %20 {strides = array<i32>} : memref<16x128xf32, #tpu.memory_space<vmem>>, vector<16x128xf32>,
    return
  }
  func.func @transform_0(%arg0: i32) -> (i32, i32) {
    %c0_i32 = arith.constant 0 : i32
    %c0_i32_0 = arith.constant 0 : i32
    return %arg0, %c0_i32 : i32, i32
  }
  func.func @transform_1(%arg0: i32) -> (i32, i32) {
    %c0_i32 = arith.constant 0 : i32
    %c0_i32_0 = arith.constant 0 : i32
    %c0_i32_1 = arith.constant 0 : i32
    return %c0_i32, %c0_i32_0 : i32, i32
  }
  func.func @transform_2(%arg0: i32) -> (i32, i32) {
    %c0_i32 = arith.constant 0 : i32
    %c0_i32_0 = arith.constant 0 : i32
    %c0_i32_1 = arith.constant 0 : i32
    return %c0_i32, %c0_i32_0 : i32, i32
  }
  func.func @transform_3(%arg0: i32) -> (i32, i32) {
    %c0_i32 = arith.constant 0 : i32
    %c0_i32_0 = arith.constant 0 : i32
    %c0_i32_1 = arith.constant 0 : i32
    return %c0_i32, %c0_i32_0 : i32, i32
  }
  func.func @transform_4(%arg0: i32) -> (i32, i32) {
    %c0_i32 = arith.constant 0 : i32
    %c0_i32_0 = arith.constant 0 : i32
    %c0_i32_1 = arith.constant 0 : i32
    return %c0_i32, %c0_i32_0 : i32, i32
  }
  func.func @transform_5(%arg0: i32) -> (i32, i32) {
    %c0_i32 = arith.constant 0 : i32
    %c0_i32_0 = arith.constant 0 : i32
    %c0_i32_1 = arith.constant 0 : i32
    return %c0_i32, %c0_i32_0 : i32, i32
  }
  func.func @transform_6(%arg0: i32) -> (i32, i32) {
    %c0_i32 = arith.constant 0 : i32
    %c0_i32_0 = arith.constant 0 : i32
    return %arg0, %c0_i32 : i32, i32
  }
  func.func @transform_7(%arg0: i32) -> (i32, i32) {
    %c0_i32 = arith.constant 0 : i32
    %c0_i32_0 = arith.constant 0 : i32
    return %arg0, %c0_i32 : i32, i32
  }
}

</mosaic_0001>

<bundles_post_ra>
// kernel: tpu_custom_call.1
= control target key start
LH: loop header
LB: loop body
LE: loop exit
PB: predicated region body
PF: predicated region fallthrough
CT: control target
= control target key end

     0   :  { %12 = vsyncpa [#allocation3], 0  ;;  %s8819_s0 = inlined_call_operand.vmem [shape: bf16[16,128], index: 0, kind: input, shape index: {}]   ;;  %s8820_s1 = inlined_call_operand.hbm [shape: bf16[128,4096], index: 1, kind: input, shape index: {}]   ;;  %s8821_s2 = inlined_call_operand.hbm [shape: bf16[1,4096], index: 2, kind: input, shape index: {}]   ;;  %s8822_s3 = inlined_call_operand.hbm [shape: bf16[4096,128], index: 3, kind: input, shape index: {}]   ;;  %s8823_s4 = inlined_call_operand.vmem [shape: f32[8,128], index: 4, kind: input, shape index: {}]   ;;  %s8824_s5 = inlined_call_operand.hbm [shape: bf16[8,4096], index: 5, kind: input, shape index: {}]   ;;  %s8825_s6 = inlined_call_operand.vmem [shape: f32[16,8], index: 6, kind: input, shape index: {}]   ;;  %s8826_s7 = inlined_call_operand.hbm [shape: f32[16,128], index: 7, kind: output, shape index: {}]  }
   0x1   :  { %13 = vsyncpa [#allocation6], 0 }
   0x2   :  { %14 = vsyncpa [#allocation9], 0 }
   0x3   :  { %15 = vsyncpa [#allocation4], 0  ;;  %s7958_s24 = smov [#allocation5]   ;;  %s7959_s26 = smov [#allocation2]  }
   0x4   :  { %s36_s25 = sshll.u32 %s7958_s24, 4  ;;  %s23_s27 = sshll.u32 %s7959_s26, 4  ;;  %s37_s25 = int_to_ptr.vmem [resolvable:$true] %s36_s25  ;;  %s8010_s27 = int_to_ptr.vmem [resolvable:$true] %s23_s27 }
   0x5   :  { %s7840_s30 = scalar_lea.hbm %s8821_s2, 512 }
   0x6   :  { %p7841_p0 = scmp.ne.s32.totalorder %s8821_s2, %s7840_s30  ;;  %p7844_p1 = scmp.lt.u32.totalorder %s7840_s30, %s8821_s2 }
   0x8   :  { %p7846_p2 = pnand %p7844_p1, %p7841_p0 }
   0xa   :  { %7849 = shalt.err (!%p7846_p2)
}
   0xb   :  { %s7850_s12 = scalar_lea.vmem %s37_s25, 512  ;;  %p7855_p4 = scmp.lt.s32.totalorder %s37_s25, %s37_s25 }
   0xc   :  { %p7851_p3 = scmp.ne.s32.totalorder %s37_s25, %s7850_s12  ;;  %p7856_p5 = scmp.lt.s32.totalorder %s7850_s12, %s7850_s12 }
   0xe   :  { %p7857_p6 = por %p7856_p5, %p7855_p4 }
  0x10   :  { %p7858_p7 = pnand %p7857_p6, %p7851_p3 }
  0x12   :  { %7861 = shalt.err (!%p7858_p7)
}
  0x13   :  { %39 = dma.hbm_to_vmem [thread:$0]  %s8821_s2, 512, %s37_s25, [#allocation6]  }
  0x14   :  { %s7862_s17 = scalar_lea.hbm %s8820_s1, 32768 }
  0x15   :  { %p7863_p8 = scmp.ne.s32.totalorder %s8820_s1, %s7862_s17  ;;  %p7866_p9 = scmp.lt.u32.totalorder %s7862_s17, %s8820_s1 }
  0x17   :  { %p7868_p10 = pnand %p7866_p9, %p7863_p8 }
  0x19   :  { %7871 = shalt.err (!%p7868_p10)
}
  0x1a   :  { %s7872_s22 = scalar_lea.vmem %s8010_s27, 32768  ;;  %p7877_p12 = scmp.lt.s32.totalorder %s8010_s27, %s8010_s27 }
  0x1b   :  { %p7873_p11 = scmp.ne.s32.totalorder %s8010_s27, %s7872_s22  ;;  %p7878_p13 = scmp.lt.s32.totalorder %s7872_s22, %s7872_s22 }
  0x1d   :  { %p7879_p0 = por %p7878_p13, %p7877_p12 }
  0x1f   :  { %p7880_p1 = pnand %p7879_p0, %p7873_p11 }
  0x21   :  { %7883 = shalt.err (!%p7880_p1)
}
  0x22   :  { %s7960_s2 = smov 2048   ;;  %s7961_s23 = smov 128  }
  0x23   :  { %29 = dma.hbm_to_vmem [thread:$0]  %s8820_s1, 32768, %s8010_s27, [#allocation3], %s7960_s2, %s7960_s2, %s7961_s23  }
  0x24   :  { %s7962_s26 = smov [#allocation7]   ;;  %s7884_s8 = scalar_lea.hbm %s8822_s3, 32768 }
  0x25   :  { %s45_s28 = sshll.u32 %s7962_s26, 4  ;;  %p7885_p2 = scmp.ne.s32.totalorder %s8822_s3, %s7884_s8  ;;  %s46_s28 = int_to_ptr.vmem [resolvable:$true] %s45_s28 }
  0x26   :  { %p7888_p3 = scmp.lt.u32.totalorder %s7884_s8, %s8822_s3 }
  0x28   :  { %p7890_p4 = pnand %p7888_p3, %p7885_p2 }
  0x2a   :  { %7893 = shalt.err (!%p7890_p4)
}
  0x2b   :  { %s7894_s13 = scalar_lea.vmem %s46_s28, 32768  ;;  %p7899_p6 = scmp.lt.s32.totalorder %s46_s28, %s46_s28 }
  0x2c   :  { %p7895_p5 = scmp.ne.s32.totalorder %s46_s28, %s7894_s13  ;;  %p7900_p7 = scmp.lt.s32.totalorder %s7894_s13, %s7894_s13 }
  0x2e   :  { %p7901_p8 = por %p7900_p7, %p7899_p6 }
  0x30   :  { %p7902_p9 = pnand %p7901_p8, %p7895_p5 }
  0x32   :  { %7905 = shalt.err (!%p7902_p9)
}
  0x33   :  { %s7963_s1 = smov 64   ;;  %s7964_s27 = smov 4  }
  0x34   :  { %51 = dma.hbm_to_vmem [thread:$0]  %s8822_s3, 32768, %s46_s28, [#allocation6], %s7963_s1, %s7963_s1, %s7964_s27  }
  0x35   :  { %s7965_s16 = smov [#allocation8]   ;;  %s7906_s20 = scalar_lea.hbm %s8824_s5, 2048 }
  0x36   :  { %s60_s17 = sshll.u32 %s7965_s16, 4  ;;  %p7907_p10 = scmp.ne.s32.totalorder %s8824_s5, %s7906_s20  ;;  %s61_s17 = int_to_ptr.vmem [resolvable:$true] %s60_s17 }
  0x37   :  { %p7910_p11 = scmp.lt.u32.totalorder %s7906_s20, %s8824_s5 }
  0x39   :  { %p7912_p12 = pnand %p7910_p11, %p7907_p10 }
  0x3b   :  { %7915 = shalt.err (!%p7912_p12)
}
  0x3c   :  { %s7916_s25 = scalar_lea.vmem %s61_s17, 2048  ;;  %p7921_p0 = scmp.lt.s32.totalorder %s61_s17, %s61_s17 }
  0x3d   :  { %p7917_p13 = scmp.ne.s32.totalorder %s61_s17, %s7916_s25  ;;  %p7922_p1 = scmp.lt.s32.totalorder %s7916_s25, %s7916_s25 }
  0x3f   :  { %p7923_p2 = por %p7922_p1, %p7921_p0 }
  0x41   :  { %p7924_p3 = pnand %p7923_p2, %p7917_p13 }
  0x43   :  { %7927 = shalt.err (!%p7924_p3)
}
  0x44   :  { %63 = dma.hbm_to_vmem [thread:$0]  %s8824_s5, 2048, %s61_s17, [#allocation9]  }
  0x45   :  { %7950 = dma.done.wait [#allocation3], 32768  }
  0x46   :  { %7951 = vsyncadd [#allocation3], 4294934528 }
  0x47   :  { %7952 = dma.done.wait [#allocation6], 33280  }
  0x48   :  { %7953 = vsyncadd [#allocation6], 4294934016 }
  0x49   :  { %7954 = dma.done.wait [#allocation9], 2048  }
  0x4a   :  { %7955 = vsyncadd [#allocation9], 4294965248  ;;  %v8827_v0 = vmov 0   ;;  %v81_v1 = vld [vmem:[#allocation2] sm:$0xff]  ;;  %v82_v3 = vld [vmem:[#allocation2 + $0x8] sm:$0xff]  ;;  %vm2938_vm0 = vcmask 1043456  }
  0x4b   :  { %1655 = vmatprep.mubr.bf16.mxu0 %v8827_v0  ;;  %1698 = vmatprep.mubr.bf16.mxu1 %v8827_v0  ;;  %v97_v2 = vld [vmem:[#allocation2 + $0x80] sm:$0xff]  ;;  %v98_v5 = vld [vmem:[#allocation2 + $0x88] sm:$0xff]  ;;  %v83_v63 = vld [vmem:[#allocation2 + $0x10] sm:$0xff]  ;;  %vm2934_vm1 = vcmask 64512  }
  0x4c   :  { %v6596_v4 = vcombine.high %v81_v1, %v97_v2  ;;  %v6595_v6 = vcombine.low %v81_v1, %v97_v2  ;;  %v113_v7 = vld [vmem:[#allocation2 + $0x100] sm:$0xff]  ;;  %v6598_v9 = vcombine.high %v82_v3, %v98_v5  ;;  %v6597_v10 = vcombine.low %v82_v3, %v98_v5  ;;  %v114_v12 = vld [vmem:[#allocation2 + $0x108] sm:$0xff]  ;;  %v99_v1 = vld [vmem:[#allocation2 + $0x90] sm:$0xff] }
  0x4d   :  { %v129_v8 = vld [vmem:[#allocation2 + $0x180] sm:$0xff]  ;;  %v130_v13 = vld [vmem:[#allocation2 + $0x188] sm:$0xff]  ;;  %v84_v2 = vld [vmem:[#allocation2 + $0x18] sm:$0xff] }
  0x4e   :  { %v6628_v11 = vcombine.high %v113_v7, %v129_v8  ;;  %v145_v14 = vld [vmem:[#allocation2 + $0x200] sm:$0xff]  ;;  %1623 = vmatprep.subr.bf16.mxu0 %v6596_v4  ;;  %v6630_v15 = vcombine.high %v114_v12, %v130_v13  ;;  %v146_v17 = vld [vmem:[#allocation2 + $0x208] sm:$0xff]  ;;  %1666 = vmatprep.subr.bf16.mxu1 %v6598_v9  ;;  %v6627_v19 = vcombine.low %v113_v7, %v129_v8  ;;  %v100_v3 = vld [vmem:[#allocation2 + $0x98] sm:$0xff] }
  0x4f   :  { %v161_v16 = vld [vmem:[#allocation2 + $0x280] sm:$0xff]  ;;  %v162_v18 = vld [vmem:[#allocation2 + $0x288] sm:$0xff]  ;;  %1624 = vmatpush1.bf16.msra.mxu0 %v6595_v6  ;;  %1667 = vmatpush1.bf16.msra.mxu1 %v6597_v10  ;;  %v6629_v20 = vcombine.low %v114_v12, %v130_v13  ;;  %v6600_v6 = vcombine.high %v83_v63, %v99_v1  ;;  %v6602_v7 = vcombine.high %v84_v2, %v100_v3  ;;  %v115_v8 = vld [vmem:[#allocation2 + $0x110] sm:$0xff] }
  0x50   :  { %1625 = vmatprep.subr.bf16.mxu0 %v6628_v11  ;;  %v6660_v21 = vcombine.high %v145_v14, %v161_v16  ;;  %1668 = vmatprep.subr.bf16.mxu1 %v6630_v15  ;;  %v6662_v22 = vcombine.high %v146_v17, %v162_v18  ;;  %v177_v23 = vld [vmem:[#allocation2 + $0x300] sm:$0xff]  ;;  %v178_v25 = vld [vmem:[#allocation2 + $0x308] sm:$0xff]  ;;  %v6659_v27 = vcombine.low %v145_v14, %v161_v16  ;;  %v131_v9 = vld [vmem:[#allocation2 + $0x190] sm:$0xff] }
  0x51   :  { %v193_v24 = vld [vmem:[#allocation2 + $0x380] sm:$0xff]  ;;  %v194_v26 = vld [vmem:[#allocation2 + $0x388] sm:$0xff]  ;;  %v6661_v28 = vcombine.low %v146_v17, %v162_v18  ;;  %v116_v11 = vld [vmem:[#allocation2 + $0x118] sm:$0xff]  ;;  %v6599_v13 = vcombine.low %v83_v63, %v99_v1  ;;  %v6601_v14 = vcombine.low %v84_v2, %v100_v3  ;;  %v6632_v15 = vcombine.high %v115_v8, %v131_v9 }
  0x52   :  { %v6692_v29 = vcombine.high %v177_v23, %v193_v24  ;;  %v6694_v30 = vcombine.high %v178_v25, %v194_v26  ;;  %v209_v31 = vld [vmem:[#allocation2 + $0x400] sm:$0xff]  ;;  %v210_v33 = vld [vmem:[#allocation2 + $0x408] sm:$0xff]  ;;  %v6691_v35 = vcombine.low %v177_v23, %v193_v24  ;;  %v6693_v36 = vcombine.low %v178_v25, %v194_v26  ;;  %v132_v12 = vld [vmem:[#allocation2 + $0x198] sm:$0xff] }
  0x53   :  { %1626 = vmatpush1.bf16.msra.mxu0 %v6627_v19  ;;  %1669 = vmatpush1.bf16.msra.mxu1 %v6629_v20  ;;  %v225_v32 = vld [vmem:[#allocation2 + $0x480] sm:$0xff]  ;;  %v226_v34 = vld [vmem:[#allocation2 + $0x488] sm:$0xff]  ;;  %v6634_v16 = vcombine.high %v116_v11, %v132_v12  ;;  %v147_v17 = vld [vmem:[#allocation2 + $0x210] sm:$0xff] }
  0x54   :  { %1627 = vmatprep.subr.bf16.mxu0 %v6660_v21  ;;  %1670 = vmatprep.subr.bf16.mxu1 %v6662_v22  ;;  %v6724_v37 = vcombine.high %v209_v31, %v225_v32  ;;  %v6726_v38 = vcombine.high %v210_v33, %v226_v34  ;;  %v241_v39 = vld [vmem:[#allocation2 + $0x500] sm:$0xff]  ;;  %v242_v41 = vld [vmem:[#allocation2 + $0x508] sm:$0xff]  ;;  %v6723_v43 = vcombine.low %v209_v31, %v225_v32  ;;  %v163_v18 = vld [vmem:[#allocation2 + $0x290] sm:$0xff] }
  0x55   :  { %v257_v40 = vld [vmem:[#allocation2 + $0x580] sm:$0xff]  ;;  %v258_v42 = vld [vmem:[#allocation2 + $0x588] sm:$0xff]  ;;  %v6725_v44 = vcombine.low %v210_v33, %v226_v34  ;;  %v148_v19 = vld [vmem:[#allocation2 + $0x218] sm:$0xff]  ;;  %v6631_v21 = vcombine.low %v115_v8, %v131_v9  ;;  %v6633_v22 = vcombine.low %v116_v11, %v132_v12  ;;  %v6664_v23 = vcombine.high %v147_v17, %v163_v18 }
  0x56   :  { %v6756_v45 = vcombine.high %v241_v39, %v257_v40  ;;  %v6758_v46 = vcombine.high %v242_v41, %v258_v42  ;;  %v273_v47 = vld [vmem:[#allocation2 + $0x600] sm:$0xff]  ;;  %v274_v49 = vld [vmem:[#allocation2 + $0x608] sm:$0xff]  ;;  %v6755_v51 = vcombine.low %v241_v39, %v257_v40  ;;  %v6757_v52 = vcombine.low %v242_v41, %v258_v42  ;;  %v164_v20 = vld [vmem:[#allocation2 + $0x298] sm:$0xff] }
  0x57   :  { %1628 = vmatpush1.bf16.msra.mxu0 %v6659_v27  ;;  %1671 = vmatpush1.bf16.msra.mxu1 %v6661_v28  ;;  %v289_v48 = vld [vmem:[#allocation2 + $0x680] sm:$0xff]  ;;  %v290_v50 = vld [vmem:[#allocation2 + $0x688] sm:$0xff]  ;;  %v6666_v24 = vcombine.high %v148_v19, %v164_v20  ;;  %v179_v25 = vld [vmem:[#allocation2 + $0x310] sm:$0xff] }
  0x58   :  { %1629 = vmatprep.subr.bf16.mxu0 %v6692_v29  ;;  %1672 = vmatprep.subr.bf16.mxu1 %v6694_v30  ;;  %v6788_v53 = vcombine.high %v273_v47, %v289_v48  ;;  %v6790_v54 = vcombine.high %v274_v49, %v290_v50  ;;  %v305_v55 = vld [vmem:[#allocation2 + $0x700] sm:$0xff]  ;;  %v306_v57 = vld [vmem:[#allocation2 + $0x708] sm:$0xff]  ;;  %v6787_v59 = vcombine.low %v273_v47, %v289_v48  ;;  %v195_v26 = vld [vmem:[#allocation2 + $0x390] sm:$0xff] }
  0x59   :  { %v321_v56 = vld [vmem:[#allocation2 + $0x780] sm:$0xff]  ;;  %v322_v58 = vld [vmem:[#allocation2 + $0x788] sm:$0xff]  ;;  %v6789_v60 = vcombine.low %v274_v49, %v290_v50  ;;  %v180_v27 = vld [vmem:[#allocation2 + $0x318] sm:$0xff]  ;;  %v6663_v29 = vcombine.low %v147_v17, %v163_v18  ;;  %v6665_v30 = vcombine.low %v148_v19, %v164_v20  ;;  %v6696_v31 = vcombine.high %v179_v25, %v195_v26 }
  0x5a   :  { %v6820_v61 = vcombine.high %v305_v55, %v321_v56  ;;  %v6822_v62 = vcombine.high %v306_v57, %v322_v58  ;;  %v6819_v4 = vcombine.low %v305_v55, %v321_v56  ;;  %v6821_v5 = vcombine.low %v306_v57, %v322_v58  ;;  %v8071_v10 = vld [vmem:[%s8819_s0] sm:$0xff]   ;;  %v196_v28 = vld [vmem:[#allocation2 + $0x398] sm:$0xff]  ;;  %v211_v33 = vld [vmem:[#allocation2 + $0x410] sm:$0xff] }
  0x5b   :  { %1630 = vmatpush1.bf16.msra.mxu0 %v6691_v35  ;;  %1673 = vmatpush1.bf16.msra.mxu1 %v6693_v36  ;;  %v6698_v32 = vcombine.high %v180_v27, %v196_v28  ;;  %v227_v34 = vld [vmem:[#allocation2 + $0x490] sm:$0xff]  ;;  %v212_v35 = vld [vmem:[#allocation2 + $0x418] sm:$0xff]  ;;  %v85_v2 = vld [vmem:[#allocation2 + $0x20] sm:$0xff] }
  0x5c   :  { %1631 = vmatprep.subr.bf16.mxu0 %v6724_v37  ;;  %1674 = vmatprep.subr.bf16.mxu1 %v6726_v38  ;;  %v228_v36 = vld [vmem:[#allocation2 + $0x498] sm:$0xff]  ;;  %v6695_v37 = vcombine.low %v179_v25, %v195_v26  ;;  %v6697_v38 = vcombine.low %v180_v27, %v196_v28  ;;  %v6728_v39 = vcombine.high %v211_v33, %v227_v34  ;;  %v243_v41 = vld [vmem:[#allocation2 + $0x510] sm:$0xff]  ;;  %v101_v3 = vld [vmem:[#allocation2 + $0xa0] sm:$0xff] }
  0x5d   :  { %v6730_v40 = vcombine.high %v212_v35, %v228_v36  ;;  %v259_v42 = vld [vmem:[#allocation2 + $0x590] sm:$0xff]  ;;  %v6604_v8 = vcombine.high %v85_v2, %v101_v3  ;;  %v117_v11 = vld [vmem:[#allocation2 + $0x120] sm:$0xff]  ;;  %v150_v20 = vld [vmem:[#allocation2 + $0x228] sm:$0xff] }
  0x5e   :  { %v6760_v47 = vcombine.high %v243_v41, %v259_v42  ;;  %v275_v49 = vld [vmem:[#allocation2 + $0x610] sm:$0xff]  ;;  %v133_v12 = vld [vmem:[#allocation2 + $0x1a0] sm:$0xff]  ;;  %v182_v28 = vld [vmem:[#allocation2 + $0x328] sm:$0xff] }
  0x5f   :  { %1632 = vmatpush1.bf16.msra.mxu0 %v6723_v43  ;;  %1675 = vmatpush1.bf16.msra.mxu1 %v6725_v44  ;;  %v244_v43 = vld [vmem:[#allocation2 + $0x518] sm:$0xff]  ;;  %v291_v50 = vld [vmem:[#allocation2 + $0x690] sm:$0xff]  ;;  %v6636_v17 = vcombine.high %v117_v11, %v133_v12  ;;  %v149_v18 = vld [vmem:[#allocation2 + $0x220] sm:$0xff] }
  0x60   :  { %1633 = vmatprep.subr.bf16.mxu0 %v6756_v45  ;;  %1676 = vmatprep.subr.bf16.mxu1 %v6758_v46  ;;  %v260_v44 = vld [vmem:[#allocation2 + $0x598] sm:$0xff]  ;;  %v6727_v45 = vcombine.low %v211_v33, %v227_v34  ;;  %v6729_v46 = vcombine.low %v212_v35, %v228_v36  ;;  %v6792_v55 = vcombine.high %v275_v49, %v291_v50  ;;  %v307_v57 = vld [vmem:[#allocation2 + $0x710] sm:$0xff]  ;;  %v165_v19 = vld [vmem:[#allocation2 + $0x2a0] sm:$0xff] }
  0x61   :  { %v6762_v48 = vcombine.high %v244_v43, %v260_v44  ;;  %v323_v58 = vld [vmem:[#allocation2 + $0x790] sm:$0xff]  ;;  %v6668_v25 = vcombine.high %v149_v18, %v165_v19  ;;  %v181_v26 = vld [vmem:[#allocation2 + $0x320] sm:$0xff]  ;;  %v214_v36 = vld [vmem:[#allocation2 + $0x428] sm:$0xff] }
  0x62   :  { %v6824_v63 = vcombine.high %v307_v57, %v323_v58  ;;  %v197_v27 = vld [vmem:[#allocation2 + $0x3a0] sm:$0xff] }
  0x63   :  { %1634 = vmatpush1.bf16.msra.mxu0 %v6755_v51  ;;  %1677 = vmatpush1.bf16.msra.mxu1 %v6757_v52  ;;  %v276_v51 = vld [vmem:[#allocation2 + $0x618] sm:$0xff]  ;;  %v6700_v33 = vcombine.high %v181_v26, %v197_v27  ;;  %v213_v34 = vld [vmem:[#allocation2 + $0x420] sm:$0xff] }
  0x64   :  { %1635 = vmatprep.subr.bf16.mxu0 %v6788_v53  ;;  %1678 = vmatprep.subr.bf16.mxu1 %v6790_v54  ;;  %v292_v52 = vld [vmem:[#allocation2 + $0x698] sm:$0xff]  ;;  %v6759_v53 = vcombine.low %v243_v41, %v259_v42  ;;  %v6761_v54 = vcombine.low %v244_v43, %v260_v44  ;;  %v229_v35 = vld [vmem:[#allocation2 + $0x4a0] sm:$0xff]  ;;  %v246_v44 = vld [vmem:[#allocation2 + $0x528] sm:$0xff] }
  0x65   :  { %v6794_v56 = vcombine.high %v276_v51, %v292_v52  ;;  %v6732_v41 = vcombine.high %v213_v34, %v229_v35  ;;  %v245_v42 = vld [vmem:[#allocation2 + $0x520] sm:$0xff] }
  0x66   :  { %v261_v43 = vld [vmem:[#allocation2 + $0x5a0] sm:$0xff] }
  0x67   :  { %1636 = vmatpush1.bf16.msra.mxu0 %v6787_v59  ;;  %1679 = vmatpush1.bf16.msra.mxu1 %v6789_v60  ;;  %v308_v59 = vld [vmem:[#allocation2 + $0x718] sm:$0xff] }
  0x68   :  { %1637 = vmatprep.subr.bf16.mxu0 %v6820_v61  ;;  %1680 = vmatprep.subr.bf16.mxu1 %v6822_v62  ;;  %v324_v60 = vld [vmem:[#allocation2 + $0x798] sm:$0xff]  ;;  %v6791_v61 = vcombine.low %v275_v49, %v291_v50  ;;  %v6793_v62 = vcombine.low %v276_v51, %v292_v52  ;;  %v6764_v49 = vcombine.high %v245_v42, %v261_v43  ;;  %v277_v50 = vld [vmem:[#allocation2 + $0x620] sm:$0xff]  ;;  %v278_v52 = vld [vmem:[#allocation2 + $0x628] sm:$0xff] }
  0x69   :  { %v6826_v1 = vcombine.high %v308_v59, %v324_v60  ;;  %v293_v51 = vld [vmem:[#allocation2 + $0x6a0] sm:$0xff] }
  0x6b   :  { %1638 = vmatpush1.bf16.msra.mxu0 %v6819_v4  ;;  %1681 = vmatpush1.bf16.msra.mxu1 %v6821_v5  ;;  %v86_v4 = vld [vmem:[#allocation2 + $0x28] sm:$0xff] }
  0x6c   :  { %1709 = vmatprep.subr.bf16.mxu0 %v6600_v6  ;;  %1752 = vmatprep.subr.bf16.mxu1 %v6602_v7  ;;  %v102_v5 = vld [vmem:[#allocation2 + $0xa8] sm:$0xff]  ;;  %v6823_v6 = vcombine.low %v307_v57, %v323_v58  ;;  %v6825_v7 = vcombine.low %v308_v59, %v324_v60  ;;  %v6796_v57 = vcombine.high %v277_v50, %v293_v51  ;;  %v309_v58 = vld [vmem:[#allocation2 + $0x720] sm:$0xff] }
  0x6d   :  { %v6606_v9 = vcombine.high %v86_v4, %v102_v5  ;;  %v325_v59 = vld [vmem:[#allocation2 + $0x7a0] sm:$0xff]  ;;  %v310_v60 = vld [vmem:[#allocation2 + $0x728] sm:$0xff] }
  0x6e   :  { %1656 = vmatmul.mubr.bf16.vlgmr.msra.gmra.mrb[0].mxu0 %v8071_v10  ;;  %1699 = vmatmul.mubr.bf16.vlgmr.msra.gmra.mrb[0].mxu1 %v8071_v10 }
  0x6f   :  { %1710 = vmatpush1.bf16.msra.mxu0 %v6599_v13  ;;  %1753 = vmatpush1.bf16.msra.mxu1 %v6601_v14  ;;  %v118_v13 = vld [vmem:[#allocation2 + $0x128] sm:$0xff] }
  0x70   :  { %1711 = vmatprep.subr.bf16.mxu0 %v6632_v15  ;;  %1754 = vmatprep.subr.bf16.mxu1 %v6634_v16  ;;  %v134_v14 = vld [vmem:[#allocation2 + $0x1a8] sm:$0xff]  ;;  %v6603_v15 = vcombine.low %v85_v2, %v101_v3  ;;  %v6605_v16 = vcombine.low %v86_v4, %v102_v5  ;;  %v6828_v2 = vcombine.high %v309_v58, %v325_v59  ;;  %v87_v3 = vld [vmem:[#allocation2 + $0x30] sm:$0xff]  ;;  %v88_v5 = vld [vmem:[#allocation2 + $0x38] sm:$0xff] }
  0x71   :  { %1741 = vmatprep.mubr.bf16.mxu0 %v8827_v0  ;;  %1784 = vmatprep.mubr.bf16.mxu1 %v8827_v0  ;;  %v103_v4 = vld [vmem:[#allocation2 + $0xb0] sm:$0xff] }
  0x73   :  { %1712 = vmatpush1.bf16.msra.mxu0 %v6631_v21  ;;  %1755 = vmatpush1.bf16.msra.mxu1 %v6633_v22  ;;  %v6638_v21 = vcombine.high %v118_v13, %v134_v14  ;;  %v166_v22 = vld [vmem:[#allocation2 + $0x2a8] sm:$0xff] }
  0x74   :  { %1713 = vmatprep.subr.bf16.mxu0 %v6664_v23  ;;  %1756 = vmatprep.subr.bf16.mxu1 %v6666_v24  ;;  %v6635_v23 = vcombine.low %v117_v11, %v133_v12  ;;  %v6637_v24 = vcombine.low %v118_v13, %v134_v14  ;;  %v6608_v11 = vcombine.high %v87_v3, %v103_v4  ;;  %v119_v12 = vld [vmem:[#allocation2 + $0x130] sm:$0xff]  ;;  %v120_v14 = vld [vmem:[#allocation2 + $0x138] sm:$0xff] }
  0x75   :  { %v135_v13 = vld [vmem:[#allocation2 + $0x1b0] sm:$0xff] }
  0x77   :  { %1714 = vmatpush1.bf16.msra.mxu0 %v6663_v29  ;;  %1757 = vmatpush1.bf16.msra.mxu1 %v6665_v30  ;;  %v6670_v29 = vcombine.high %v150_v20, %v166_v22  ;;  %v198_v30 = vld [vmem:[#allocation2 + $0x3a8] sm:$0xff] }
  0x78   :  { %1715 = vmatprep.subr.bf16.mxu0 %v6696_v31  ;;  %1758 = vmatprep.subr.bf16.mxu1 %v6698_v32  ;;  %v6667_v31 = vcombine.low %v149_v18, %v165_v19  ;;  %v6669_v32 = vcombine.low %v150_v20, %v166_v22  ;;  %v6640_v19 = vcombine.high %v119_v12, %v135_v13  ;;  %v151_v20 = vld [vmem:[#allocation2 + $0x230] sm:$0xff]  ;;  %v152_v22 = vld [vmem:[#allocation2 + $0x238] sm:$0xff] }
  0x7b   :  { %1716 = vmatpush1.bf16.msra.mxu0 %v6695_v37  ;;  %1759 = vmatpush1.bf16.msra.mxu1 %v6697_v38  ;;  %v6702_v37 = vcombine.high %v182_v28, %v198_v30  ;;  %v230_v38 = vld [vmem:[#allocation2 + $0x4a8] sm:$0xff] }
  0x7c   :  { %1717 = vmatprep.subr.bf16.mxu0 %v6728_v39  ;;  %1760 = vmatprep.subr.bf16.mxu1 %v6730_v40  ;;  %v6699_v39 = vcombine.low %v181_v26, %v197_v27  ;;  %v6701_v40 = vcombine.low %v182_v28, %v198_v30  ;;  %v183_v28 = vld [vmem:[#allocation2 + $0x330] sm:$0xff]  ;;  %v184_v30 = vld [vmem:[#allocation2 + $0x338] sm:$0xff] }
  0x7f   :  { %1718 = vmatpush1.bf16.msra.mxu0 %v6727_v45  ;;  %1761 = vmatpush1.bf16.msra.mxu1 %v6729_v46  ;;  %v6734_v45 = vcombine.high %v214_v36, %v230_v38  ;;  %v262_v46 = vld [vmem:[#allocation2 + $0x5a8] sm:$0xff] }
  0x80   :  { %1719 = vmatprep.subr.bf16.mxu0 %v6760_v47  ;;  %1762 = vmatprep.subr.bf16.mxu1 %v6762_v48  ;;  %v6731_v47 = vcombine.low %v213_v34, %v229_v35  ;;  %v6733_v48 = vcombine.low %v214_v36, %v230_v38  ;;  %v215_v36 = vld [vmem:[#allocation2 + $0x430] sm:$0xff] }
  0x83   :  { %1720 = vmatpush1.bf16.msra.mxu0 %v6759_v53  ;;  %1763 = vmatpush1.bf16.msra.mxu1 %v6761_v54  ;;  %v6766_v53 = vcombine.high %v246_v44, %v262_v46  ;;  %v294_v54 = vld [vmem:[#allocation2 + $0x6a8] sm:$0xff] }
  0x84   :  { %1721 = vmatprep.subr.bf16.mxu0 %v6792_v55  ;;  %1764 = vmatprep.subr.bf16.mxu1 %v6794_v56  ;;  %v6763_v55 = vcombine.low %v245_v42, %v261_v43  ;;  %v6765_v56 = vcombine.low %v246_v44, %v262_v46  ;;  %v247_v44 = vld [vmem:[#allocation2 + $0x530] sm:$0xff]  ;;  %v248_v46 = vld [vmem:[#allocation2 + $0x538] sm:$0xff] }
  0x87   :  { %1722 = vmatpush1.bf16.msra.mxu0 %v6791_v61  ;;  %1765 = vmatpush1.bf16.msra.mxu1 %v6793_v62  ;;  %v6798_v61 = vcombine.high %v278_v52, %v294_v54  ;;  %v326_v62 = vld [vmem:[#allocation2 + $0x7a8] sm:$0xff] }
  0x88   :  { %1723 = vmatprep.subr.bf16.mxu0 %v6824_v63  ;;  %1766 = vmatprep.subr.bf16.mxu1 %v6826_v1  ;;  %v6795_v63 = vcombine.low %v277_v50, %v293_v51  ;;  %v6797_v1 = vcombine.low %v278_v52, %v294_v54  ;;  %v279_v52 = vld [vmem:[#allocation2 + $0x630] sm:$0xff]  ;;  %v280_v54 = vld [vmem:[#allocation2 + $0x638] sm:$0xff] }
  0x8b   :  { %1724 = vmatpush1.bf16.msra.mxu0 %v6823_v6  ;;  %1767 = vmatpush1.bf16.msra.mxu1 %v6825_v7  ;;  %v6830_v6 = vcombine.high %v310_v60, %v326_v62  ;;  %v104_v7 = vld [vmem:[#allocation2 + $0xb8] sm:$0xff] }
  0x8c   :  { %1795 = vmatprep.subr.bf16.mxu0 %v6604_v8  ;;  %1838 = vmatprep.subr.bf16.mxu1 %v6606_v9  ;;  %v6827_v8 = vcombine.low %v309_v58, %v325_v59  ;;  %v6829_v9 = vcombine.low %v310_v60, %v326_v62  ;;  %v6609_v18 = vcombine.low %v88_v5, %v104_v7  ;;  %v311_v60 = vld [vmem:[#allocation2 + $0x730] sm:$0xff]  ;;  %v312_v62 = vld [vmem:[#allocation2 + $0x738] sm:$0xff] }
  0x8e   :  { %1742 = vmatmul.mubr.bf16.vlgmr.msra.gmra.mrb[4].mxu0 %v8071_v10  ;;  %1785 = vmatmul.mubr.bf16.vlgmr.msra.gmra.mrb[4].mxu1 %v8071_v10 }
  0x8f   :  { %1796 = vmatpush1.bf16.msra.mxu0 %v6603_v15  ;;  %1839 = vmatpush1.bf16.msra.mxu1 %v6605_v16  ;;  %v6610_v15 = vcombine.high %v88_v5, %v104_v7  ;;  %v136_v16 = vld [vmem:[#allocation2 + $0x1b8] sm:$0xff]  ;;  %v89_v5 = vld [vmem:[#allocation2 + $0x40] sm:$0xff]  ;;  %v90_v7 = vld [vmem:[#allocation2 + $0x48] sm:$0xff] }
  0x90   :  { %1797 = vmatprep.subr.bf16.mxu0 %v6636_v17  ;;  %1840 = vmatprep.subr.bf16.mxu1 %v6638_v21  ;;  %v6607_v17 = vcombine.low %v87_v3, %v103_v4  ;;  %v167_v21 = vld [vmem:[#allocation2 + $0x2b0] sm:$0xff]  ;;  %v6641_v26 = vcombine.low %v120_v14, %v136_v16 }
  0x91   :  { %1827 = vmatprep.mubr.bf16.mxu0 %v8827_v0  ;;  %1870 = vmatprep.mubr.bf16.mxu1 %v8827_v0  ;;  %v6672_v27 = vcombine.high %v151_v20, %v167_v21 }
  0x93   :  { %1798 = vmatpush1.bf16.msra.mxu0 %v6635_v23  ;;  %1841 = vmatpush1.bf16.msra.mxu1 %v6637_v24  ;;  %v6642_v23 = vcombine.high %v120_v14, %v136_v16  ;;  %v168_v24 = vld [vmem:[#allocation2 + $0x2b8] sm:$0xff]  ;;  %v121_v14 = vld [vmem:[#allocation2 + $0x140] sm:$0xff]  ;;  %v122_v16 = vld [vmem:[#allocation2 + $0x148] sm:$0xff] }
  0x94   :  { %1799 = vmatprep.subr.bf16.mxu0 %v6668_v25  ;;  %1842 = vmatprep.subr.bf16.mxu1 %v6670_v29  ;;  %v6639_v25 = vcombine.low %v119_v12, %v135_v13  ;;  %v199_v29 = vld [vmem:[#allocation2 + $0x3b0] sm:$0xff]  ;;  %v6673_v34 = vcombine.low %v152_v22, %v168_v24 }
  0x95   :  { %v6704_v35 = vcombine.high %v183_v28, %v199_v29 }
  0x97   :  { %1800 = vmatpush1.bf16.msra.mxu0 %v6667_v31  ;;  %1843 = vmatpush1.bf16.msra.mxu1 %v6669_v32  ;;  %v6674_v31 = vcombine.high %v152_v22, %v168_v24  ;;  %v200_v32 = vld [vmem:[#allocation2 + $0x3b8] sm:$0xff]  ;;  %v154_v24 = vld [vmem:[#allocation2 + $0x248] sm:$0xff] }
  0x98   :  { %1801 = vmatprep.subr.bf16.mxu0 %v6700_v33  ;;  %1844 = vmatprep.subr.bf16.mxu1 %v6702_v37  ;;  %v6671_v33 = vcombine.low %v151_v20, %v167_v21  ;;  %v231_v37 = vld [vmem:[#allocation2 + $0x4b0] sm:$0xff]  ;;  %v6706_v38 = vcombine.high %v184_v30, %v200_v32  ;;  %v6705_v42 = vcombine.low %v184_v30, %v200_v32  ;;  %v153_v20 = vld [vmem:[#allocation2 + $0x240] sm:$0xff] }
  0x99   :  { %v6736_v43 = vcombine.high %v215_v36, %v231_v37  ;;  %v169_v21 = vld [vmem:[#allocation2 + $0x2c0] sm:$0xff] }
  0x9a   :  { %v6676_v30 = vcombine.high %v153_v20, %v169_v21  ;;  %v201_v32 = vld [vmem:[#allocation2 + $0x3c0] sm:$0xff] }
  0x9b   :  { %1802 = vmatpush1.bf16.msra.mxu0 %v6699_v39  ;;  %1845 = vmatpush1.bf16.msra.mxu1 %v6701_v40  ;;  %v216_v39 = vld [vmem:[#allocation2 + $0x438] sm:$0xff] }
  0x9c   :  { %1803 = vmatprep.subr.bf16.mxu0 %v6732_v41  ;;  %1846 = vmatprep.subr.bf16.mxu1 %v6734_v45  ;;  %v232_v40 = vld [vmem:[#allocation2 + $0x4b8] sm:$0xff]  ;;  %v6703_v41 = vcombine.low %v183_v28, %v199_v29  ;;  %v263_v45 = vld [vmem:[#allocation2 + $0x5b0] sm:$0xff]  ;;  %v185_v28 = vld [vmem:[#allocation2 + $0x340] sm:$0xff] }
  0x9d   :  { %v6737_v50 = vcombine.low %v216_v39, %v232_v40  ;;  %v6768_v51 = vcombine.high %v247_v44, %v263_v45 }
  0x9f   :  { %1804 = vmatpush1.bf16.msra.mxu0 %v6731_v47  ;;  %1847 = vmatpush1.bf16.msra.mxu1 %v6733_v48  ;;  %v6738_v47 = vcombine.high %v216_v39, %v232_v40  ;;  %v264_v48 = vld [vmem:[#allocation2 + $0x5b8] sm:$0xff]  ;;  %v218_v39 = vld [vmem:[#allocation2 + $0x448] sm:$0xff] }
  0xa0   :  { %1805 = vmatprep.subr.bf16.mxu0 %v6764_v49  ;;  %1848 = vmatprep.subr.bf16.mxu1 %v6766_v53  ;;  %v6735_v49 = vcombine.low %v215_v36, %v231_v37  ;;  %v295_v53 = vld [vmem:[#allocation2 + $0x6b0] sm:$0xff]  ;;  %v6769_v58 = vcombine.low %v248_v46, %v264_v48  ;;  %v217_v36 = vld [vmem:[#allocation2 + $0x440] sm:$0xff]  ;;  %v234_v40 = vld [vmem:[#allocation2 + $0x4c8] sm:$0xff] }
  0xa1   :  { %v6800_v59 = vcombine.high %v279_v52, %v295_v53 }
  0xa3   :  { %1806 = vmatpush1.bf16.msra.mxu0 %v6763_v55  ;;  %1849 = vmatpush1.bf16.msra.mxu1 %v6765_v56  ;;  %v6770_v55 = vcombine.high %v248_v46, %v264_v48  ;;  %v296_v56 = vld [vmem:[#allocation2 + $0x6b8] sm:$0xff]  ;;  %v6742_v48 = vcombine.high %v218_v39, %v234_v40 }
  0xa4   :  { %1807 = vmatprep.subr.bf16.mxu0 %v6796_v57  ;;  %1850 = vmatprep.subr.bf16.mxu1 %v6798_v61  ;;  %v6767_v57 = vcombine.low %v247_v44, %v263_v45  ;;  %v327_v61 = vld [vmem:[#allocation2 + $0x7b0] sm:$0xff]  ;;  %v6801_v3 = vcombine.low %v280_v54, %v296_v56  ;;  %v265_v44 = vld [vmem:[#allocation2 + $0x5c0] sm:$0xff] }
  0xa5   :  { %v6832_v4 = vcombine.high %v311_v60, %v327_v61 }
  0xa7   :  { %1808 = vmatpush1.bf16.msra.mxu0 %v6795_v63  ;;  %1851 = vmatpush1.bf16.msra.mxu1 %v6797_v1  ;;  %v6802_v63 = vcombine.high %v280_v54, %v296_v56  ;;  %v328_v1 = vld [vmem:[#allocation2 + $0x7b8] sm:$0xff]  ;;  %v298_v56 = vld [vmem:[#allocation2 + $0x6c8] sm:$0xff] }
  0xa8   :  { %1809 = vmatprep.subr.bf16.mxu0 %v6828_v2  ;;  %1852 = vmatprep.subr.bf16.mxu1 %v6830_v6  ;;  %v6799_v2 = vcombine.low %v279_v52, %v295_v53  ;;  %v105_v6 = vld [vmem:[#allocation2 + $0xc0] sm:$0xff]  ;;  %v6833_v12 = vcombine.low %v312_v62, %v328_v1  ;;  %v6741_v53 = vcombine.low %v218_v39, %v234_v40 }
  0xa9   :  { %v6612_v13 = vcombine.high %v89_v5, %v105_v6  ;;  %v297_v52 = vld [vmem:[#allocation2 + $0x6c0] sm:$0xff] }
  0xab   :  { %1810 = vmatpush1.bf16.msra.mxu0 %v6827_v8  ;;  %1853 = vmatpush1.bf16.msra.mxu1 %v6829_v9  ;;  %v6834_v8 = vcombine.high %v312_v62, %v328_v1  ;;  %v106_v9 = vld [vmem:[#allocation2 + $0xc8] sm:$0xff] }
  0xac   :  { %1881 = vmatprep.subr.bf16.mxu0 %v6608_v11  ;;  %1924 = vmatprep.subr.bf16.mxu1 %v6610_v15  ;;  %v6831_v11 = vcombine.low %v311_v60, %v327_v61  ;;  %v137_v15 = vld [vmem:[#allocation2 + $0x1c0] sm:$0xff]  ;;  %v6613_v22 = vcombine.low %v90_v7, %v106_v9  ;;  %v330_v1 = vld [vmem:[#allocation2 + $0x7c8] sm:$0xff] }
  0xad   :  { %v329_v60 = vld [vmem:[#allocation2 + $0x7c0] sm:$0xff] }
  0xae   :  { %1828 = vmatmul.mubr.bf16.vlgmr.msra.gmra.mrb[8].mxu0 %v8071_v10  ;;  %1871 = vmatmul.mubr.bf16.vlgmr.msra.gmra.mrb[8].mxu1 %v8071_v10 }
  0xaf   :  { %1882 = vmatpush1.bf16.msra.mxu0 %v6607_v17  ;;  %1925 = vmatpush1.bf16.msra.mxu1 %v6609_v18  ;;  %v6614_v17 = vcombine.high %v90_v7, %v106_v9  ;;  %v138_v18 = vld [vmem:[#allocation2 + $0x1c8] sm:$0xff]  ;;  %v108_v9 = vld [vmem:[#allocation2 + $0xd8] sm:$0xff] }
  0xb0   :  { %1883 = vmatprep.subr.bf16.mxu0 %v6640_v19  ;;  %1926 = vmatprep.subr.bf16.mxu1 %v6642_v23  ;;  %v6611_v19 = vcombine.low %v89_v5, %v105_v6  ;;  %v6644_v23 = vcombine.high %v121_v14, %v137_v15  ;;  %v6645_v29 = vcombine.low %v122_v16, %v138_v18  ;;  %v107_v5 = vld [vmem:[#allocation2 + $0xd0] sm:$0xff] }
  0xb1   :  { %1913 = vmatprep.mubr.bf16.mxu0 %v8827_v0  ;;  %1956 = vmatprep.mubr.bf16.mxu1 %v8827_v0 }
  0xb3   :  { %1884 = vmatpush1.bf16.msra.mxu0 %v6639_v25  ;;  %1927 = vmatpush1.bf16.msra.mxu1 %v6641_v26  ;;  %v170_v25 = vld [vmem:[#allocation2 + $0x2c8] sm:$0xff]  ;;  %v6646_v26 = vcombine.high %v122_v16, %v138_v18  ;;  %v140_v18 = vld [vmem:[#allocation2 + $0x1d8] sm:$0xff] }
  0xb4   :  { %1885 = vmatprep.subr.bf16.mxu0 %v6672_v27  ;;  %1928 = vmatprep.subr.bf16.mxu1 %v6674_v31  ;;  %v6643_v27 = vcombine.low %v121_v14, %v137_v15  ;;  %v6678_v31 = vcombine.high %v154_v24, %v170_v25  ;;  %v6677_v37 = vcombine.low %v154_v24, %v170_v25  ;;  %v139_v14 = vld [vmem:[#allocation2 + $0x1d0] sm:$0xff]  ;;  %v156_v25 = vld [vmem:[#allocation2 + $0x258] sm:$0xff] }
  0xb7   :  { %1886 = vmatpush1.bf16.msra.mxu0 %v6671_v33  ;;  %1929 = vmatpush1.bf16.msra.mxu1 %v6673_v34  ;;  %v186_v33 = vld [vmem:[#allocation2 + $0x348] sm:$0xff] }
  0xb8   :  { %1887 = vmatprep.subr.bf16.mxu0 %v6704_v35  ;;  %1930 = vmatprep.subr.bf16.mxu1 %v6706_v38  ;;  %v202_v34 = vld [vmem:[#allocation2 + $0x3c8] sm:$0xff]  ;;  %v6675_v35 = vcombine.low %v153_v20, %v169_v21  ;;  %v6708_v38 = vcombine.high %v185_v28, %v201_v32  ;;  %v155_v21 = vld [vmem:[#allocation2 + $0x250] sm:$0xff] }
  0xb9   :  { %v6709_v45 = vcombine.low %v186_v33, %v202_v34 }
  0xbb   :  { %1888 = vmatpush1.bf16.msra.mxu0 %v6703_v41  ;;  %1931 = vmatpush1.bf16.msra.mxu1 %v6705_v42  ;;  %v6710_v41 = vcombine.high %v186_v33, %v202_v34  ;;  %v6707_v42 = vcombine.low %v185_v28, %v201_v32  ;;  %v8092_v28 = vld [vmem:[%s8819_s0] sm:$0xff]   ;;  %v188_v34 = vld [vmem:[#allocation2 + $0x358] sm:$0xff] }
  0xbc   :  { %1889 = vmatprep.subr.bf16.mxu0 %v6736_v43  ;;  %1932 = vmatprep.subr.bf16.mxu1 %v6738_v47  ;;  %v249_v43 = vld [vmem:[#allocation2 + $0x540] sm:$0xff]  ;;  %v250_v47 = vld [vmem:[#allocation2 + $0x548] sm:$0xff] }
  0xbd   :  { %v6772_v54 = vcombine.high %v249_v43, %v265_v44 }
  0xbf   :  { %1890 = vmatpush1.bf16.msra.mxu0 %v6735_v49  ;;  %1933 = vmatpush1.bf16.msra.mxu1 %v6737_v50  ;;  %v266_v49 = vld [vmem:[#allocation2 + $0x5c8] sm:$0xff] }
  0xc0   :  { %1891 = vmatprep.subr.bf16.mxu0 %v6768_v51  ;;  %1934 = vmatprep.subr.bf16.mxu1 %v6770_v55  ;;  %v281_v51 = vld [vmem:[#allocation2 + $0x640] sm:$0xff]  ;;  %v282_v55 = vld [vmem:[#allocation2 + $0x648] sm:$0xff]  ;;  %v6773_v61 = vcombine.low %v250_v47, %v266_v49 }
  0xc1   :  { %v6804_v62 = vcombine.high %v281_v51, %v297_v52  ;;  %v6805_v6 = vcombine.low %v282_v55, %v298_v56 }
  0xc3   :  { %1892 = vmatpush1.bf16.msra.mxu0 %v6767_v57  ;;  %1935 = vmatpush1.bf16.msra.mxu1 %v6769_v58  ;;  %v6774_v57 = vcombine.high %v250_v47, %v266_v49  ;;  %v6771_v58 = vcombine.low %v249_v43, %v265_v44  ;;  %v252_v49 = vld [vmem:[#allocation2 + $0x558] sm:$0xff] }
  0xc4   :  { %1893 = vmatprep.subr.bf16.mxu0 %v6800_v59  ;;  %1936 = vmatprep.subr.bf16.mxu1 %v6802_v63  ;;  %v313_v59 = vld [vmem:[#allocation2 + $0x740] sm:$0xff]  ;;  %v314_v63 = vld [vmem:[#allocation2 + $0x748] sm:$0xff] }
  0xc5   :  { %v6836_v7 = vcombine.high %v313_v59, %v329_v60  ;;  %v6837_v15 = vcombine.low %v314_v63, %v330_v1 }
  0xc7   :  { %1894 = vmatpush1.bf16.msra.mxu0 %v6799_v2  ;;  %1937 = vmatpush1.bf16.msra.mxu1 %v6801_v3  ;;  %v6806_v2 = vcombine.high %v282_v55, %v298_v56  ;;  %v6803_v3 = vcombine.low %v281_v51, %v297_v52  ;;  %v268_v51 = vld [vmem:[#allocation2 + $0x5d8] sm:$0xff] }
  0xc8   :  { %1895 = vmatprep.subr.bf16.mxu0 %v6832_v4  ;;  %1938 = vmatprep.subr.bf16.mxu1 %v6834_v8  ;;  %v91_v4 = vld [vmem:[#allocation2 + $0x50] sm:$0xff]  ;;  %v92_v8 = vld [vmem:[#allocation2 + $0x58] sm:$0xff] }
  0xc9   :  { %v6616_v16 = vcombine.high %v91_v4, %v107_v5  ;;  %v6615_v20 = vcombine.low %v91_v4, %v107_v5 }
  0xcb   :  { %1896 = vmatpush1.bf16.msra.mxu0 %v6831_v11  ;;  %1939 = vmatpush1.bf16.msra.mxu1 %v6833_v12  ;;  %v6838_v11 = vcombine.high %v314_v63, %v330_v1  ;;  %v6835_v12 = vcombine.low %v313_v59, %v329_v60  ;;  %v6778_v59 = vcombine.high %v252_v49, %v268_v51 }
  0xcc   :  { %1967 = vmatprep.subr.bf16.mxu0 %v6612_v13  ;;  %2010 = vmatprep.subr.bf16.mxu1 %v6614_v17  ;;  %v123_v13 = vld [vmem:[#allocation2 + $0x150] sm:$0xff]  ;;  %v124_v17 = vld [vmem:[#allocation2 + $0x158] sm:$0xff]  ;;  %v6777_v63 = vcombine.low %v252_v49, %v268_v51  ;;  %v254_v51 = vld [vmem:[#allocation2 + $0x568] sm:$0xff] }
  0xcd   :  { %v6648_v24 = vcombine.high %v123_v13, %v139_v14  ;;  %v6649_v32 = vcombine.low %v124_v17, %v140_v18 }
  0xce   :  { %1914 = vmatmul.mubr.bf16.vlgmr.msra.gmra.mrb[12].mxu0 %v8071_v10  ;;  %1957 = vmatmul.mubr.bf16.vlgmr.msra.gmra.mrb[12].mxu1 %v8071_v10  ;;  %v233_v10 = vld [vmem:[#allocation2 + $0x4c0] sm:$0xff] }
  0xcf   :  { %1968 = vmatpush1.bf16.msra.mxu0 %v6611_v19  ;;  %2011 = vmatpush1.bf16.msra.mxu1 %v6613_v22  ;;  %v6740_v46 = vcombine.high %v217_v36, %v233_v10  ;;  %v6739_v50 = vcombine.low %v217_v36, %v233_v10  ;;  %v6618_v19 = vcombine.high %v92_v8, %v108_v9  ;;  %v171_v22 = vld [vmem:[#allocation2 + $0x2d0] sm:$0xff]  ;;  %v204_v36 = vld [vmem:[#allocation2 + $0x3d8] sm:$0xff] }
  0xd0   :  { %1969 = vmatprep.subr.bf16.mxu0 %v6644_v23  ;;  %2012 = vmatprep.subr.bf16.mxu1 %v6646_v26  ;;  %v6617_v23 = vcombine.low %v92_v8, %v108_v9  ;;  %v172_v26 = vld [vmem:[#allocation2 + $0x2d8] sm:$0xff]  ;;  %v6680_v33 = vcombine.high %v155_v21, %v171_v22  ;;  %v6679_v10 = vcombine.low %v155_v21, %v171_v22 }
  0xd1   :  { %1999 = vmatprep.mubr.bf16.mxu0 %v8827_v0  ;;  %2042 = vmatprep.mubr.bf16.mxu1 %v8827_v0  ;;  %v6681_v39 = vcombine.low %v156_v25, %v172_v26  ;;  %v6714_v43 = vcombine.high %v188_v34, %v204_v36  ;;  %v6713_v47 = vcombine.low %v188_v34, %v204_v36  ;;  %v190_v36 = vld [vmem:[#allocation2 + $0x368] sm:$0xff] }
  0xd3   :  { %1970 = vmatpush1.bf16.msra.mxu0 %v6643_v27  ;;  %2013 = vmatpush1.bf16.msra.mxu1 %v6645_v29  ;;  %v6650_v27 = vcombine.high %v124_v17, %v140_v18  ;;  %v6647_v29 = vcombine.low %v123_v13, %v139_v14 }
  0xd4   :  { %1971 = vmatprep.subr.bf16.mxu0 %v6676_v30  ;;  %2014 = vmatprep.subr.bf16.mxu1 %v6678_v31  ;;  %v187_v30 = vld [vmem:[#allocation2 + $0x350] sm:$0xff] }
  0xd5   :  { %v203_v31 = vld [vmem:[#allocation2 + $0x3d0] sm:$0xff] }
  0xd6   :  { %v6712_v40 = vcombine.high %v187_v30, %v203_v31  ;;  %v6711_v44 = vcombine.low %v187_v30, %v203_v31 }
  0xd7   :  { %1972 = vmatpush1.bf16.msra.mxu0 %v6675_v35  ;;  %2015 = vmatpush1.bf16.msra.mxu1 %v6677_v37  ;;  %v6682_v35 = vcombine.high %v156_v25, %v172_v26  ;;  %v219_v37 = vld [vmem:[#allocation2 + $0x450] sm:$0xff] }
  0xd8   :  { %1973 = vmatprep.subr.bf16.mxu0 %v6708_v38  ;;  %2016 = vmatprep.subr.bf16.mxu1 %v6710_v41  ;;  %v235_v38 = vld [vmem:[#allocation2 + $0x4d0] sm:$0xff]  ;;  %v220_v41 = vld [vmem:[#allocation2 + $0x458] sm:$0xff] }
  0xd9   :  { %v6743_v52 = vcombine.low %v219_v37, %v235_v38 }
  0xdb   :  { %1974 = vmatpush1.bf16.msra.mxu0 %v6707_v42  ;;  %2017 = vmatpush1.bf16.msra.mxu1 %v6709_v45  ;;  %v236_v42 = vld [vmem:[#allocation2 + $0x4d8] sm:$0xff]  ;;  %v251_v45 = vld [vmem:[#allocation2 + $0x550] sm:$0xff] }
  0xdc   :  { %1975 = vmatprep.subr.bf16.mxu0 %v6740_v46  ;;  %2018 = vmatprep.subr.bf16.mxu1 %v6742_v48  ;;  %v267_v46 = vld [vmem:[#allocation2 + $0x5d0] sm:$0xff]  ;;  %v6744_v48 = vcombine.high %v219_v37, %v235_v38  ;;  %v6745_v55 = vcombine.low %v220_v41, %v236_v42 }
  0xdd   :  { %v6776_v56 = vcombine.high %v251_v45, %v267_v46  ;;  %v6775_v60 = vcombine.low %v251_v45, %v267_v46 }
  0xdf   :  { %1976 = vmatpush1.bf16.msra.mxu0 %v6739_v50  ;;  %2019 = vmatpush1.bf16.msra.mxu1 %v6741_v53  ;;  %v6746_v50 = vcombine.high %v220_v41, %v236_v42  ;;  %v283_v53 = vld [vmem:[#allocation2 + $0x650] sm:$0xff] }
  0xe0   :  { %1977 = vmatprep.subr.bf16.mxu0 %v6772_v54  ;;  %2020 = vmatprep.subr.bf16.mxu1 %v6774_v57  ;;  %v299_v54 = vld [vmem:[#allocation2 + $0x6d0] sm:$0xff]  ;;  %v284_v57 = vld [vmem:[#allocation2 + $0x658] sm:$0xff] }
  0xe1   :  { %v6808_v1 = vcombine.high %v283_v53, %v299_v54  ;;  %v6807_v5 = vcombine.low %v283_v53, %v299_v54 }
  0xe3   :  { %1978 = vmatpush1.bf16.msra.mxu0 %v6771_v58  ;;  %2021 = vmatpush1.bf16.msra.mxu1 %v6773_v61  ;;  %v300_v58 = vld [vmem:[#allocation2 + $0x6d8] sm:$0xff]  ;;  %v315_v61 = vld [vmem:[#allocation2 + $0x750] sm:$0xff] }
  0xe4   :  { %1979 = vmatprep.subr.bf16.mxu0 %v6804_v62  ;;  %2022 = vmatprep.subr.bf16.mxu1 %v6806_v2  ;;  %v331_v62 = vld [vmem:[#allocation2 + $0x7d0] sm:$0xff]  ;;  %v316_v2 = vld [vmem:[#allocation2 + $0x758] sm:$0xff]  ;;  %v6810_v4 = vcombine.high %v284_v57, %v300_v58  ;;  %v6809_v8 = vcombine.low %v284_v57, %v300_v58 }
  0xe5   :  { %v6840_v9 = vcombine.high %v315_v61, %v331_v62  ;;  %v6839_v14 = vcombine.low %v315_v61, %v331_v62 }
  0xe7   :  { %1980 = vmatpush1.bf16.msra.mxu0 %v6803_v3  ;;  %2023 = vmatpush1.bf16.msra.mxu1 %v6805_v6  ;;  %v332_v3 = vld [vmem:[#allocation2 + $0x7d8] sm:$0xff]  ;;  %v93_v6 = vld [vmem:[#allocation2 + $0x60] sm:$0xff] }
  0xe8   :  { %1981 = vmatprep.subr.bf16.mxu0 %v6836_v7  ;;  %2024 = vmatprep.subr.bf16.mxu1 %v6838_v11  ;;  %v109_v7 = vld [vmem:[#allocation2 + $0xe0] sm:$0xff]  ;;  %v94_v11 = vld [vmem:[#allocation2 + $0x68] sm:$0xff]  ;;  %v6842_v13 = vcombine.high %v316_v2, %v332_v3  ;;  %v6841_v17 = vcombine.low %v316_v2, %v332_v3 }
  0xe9   :  { %v6620_v18 = vcombine.high %v93_v6, %v109_v7  ;;  %v6619_v22 = vcombine.low %v93_v6, %v109_v7 }
  0xeb   :  { %1982 = vmatpush1.bf16.msra.mxu0 %v6835_v12  ;;  %2025 = vmatpush1.bf16.msra.mxu1 %v6837_v15  ;;  %v110_v12 = vld [vmem:[#allocation2 + $0xe8] sm:$0xff]  ;;  %v125_v15 = vld [vmem:[#allocation2 + $0x160] sm:$0xff] }
  0xec   :  { %2053 = vmatprep.subr.bf16.mxu0 %v6616_v16  ;;  %2096 = vmatprep.subr.bf16.mxu1 %v6618_v19  ;;  %v141_v16 = vld [vmem:[#allocation2 + $0x1e0] sm:$0xff]  ;;  %v126_v19 = vld [vmem:[#allocation2 + $0x168] sm:$0xff]  ;;  %v6622_v21 = vcombine.high %v94_v11, %v110_v12  ;;  %v6621_v25 = vcombine.low %v94_v11, %v110_v12 }
  0xed   :  { %v6652_v26 = vcombine.high %v125_v15, %v141_v16  ;;  %v6651_v31 = vcombine.low %v125_v15, %v141_v16 }
  0xee   :  { %2000 = vmatmul.mubr.bf16.vlgmr.msra.gmra.mrb[16].mxu0 %v8092_v28  ;;  %2043 = vmatmul.mubr.bf16.vlgmr.msra.gmra.mrb[16].mxu1 %v8092_v28 }
  0xef   :  { %2054 = vmatpush1.bf16.msra.mxu0 %v6615_v20  ;;  %2097 = vmatpush1.bf16.msra.mxu1 %v6617_v23  ;;  %v142_v20 = vld [vmem:[#allocation2 + $0x1e8] sm:$0xff]  ;;  %v157_v23 = vld [vmem:[#allocation2 + $0x260] sm:$0xff] }
  0xf0   :  { %2055 = vmatprep.subr.bf16.mxu0 %v6648_v24  ;;  %2098 = vmatprep.subr.bf16.mxu1 %v6650_v27  ;;  %v173_v24 = vld [vmem:[#allocation2 + $0x2e0] sm:$0xff]  ;;  %v158_v27 = vld [vmem:[#allocation2 + $0x268] sm:$0xff]  ;;  %v6654_v30 = vcombine.high %v126_v19, %v142_v20  ;;  %v6653_v34 = vcombine.low %v126_v19, %v142_v20 }
  0xf1   :  { %2085 = vmatprep.mubr.bf16.mxu0 %v8827_v0  ;;  %2128 = vmatprep.mubr.bf16.mxu1 %v8827_v0  ;;  %v6683_v38 = vcombine.low %v157_v23, %v173_v24 }
  0xf3   :  { %2056 = vmatpush1.bf16.msra.mxu0 %v6647_v29  ;;  %2099 = vmatpush1.bf16.msra.mxu1 %v6649_v32  ;;  %v174_v29 = vld [vmem:[#allocation2 + $0x2e8] sm:$0xff]  ;;  %v189_v32 = vld [vmem:[#allocation2 + $0x360] sm:$0xff] }
  0xf4   :  { %2057 = vmatprep.subr.bf16.mxu0 %v6680_v33  ;;  %2100 = vmatprep.subr.bf16.mxu1 %v6682_v35  ;;  %v205_v33 = vld [vmem:[#allocation2 + $0x3e0] sm:$0xff]  ;;  %v6684_v35 = vcombine.high %v157_v23, %v173_v24  ;;  %v6686_v37 = vcombine.high %v158_v27, %v174_v29  ;;  %v6685_v41 = vcombine.low %v158_v27, %v174_v29 }
  0xf5   :  { %v6716_v42 = vcombine.high %v189_v32, %v205_v33  ;;  %v6715_v46 = vcombine.low %v189_v32, %v205_v33 }
  0xf7   :  { %2058 = vmatpush1.bf16.msra.mxu0 %v6679_v10  ;;  %2101 = vmatpush1.bf16.msra.mxu1 %v6681_v39  ;;  %v206_v10 = vld [vmem:[#allocation2 + $0x3e8] sm:$0xff]  ;;  %v221_v39 = vld [vmem:[#allocation2 + $0x460] sm:$0xff] }
  0xf8   :  { %2059 = vmatprep.subr.bf16.mxu0 %v6712_v40  ;;  %2102 = vmatprep.subr.bf16.mxu1 %v6714_v43  ;;  %v237_v40 = vld [vmem:[#allocation2 + $0x4e0] sm:$0xff]  ;;  %v222_v43 = vld [vmem:[#allocation2 + $0x468] sm:$0xff]  ;;  %v6718_v45 = vcombine.high %v190_v36, %v206_v10  ;;  %v6717_v49 = vcombine.low %v190_v36, %v206_v10 }
  0xf9   :  { %v6747_v54 = vcombine.low %v221_v39, %v237_v40 }
  0xfb   :  { %2060 = vmatpush1.bf16.msra.mxu0 %v6711_v44  ;;  %2103 = vmatpush1.bf16.msra.mxu1 %v6713_v47  ;;  %v238_v44 = vld [vmem:[#allocation2 + $0x4e8] sm:$0xff]  ;;  %v253_v47 = vld [vmem:[#allocation2 + $0x560] sm:$0xff] }
  0xfc   :  { %2061 = vmatprep.subr.bf16.mxu0 %v6744_v48  ;;  %2104 = vmatprep.subr.bf16.mxu1 %v6746_v50  ;;  %v269_v48 = vld [vmem:[#allocation2 + $0x5e0] sm:$0xff]  ;;  %v6748_v50 = vcombine.high %v221_v39, %v237_v40  ;;  %v6750_v53 = vcombine.high %v222_v43, %v238_v44  ;;  %v6749_v57 = vcombine.low %v222_v43, %v238_v44  ;;  %v239_v43 = vld [vmem:[#allocation2 + $0x4f0] sm:$0xff] }
  0xfd   :  { %v6780_v58 = vcombine.high %v253_v47, %v269_v48  ;;  %v6779_v62 = vcombine.low %v253_v47, %v269_v48  ;;  %v8106_v40 = vld [vmem:[#allocation8] sm:$0xff]  ;;  %v240_v47 = vld [vmem:[#allocation2 + $0x4f8] sm:$0xff] }
  0xff   :  { %2062 = vmatpush1.bf16.msra.mxu0 %v6743_v52  ;;  %2105 = vmatpush1.bf16.msra.mxu1 %v6745_v55  ;;  %v270_v52 = vld [vmem:[#allocation2 + $0x5e8] sm:$0xff]  ;;  %v285_v55 = vld [vmem:[#allocation2 + $0x660] sm:$0xff] }
 0x100   :  { %2063 = vmatprep.subr.bf16.mxu0 %v6776_v56  ;;  %2106 = vmatprep.subr.bf16.mxu1 %v6778_v59  ;;  %v301_v56 = vld [vmem:[#allocation2 + $0x6e0] sm:$0xff]  ;;  %v286_v59 = vld [vmem:[#allocation2 + $0x668] sm:$0xff]  ;;  %v6782_v61 = vcombine.high %v254_v51, %v270_v52  ;;  %v6781_v2 = vcombine.low %v254_v51, %v270_v52  ;;  %v271_v51 = vld [vmem:[#allocation2 + $0x5f0] sm:$0xff]  ;;  %v6851_v52 = vcombine.low %v8106_v40, %v8106_v40 }
 0x101   :  { %v6812_v3 = vcombine.high %v285_v55, %v301_v56  ;;  %v6811_v7 = vcombine.low %v285_v55, %v301_v56  ;;  %v256_v56 = vld [vmem:[#allocation2 + $0x578] sm:$0xff] }
 0x103   :  { %2064 = vmatpush1.bf16.msra.mxu0 %v6775_v60  ;;  %2107 = vmatpush1.bf16.msra.mxu1 %v6777_v63  ;;  %v302_v60 = vld [vmem:[#allocation2 + $0x6e8] sm:$0xff]  ;;  %v317_v63 = vld [vmem:[#allocation2 + $0x760] sm:$0xff] }
 0x104   :  { %2065 = vmatprep.subr.bf16.mxu0 %v6808_v1  ;;  %2108 = vmatprep.subr.bf16.mxu1 %v6810_v4  ;;  %v333_v1 = vld [vmem:[#allocation2 + $0x7e0] sm:$0xff]  ;;  %v318_v4 = vld [vmem:[#allocation2 + $0x768] sm:$0xff]  ;;  %v6814_v6 = vcombine.high %v286_v59, %v302_v60  ;;  %v6813_v11 = vcombine.low %v286_v59, %v302_v60 }
 0x105   :  { %v6844_v12 = vcombine.high %v317_v63, %v333_v1  ;;  %v6843_v16 = vcombine.low %v317_v63, %v333_v1  ;;  %v8117_v63 = vsel %vm2938_vm0, %v6851_v52, 0  ;;  %v2844_v52 = vld [vmem:[#allocation8 + $0x30] sm:$0xff] }
 0x107   :  { %2066 = vmatpush1.bf16.msra.mxu0 %v6807_v5  ;;  %2109 = vmatpush1.bf16.msra.mxu1 %v6809_v8  ;;  %v334_v5 = vld [vmem:[#allocation2 + $0x7e8] sm:$0xff]  ;;  %v95_v8 = vld [vmem:[#allocation2 + $0x70] sm:$0xff] }
 0x108   :  { %2067 = vmatprep.subr.bf16.mxu0 %v6840_v9  ;;  %2110 = vmatprep.subr.bf16.mxu1 %v6842_v13  ;;  %v111_v9 = vld [vmem:[#allocation2 + $0xf0] sm:$0xff]  ;;  %v96_v13 = vld [vmem:[#allocation2 + $0x78] sm:$0xff]  ;;  %v6846_v15 = vcombine.high %v318_v4, %v334_v5  ;;  %v6845_v19 = vcombine.low %v318_v4, %v334_v5 }
 0x109   :  { %v6624_v20 = vcombine.high %v95_v8, %v111_v9  ;;  %v6623_v24 = vcombine.low %v95_v8, %v111_v9  ;;  %v288_v4 = vld [vmem:[#allocation2 + $0x678] sm:$0xff] }
 0x10a   :  { %v304_v5 = vld [vmem:[#allocation2 + $0x6f8] sm:$0xff] }
 0x10b   :  { %2068 = vmatpush1.bf16.msra.mxu0 %v6839_v14  ;;  %2111 = vmatpush1.bf16.msra.mxu1 %v6841_v17  ;;  %v112_v14 = vld [vmem:[#allocation2 + $0xf8] sm:$0xff]  ;;  %v127_v17 = vld [vmem:[#allocation2 + $0x170] sm:$0xff] }
 0x10c   :  { %2139 = vmatprep.subr.bf16.mxu0 %v6620_v18  ;;  %2182 = vmatprep.subr.bf16.mxu1 %v6622_v21  ;;  %v143_v18 = vld [vmem:[#allocation2 + $0x1f0] sm:$0xff]  ;;  %v128_v21 = vld [vmem:[#allocation2 + $0x178] sm:$0xff]  ;;  %v6626_v23 = vcombine.high %v96_v13, %v112_v14  ;;  %v6625_v27 = vcombine.low %v96_v13, %v112_v14 }
 0x10d   :  { %v6656_v29 = vcombine.high %v127_v17, %v143_v18  ;;  %v6655_v33 = vcombine.low %v127_v17, %v143_v18  ;;  %v6818_v18 = vcombine.high %v288_v4, %v304_v5 }
 0x10e   :  { %2086 = vmatmul.mubr.bf16.vlgmr.msra.gmra.mrb[20].mxu0 %v8092_v28  ;;  %2129 = vmatmul.mubr.bf16.vlgmr.msra.gmra.mrb[20].mxu1 %v8092_v28 }
 0x10f   :  { %2140 = vmatpush1.bf16.msra.mxu0 %v6619_v22  ;;  %2183 = vmatpush1.bf16.msra.mxu1 %v6621_v25  ;;  %v144_v22 = vld [vmem:[#allocation2 + $0x1f8] sm:$0xff]  ;;  %v159_v25 = vld [vmem:[#allocation2 + $0x270] sm:$0xff] }
 0x110   :  { %2141 = vmatprep.subr.bf16.mxu0 %v6652_v26  ;;  %2184 = vmatprep.subr.bf16.mxu1 %v6654_v30  ;;  %v175_v26 = vld [vmem:[#allocation2 + $0x2f0] sm:$0xff]  ;;  %v160_v30 = vld [vmem:[#allocation2 + $0x278] sm:$0xff]  ;;  %v6658_v32 = vcombine.high %v128_v21, %v144_v22  ;;  %v6657_v36 = vcombine.low %v128_v21, %v144_v22 }
 0x111   :  { %2171 = vmatprep.mubr.bf16.mxu0 %v8827_v0  ;;  %2214 = vmatprep.mubr.bf16.mxu1 %v8827_v0  ;;  %v6688_v10 = vcombine.high %v159_v25, %v175_v26 }
 0x113   :  { %2142 = vmatpush1.bf16.msra.mxu0 %v6651_v31  ;;  %2185 = vmatpush1.bf16.msra.mxu1 %v6653_v34  ;;  %v176_v31 = vld [vmem:[#allocation2 + $0x2f8] sm:$0xff]  ;;  %v191_v34 = vld [vmem:[#allocation2 + $0x370] sm:$0xff] }
 0x114   :  { %2143 = vmatprep.subr.bf16.mxu0 %v6684_v35  ;;  %2186 = vmatprep.subr.bf16.mxu1 %v6686_v37  ;;  %v207_v35 = vld [vmem:[#allocation2 + $0x3f0] sm:$0xff]  ;;  %v192_v37 = vld [vmem:[#allocation2 + $0x378] sm:$0xff]  ;;  %v6690_v39 = vcombine.high %v160_v30, %v176_v31  ;;  %v6689_v44 = vcombine.low %v160_v30, %v176_v31  ;;  %v6817_v30 = vcombine.low %v288_v4, %v304_v5 }
 0x117   :  { %2144 = vmatpush1.bf16.msra.mxu0 %v6683_v38  ;;  %2187 = vmatpush1.bf16.msra.mxu1 %v6685_v41  ;;  %v208_v38 = vld [vmem:[#allocation2 + $0x3f8] sm:$0xff]  ;;  %v6687_v41 = vcombine.low %v159_v25, %v175_v26 }
 0x118   :  { %2145 = vmatprep.subr.bf16.mxu0 %v6716_v42  ;;  %2188 = vmatprep.subr.bf16.mxu1 %v6718_v45  ;;  %v223_v42 = vld [vmem:[#allocation2 + $0x470] sm:$0xff]  ;;  %v6720_v45 = vcombine.high %v191_v34, %v207_v35  ;;  %v6722_v48 = vcombine.high %v192_v37, %v208_v38 }
 0x119   :  { %v6752_v55 = vcombine.high %v223_v42, %v239_v43  ;;  %v6751_v60 = vcombine.low %v223_v42, %v239_v43  ;;  %v8163_v42 = vld [vmem:[%s8825_s6] sm:$0xff] }
 0x11a   :  { %v7839_v43 = vld [vmem:[%s8819_s0] sm:$0xff]  }
 0x11b   :  { %2146 = vmatpush1.bf16.msra.mxu0 %v6715_v46  ;;  %2189 = vmatpush1.bf16.msra.mxu1 %v6717_v49  ;;  %v224_v46 = vld [vmem:[#allocation2 + $0x478] sm:$0xff]  ;;  %v6719_v49 = vcombine.low %v191_v34, %v207_v35 }
 0x11c   :  { %2147 = vmatprep.subr.bf16.mxu0 %v6748_v50  ;;  %2190 = vmatprep.subr.bf16.mxu1 %v6750_v53  ;;  %v255_v50 = vld [vmem:[#allocation2 + $0x570] sm:$0xff]  ;;  %v6754_v59 = vcombine.high %v224_v46, %v240_v47 }
 0x11d   :  { %v6783_v9 = vcombine.low %v255_v50, %v271_v51 }
 0x11f   :  { %2148 = vmatpush1.bf16.msra.mxu0 %v6747_v54  ;;  %2191 = vmatpush1.bf16.msra.mxu1 %v6749_v57  ;;  %v6721_v54 = vcombine.low %v192_v37, %v208_v38  ;;  %v272_v57 = vld [vmem:[#allocation2 + $0x5f8] sm:$0xff] }
 0x120   :  { %2149 = vmatprep.subr.bf16.mxu0 %v6780_v58  ;;  %2192 = vmatprep.subr.bf16.mxu1 %v6782_v61  ;;  %v8114_v58 = vld [vmem:[#allocation8 + $0x10] sm:$0xff]  ;;  %v6785_v13 = vcombine.low %v256_v56, %v272_v57 }
 0x121   :  { %v287_v61 = vld [vmem:[#allocation2 + $0x670] sm:$0xff]  ;;  %v6855_v8 = vcombine.low %v8114_v58, %v8114_v58 }
 0x123   :  { %2150 = vmatpush1.bf16.msra.mxu0 %v6779_v62  ;;  %2193 = vmatpush1.bf16.msra.mxu1 %v6781_v2  ;;  %v303_v62 = vld [vmem:[#allocation2 + $0x6f0] sm:$0xff]  ;;  %v6753_v2 = vcombine.low %v224_v46, %v240_v47  ;;  %v2843_v46 = vld [vmem:[#allocation8 + $0x28] sm:$0xff] }
 0x124   :  { %2151 = vmatprep.subr.bf16.mxu0 %v6812_v3  ;;  %2194 = vmatprep.subr.bf16.mxu1 %v6814_v6  ;;  %v6784_v3 = vcombine.high %v255_v50, %v271_v51  ;;  %v8122_v6 = vld [vmem:[#allocation8 + $0x18] sm:$0xff]  ;;  %v6816_v14 = vcombine.high %v287_v61, %v303_v62  ;;  %v6815_v25 = vcombine.low %v287_v61, %v303_v62 }
 0x125   :  { %v6861_v51 = vcombine.low %v2843_v46, %v2843_v46 }
 0x127   :  { %2152 = vmatpush1.bf16.msra.mxu0 %v6811_v7  ;;  %2195 = vmatpush1.bf16.msra.mxu1 %v6813_v11  ;;  %v6786_v7 = vcombine.high %v256_v56, %v272_v57  ;;  %v319_v11 = vld [vmem:[#allocation2 + $0x770] sm:$0xff]  ;;  %v6864_v56 = vcombine.high %v2844_v52, %v2844_v52 }
 0x128   :  { %2153 = vmatprep.subr.bf16.mxu0 %v6844_v12  ;;  %2196 = vmatprep.subr.bf16.mxu1 %v6846_v15  ;;  %v335_v12 = vld [vmem:[#allocation2 + $0x7f0] sm:$0xff]  ;;  %v320_v15 = vld [vmem:[#allocation2 + $0x778] sm:$0xff] }
 0x129   :  { %v6848_v31 = vcombine.high %v319_v11, %v335_v12  ;;  %v6847_v37 = vcombine.low %v319_v11, %v335_v12 }
 0x12b   :  { %2154 = vmatpush1.bf16.msra.mxu0 %v6843_v16  ;;  %2197 = vmatpush1.bf16.msra.mxu1 %v6845_v19  ;;  %v336_v16 = vld [vmem:[#allocation2 + $0x7f8] sm:$0xff]  ;;  %v2952_v19 = vsel %vm2938_vm0, %v6855_v8, 0  ;;  %v7967_v8 = vmov 1966171168  }
 0x12c   :  { %2225 = vmatprep.subr.bf16.mxu0 %v6624_v20  ;;  %2268 = vmatprep.subr.bf16.mxu1 %v6626_v23  ;;  %v6857_v20 = vcombine.low %v8122_v6, %v8122_v6  ;;  %v6850_v35 = vcombine.high %v320_v15, %v336_v16  ;;  %v6849_v38 = vcombine.low %v320_v15, %v336_v16  ;;  %v2353_v4 = vunpack.c.l.s4 %v7967_v8 }
 0x12e   :  { %2172 = vmatmul.mubr.bf16.vlgmr.msra.gmra.mrb[24].mxu0 %v8092_v28  ;;  %2215 = vmatmul.mubr.bf16.vlgmr.msra.gmra.mrb[24].mxu1 %v8092_v28  ;;  %v8108_v28 = vld [vmem:[#allocation8 + $0x8] sm:$0xff]  ;;  %v2354_v26 = vunpack.c.0.s8 %v2353_v4 }
 0x12f   :  { %2226 = vmatpush1.bf16.msra.mxu0 %v6623_v24  ;;  %2269 = vmatpush1.bf16.msra.mxu1 %v6625_v27  ;;  %v6853_v53 = vcombine.low %v8108_v28, %v8108_v28 }
 0x130   :  { %2227 = vmatprep.subr.bf16.mxu0 %v6656_v29  ;;  %2270 = vmatprep.subr.bf16.mxu1 %v6658_v32 }
 0x131   :  { %2257 = vmatprep.mubr.bf16.mxu0 %v8827_v0  ;;  %2300 = vmatprep.mubr.bf16.mxu1 %v8827_v0  ;;  %v8120_v1 = vsel %vm2938_vm0, %v6853_v53, 0  ;;  %v2845_v53 = vld [vmem:[#allocation8 + $0x38] sm:$0xff] }
 0x132   :  { %v6866_v57 = vcombine.high %v2845_v53, %v2845_v53 }
 0x133   :  { %2228 = vmatpush1.bf16.msra.mxu0 %v6655_v33  ;;  %2271 = vmatpush1.bf16.msra.mxu1 %v6657_v36  ;;  %v2958_v36 = vsel %vm2938_vm0, %v6857_v20, 0  ;;  %v2849_v20 = vld [vmem:[#allocation8 + $0x58] sm:$0xff] }
 0x134   :  { %2229 = vmatprep.subr.bf16.mxu0 %v6688_v10  ;;  %2272 = vmatprep.subr.bf16.mxu1 %v6690_v39  ;;  %v6852_v39 = vcombine.high %v8106_v40, %v8106_v40  ;;  %v8168_v40 = vld [vmem:[%s8825_s6 + $0x8] sm:$0xff] }
 0x135   :  { %v8184_v47 = vpack.c.bf16 %v8168_v40, %v8163_v42 }
 0x137   :  { %2230 = vmatpush1.bf16.msra.mxu0 %v6687_v41  ;;  %2273 = vmatpush1.bf16.msra.mxu1 %v6689_v44  ;;  %v6854_v41 = vcombine.high %v8108_v28, %v8108_v28  ;;  %v6856_v28 = vcombine.high %v8114_v58, %v8114_v58  ;;  %v6858_v44 = vcombine.high %v8122_v6, %v8122_v6 }
 0x138   :  { %2231 = vmatprep.subr.bf16.mxu0 %v6720_v45  ;;  %2274 = vmatprep.subr.bf16.mxu1 %v6722_v48  ;;  %v2842_v45 = vld [vmem:[#allocation8 + $0x20] sm:$0xff]  ;;  %v6863_v58 = vcombine.low %v2844_v52, %v2844_v52 }
 0x139   :  { %v6860_v48 = vcombine.high %v2842_v45, %v2842_v45  ;;  %v6859_v50 = vcombine.low %v2842_v45, %v2842_v45 }
 0x13b   :  { %2232 = vmatpush1.bf16.msra.mxu0 %v6719_v49  ;;  %2275 = vmatpush1.bf16.msra.mxu1 %v6721_v54  ;;  %v6862_v49 = vcombine.high %v2843_v46, %v2843_v46  ;;  %v2964_v54 = vsel %vm2938_vm0, %v6859_v50, 0 }
 0x13c   :  { %2233 = vmatprep.subr.bf16.mxu0 %v6752_v55  ;;  %2276 = vmatprep.subr.bf16.mxu1 %v6754_v59  ;;  %v2970_v55 = vsel %vm2938_vm0, %v6861_v51, 0 }
 0x13f   :  { %2234 = vmatpush1.bf16.msra.mxu0 %v6751_v60  ;;  %2277 = vmatpush1.bf16.msra.mxu1 %v6753_v2  ;;  %v6865_v60 = vcombine.low %v2845_v53, %v2845_v53 }
 0x140   :  { %2235 = vmatprep.subr.bf16.mxu0 %v6784_v3  ;;  %2278 = vmatprep.subr.bf16.mxu1 %v6786_v7  ;;  %v2847_v3 = vld [vmem:[#allocation8 + $0x48] sm:$0xff]  ;;  %v2976_v7 = vsel %vm2938_vm0, %v6863_v58, 0 }
 0x141   :  { %v8126_v17 = vpop.f32.mrb[0].mxu0  ;;  %v8131_v21 = vpop.f32.mrb[0].mxu1  ;;  %v2982_v12 = vsel %vm2938_vm0, %v6865_v60, 0  ;;  %v6870_v15 = vcombine.high %v2847_v3, %v2847_v3 }
 0x142   :  { %v8133_v22 = vpop.f32.mrb[1].mxu0  ;;  %v8135_v23 = vpop.f32.mrb[1].mxu1 }
 0x143   :  { %v8137_v24 = vpop.f32.mrb[2].mxu0  ;;  %2236 = vmatpush1.bf16.msra.mxu0 %v6783_v9  ;;  %v8141_v27 = vpop.f32.mrb[2].mxu1  ;;  %2279 = vmatpush1.bf16.msra.mxu1 %v6785_v13 }
 0x144   :  { %v8143_v29 = vpop.f32.mrb[3].mxu0  ;;  %2237 = vmatprep.subr.bf16.mxu0 %v6816_v14  ;;  %v8149_v34 = vpop.f32.mrb[3].mxu1  ;;  %2280 = vmatprep.subr.bf16.mxu1 %v6818_v18  ;;  %v6869_v18 = vcombine.low %v2847_v3, %v2847_v3 }
 0x147   :  { %2238 = vmatpush1.bf16.msra.mxu0 %v6815_v25  ;;  %2281 = vmatpush1.bf16.msra.mxu1 %v6817_v30  ;;  %v2994_v30 = vsel %vm2938_vm0, %v6869_v18, 0 }
 0x148   :  { %2239 = vmatprep.subr.bf16.mxu0 %v6848_v31  ;;  %2282 = vmatprep.subr.bf16.mxu1 %v6850_v35  ;;  %v6874_v35 = vcombine.high %v2849_v20, %v2849_v20 }
 0x14b   :  { %2240 = vmatpush1.bf16.msra.mxu0 %v6847_v37  ;;  %2283 = vmatpush1.bf16.msra.mxu1 %v6849_v38  ;;  %v6873_v37 = vcombine.low %v2849_v20, %v2849_v20  ;;  %v2850_v38 = vld [vmem:[#allocation8 + $0x60] sm:$0xff]  ;;  %v2355_v20 = vlaneseq }
 0x14c   :  { %6883 = vmatprep.subr.msk.bf16.mxu0 %vm2938_vm0, %v6852_v39  ;;  %6885 = vmatprep.subr.msk.bf16.mxu1 %vm2938_vm0, %v6854_v41  ;;  %v2851_v39 = vld [vmem:[#allocation8 + $0x68] sm:$0xff]  ;;  %v6875_v45 = vcombine.low %v2850_v38, %v2850_v38 }
 0x14d   :  { %v6877_v46 = vcombine.low %v2851_v39, %v2851_v39 }
 0x14e   :  { %2258 = vmatmul.mubr.bf16.vlgmr.msra.gmra.mrb[28].mxu0 %v7839_v43  ;;  %2301 = vmatmul.mubr.bf16.vlgmr.msra.gmra.mrb[28].mxu1 %v7839_v43  ;;  %v6876_v43 = vcombine.high %v2850_v38, %v2850_v38  ;;  %v3012_v50 = vsel %vm2938_vm0, %v6875_v45, 0  ;;  %v7589_v38 = vld [vmem:[#allocation7 + $0x50] sm:$0xff]  }
 0x14f   :  { %3036 = vmatpush1.bf16.msra.mxu0 %v8117_v63  ;;  %3079 = vmatpush1.bf16.msra.mxu1 %v8120_v1  ;;  %v2846_v63 = vld [vmem:[#allocation8 + $0x40] sm:$0xff]  ;;  %v3018_v51 = vsel %vm2938_vm0, %v6877_v46, 0  ;;  %v7592_v45 = vld [vmem:[#allocation7 + $0x90] sm:$0xff]   ;;  %v7594_v46 = vld [vmem:[#allocation7 + $0xd8] sm:$0xff]  }
 0x150   :  { %3067 = vmatprep.mubr.bf16.mxu0 %v8827_v0  ;;  %3110 = vmatprep.mubr.bf16.mxu1 %v8827_v0  ;;  %v6868_v13 = vcombine.high %v2846_v63, %v2846_v63  ;;  %v6867_v16 = vcombine.low %v2846_v63, %v2846_v63 }
 0x151   :  { %6887 = vmatprep.subr.msk.bf16.mxu0 %vm2938_vm0, %v6856_v28  ;;  %6889 = vmatprep.subr.msk.bf16.mxu1 %vm2938_vm0, %v6858_v44  ;;  %v3006_v28 = vsel %vm2938_vm0, %v6873_v37, 0  ;;  %v6878_v44 = vcombine.high %v2851_v39, %v2851_v39  ;;  %v7587_v37 = vld [vmem:[#allocation7 + $0x8] sm:$0xff]   ;;  %v7584_v39 = vld [vmem:[#allocation7 + $0x80] sm:$0xff]  }
 0x152   :  { %v2988_v25 = vsel %vm2938_vm0, %v6867_v16, 0 }
 0x156   :  { %6884 = vmatmul.mubr.msk.bf16.vlgmr.msra.gmra.mrb[32].mxu0 %vm2934_vm1, %v8184_v47  ;;  %6886 = vmatmul.mubr.msk.bf16.vlgmr.msra.gmra.mrb[32].mxu1 %vm2934_vm1, %v8184_v47 }
 0x157   :  { %3122 = vmatpush1.bf16.msra.mxu0 %v2952_v19  ;;  %3165 = vmatpush1.bf16.msra.mxu1 %v2958_v36  ;;  %v2848_v19 = vld [vmem:[#allocation8 + $0x50] sm:$0xff] }
 0x158   :  { %3153 = vmatprep.mubr.bf16.mxu0 %v8827_v0  ;;  %3196 = vmatprep.mubr.bf16.mxu1 %v8827_v0  ;;  %v6872_v31 = vcombine.high %v2848_v19, %v2848_v19  ;;  %v6871_v36 = vcombine.low %v2848_v19, %v2848_v19 }
 0x159   :  { %6891 = vmatprep.subr.msk.bf16.mxu0 %vm2938_vm0, %v6860_v48  ;;  %6893 = vmatprep.subr.msk.bf16.mxu1 %vm2938_vm0, %v6862_v49  ;;  %v2852_v48 = vld [vmem:[#allocation8 + $0x70] sm:$0xff]  ;;  %v2853_v49 = vld [vmem:[#allocation8 + $0x78] sm:$0xff] }
 0x15a   :  { %v3000_v41 = vsel %vm2938_vm0, %v6871_v36, 0  ;;  %v6880_v52 = vcombine.high %v2852_v48, %v2852_v48  ;;  %v6882_v53 = vcombine.high %v2853_v49, %v2853_v49  ;;  %v7585_v36 = vld [vmem:[#allocation7 + $0x48] sm:$0xff]  }
 0x15e   :  { %6888 = vmatmul.mubr.msk.bf16.vlgmr.msra.gmra.mrb[36].mxu0 %vm2934_vm1, %v8184_v47  ;;  %6890 = vmatmul.mubr.msk.bf16.vlgmr.msra.gmra.mrb[36].mxu1 %vm2934_vm1, %v8184_v47 }
 0x15f   :  { %3208 = vmatpush1.bf16.msra.mxu0 %v2964_v54  ;;  %3251 = vmatpush1.bf16.msra.mxu1 %v2970_v55  ;;  %v6879_v54 = vcombine.low %v2852_v48, %v2852_v48  ;;  %v7596_v48 = vld [vmem:[#allocation7 + $0x98] sm:$0xff]  }
 0x160   :  { %3239 = vmatprep.mubr.bf16.mxu0 %v8827_v0  ;;  %3282 = vmatprep.mubr.bf16.mxu1 %v8827_v0 }
 0x161   :  { %v8202_v59 = vpop.f32.mrb[4].mxu0  ;;  %6895 = vmatprep.subr.msk.bf16.mxu0 %vm2938_vm0, %v6864_v56  ;;  %v8206_v61 = vpop.f32.mrb[4].mxu1  ;;  %6897 = vmatprep.subr.msk.bf16.mxu1 %vm2938_vm0, %v6866_v57  ;;  %v6881_v56 = vcombine.low %v2853_v49, %v2853_v49  ;;  %v7597_v49 = vld [vmem:[#allocation7 + $0x60] sm:$0xff]  }
 0x162   :  { %v8208_v62 = vpop.f32.mrb[5].mxu0  ;;  %v8211_v1 = vpop.f32.mrb[5].mxu1 }
 0x163   :  { %v8213_v2 = vpop.f32.mrb[6].mxu0  ;;  %v8217_v5 = vpop.f32.mrb[6].mxu1  ;;  %v3030_v19 = vsel %vm2938_vm0, %v6881_v56, 0 }
 0x164   :  { %v8219_v6 = vpop.f32.mrb[7].mxu0  ;;  %v8226_v11 = vpop.f32.mrb[7].mxu1 }
 0x166   :  { %6892 = vmatmul.mubr.msk.bf16.vlgmr.msra.gmra.mrb[40].mxu0 %vm2934_vm1, %v8184_v47  ;;  %6894 = vmatmul.mubr.msk.bf16.vlgmr.msra.gmra.mrb[40].mxu1 %vm2934_vm1, %v8184_v47 }
 0x167   :  { %3294 = vmatpush1.bf16.msra.mxu0 %v2976_v7  ;;  %3337 = vmatpush1.bf16.msra.mxu1 %v2982_v12 }
 0x168   :  { %3325 = vmatprep.mubr.bf16.mxu0 %v8827_v0  ;;  %3368 = vmatprep.mubr.bf16.mxu1 %v8827_v0 }
 0x169   :  { %6899 = vmatprep.subr.msk.bf16.mxu0 %vm2938_vm0, %v6868_v13  ;;  %6901 = vmatprep.subr.msk.bf16.mxu1 %vm2938_vm0, %v6870_v15  ;;  %v3024_v13 = vsel %vm2938_vm0, %v6879_v54, 0 }
 0x16e   :  { %6896 = vmatmul.mubr.msk.bf16.vlgmr.msra.gmra.mrb[44].mxu0 %vm2934_vm1, %v8184_v47  ;;  %6898 = vmatmul.mubr.msk.bf16.vlgmr.msra.gmra.mrb[44].mxu1 %vm2934_vm1, %v8184_v47 }
 0x16f   :  { %3380 = vmatpush1.bf16.msra.mxu0 %v2988_v25  ;;  %3423 = vmatpush1.bf16.msra.mxu1 %v2994_v30  ;;  %v4299_v25 = vld [vmem:[%s8823_s4] sm:$0xff]  ;;  %s7968_s4 = smov [#allocation10]  }
 0x170   :  { %3411 = vmatprep.mubr.bf16.mxu0 %v8827_v0  ;;  %3454 = vmatprep.mubr.bf16.mxu1 %v8827_v0  ;;  %v7581_v30 = vld [vmem:[#allocation7 + $0x40] sm:$0xff]   ;;  %s6580_s1 = sshll.u32 %s7968_s4, 4  ;;  %s6581_s1 = int_to_ptr.vmem [resolvable:$true] %s6580_s1 }
 0x171   :  { %6903 = vmatprep.subr.msk.bf16.mxu0 %vm2938_vm0, %v6872_v31  ;;  %6905 = vmatprep.subr.msk.bf16.mxu1 %vm2938_vm0, %v6874_v35  ;;  %v7582_v31 = vld [vmem:[#allocation7 + $0xc0] sm:$0xff]   ;;  %s7928_s27 = scalar_lea.vmem %s6581_s1, 256  ;;  %p7933_p5 = scmp.lt.s32.totalorder %s6581_s1, %s6581_s1 }
 0x172   :  { %v7583_v35 = vld [vmem:[#allocation7] sm:$0xff]   ;;  %p7929_p4 = scmp.ne.s32.totalorder %s6581_s1, %s7928_s27  ;;  %p7934_p6 = scmp.lt.s32.totalorder %s7928_s27, %s7928_s27 }
 0x174   :  { %p7935_p7 = por %p7934_p6, %p7933_p5 }
 0x176   :  { %6900 = vmatmul.mubr.msk.bf16.vlgmr.msra.gmra.mrb[48].mxu0 %vm2934_vm1, %v8184_v47  ;;  %6902 = vmatmul.mubr.msk.bf16.vlgmr.msra.gmra.mrb[48].mxu1 %vm2934_vm1, %v8184_v47  ;;  %p7936_p8 = pnand %p7935_p7, %p7929_p4 }
 0x177   :  { %3466 = vmatpush1.bf16.msra.mxu0 %v3000_v41  ;;  %3509 = vmatpush1.bf16.msra.mxu1 %v3006_v28  ;;  %v7586_v41 = vld [vmem:[#allocation7 + $0xc8] sm:$0xff]   ;;  %v7591_v28 = vld [vmem:[#allocation7 + $0x10] sm:$0xff]  }
 0x178   :  { %3497 = vmatprep.mubr.bf16.mxu0 %v8827_v0  ;;  %3540 = vmatprep.mubr.bf16.mxu1 %v8827_v0 }
 0x179   :  { %6907 = vmatprep.subr.msk.bf16.mxu0 %vm2938_vm0, %v6876_v43  ;;  %6909 = vmatprep.subr.msk.bf16.mxu1 %vm2938_vm0, %v6878_v44  ;;  %v7593_v43 = vld [vmem:[#allocation7 + $0x58] sm:$0xff]   ;;  %v7590_v44 = vld [vmem:[#allocation7 + $0xd0] sm:$0xff]  }
 0x17e   :  { %6904 = vmatmul.mubr.msk.bf16.vlgmr.msra.gmra.mrb[52].mxu0 %vm2934_vm1, %v8184_v47  ;;  %6906 = vmatmul.mubr.msk.bf16.vlgmr.msra.gmra.mrb[52].mxu1 %vm2934_vm1, %v8184_v47 }
 0x17f   :  { %3552 = vmatpush1.bf16.msra.mxu0 %v3012_v50  ;;  %3595 = vmatpush1.bf16.msra.mxu1 %v3018_v51  ;;  %v7598_v50 = vld [vmem:[#allocation7 + $0xe0] sm:$0xff]  }
 0x180   :  { %3583 = vmatprep.mubr.bf16.mxu0 %v8827_v0  ;;  %3626 = vmatprep.mubr.bf16.mxu1 %v8827_v0  ;;  %v7599_v51 = vld [vmem:[#allocation7 + $0x20] sm:$0xff]  }
 0x181   :  { %v8266_v55 = vpop.f32.mrb[8].mxu0  ;;  %6911 = vmatprep.subr.msk.bf16.mxu0 %vm2938_vm0, %v6880_v52  ;;  %v8270_v57 = vpop.f32.mrb[8].mxu1  ;;  %6913 = vmatprep.subr.msk.bf16.mxu1 %vm2938_vm0, %v6882_v53 }
 0x182   :  { %v8272_v58 = vpop.f32.mrb[9].mxu0  ;;  %v8275_v60 = vpop.f32.mrb[9].mxu1 }
 0x183   :  { %v8277_v63 = vpop.f32.mrb[10].mxu0  ;;  %v8281_v7 = vpop.f32.mrb[10].mxu1 }
 0x184   :  { %v8283_v12 = vpop.f32.mrb[11].mxu0  ;;  %v8290_v18 = vpop.f32.mrb[11].mxu1 }
 0x186   :  { %6908 = vmatmul.mubr.msk.bf16.vlgmr.msra.gmra.mrb[56].mxu0 %vm2934_vm1, %v8184_v47  ;;  %6910 = vmatmul.mubr.msk.bf16.vlgmr.msra.gmra.mrb[56].mxu1 %vm2934_vm1, %v8184_v47 }
 0x187   :  { %3638 = vmatpush1.bf16.msra.mxu0 %v3024_v13  ;;  %3681 = vmatpush1.bf16.msra.mxu1 %v3030_v19  ;;  %v7600_v13 = vld [vmem:[#allocation7 + $0xa0] sm:$0xff]  }
 0x188   :  { %3669 = vmatprep.mubr.bf16.mxu0 %v8827_v0  ;;  %3712 = vmatprep.mubr.bf16.mxu1 %v8827_v0 }
 0x189   :  { %7528 = vmatprep.subr.mxu0 %v4299_v25  ;;  %7176 = vmatprep.subr.bf16.mxu1 %v7581_v30 }
 0x18e   :  { %6912 = vmatmul.mubr.msk.bf16.vlgmr.msra.gmra.mrb[60].mxu0 %vm2934_vm1, %v8184_v47  ;;  %6914 = vmatmul.mubr.msk.bf16.vlgmr.msra.gmra.mrb[60].mxu1 %vm2934_vm1, %v8184_v47  ;;  %v7588_v47 = vld [vmem:[#allocation7 + $0x88] sm:$0xff]  }
 0x18f   :  { %7529 = vmatpush3.msra.mxu0 %v4299_v25  ;;  %7530 = vmatprep.mubr.msk.f32.mxu0 %vm2934_vm1, %v8163_v42  ;;  %v7595_v42 = vld [vmem:[#allocation7 + $0x18] sm:$0xff]  }
 0x190   :  { %7198 = vmatprep.subr.bf16.mxu0 %v7582_v31  ;;  %7177 = vmatpush3.bf16.msra.mxu1 %v7583_v35  ;;  %v7602_v31 = vld [vmem:[#allocation7 + $0x68] sm:$0xff]  }
 0x191   :  { %7178 = vmatprep.subr.bf16.mxu1 %v7585_v36  ;;  %v7603_v35 = vld [vmem:[#allocation7 + $0xe8] sm:$0xff]  }
 0x194   :  { %7179 = vmatpush3.bf16.msra.mxu1 %v7587_v37 }
 0x195   :  { %7180 = vmatprep.subr.bf16.mxu1 %v7589_v38 }
 0x196   :  { %7531 = vmatmul.mubr.msk.f32.vlgmr.msra.gmra.mrb[64].mxu0 %vm2934_vm1, %v8168_v40 }
 0x197   :  { %7199 = vmatpush3.bf16.msra.mxu0 %v7584_v39  ;;  %v7604_v39 = vld [vmem:[#allocation7 + $0x28] sm:$0xff]  }
 0x198   :  { %7200 = vmatprep.subr.bf16.mxu0 %v7586_v41  ;;  %7181 = vmatpush3.bf16.msra.mxu1 %v7591_v28  ;;  %v7605_v28 = vld [vmem:[#allocation7 + $0xa8] sm:$0xff]  }
 0x199   :  { %7182 = vmatprep.subr.bf16.mxu1 %v7593_v43  ;;  %v7606_v43 = vld [vmem:[#allocation7 + $0x70] sm:$0xff]  }
 0x19b   :  { %7201 = vmatpush3.bf16.msra.mxu0 %v7588_v47  ;;  %v7607_v47 = vld [vmem:[#allocation7 + $0xf0] sm:$0xff]  }
 0x19c   :  { %7202 = vmatprep.subr.bf16.mxu0 %v7590_v44  ;;  %7183 = vmatpush3.bf16.msra.mxu1 %v7595_v42  ;;  %v7608_v44 = vld [vmem:[#allocation7 + $0x30] sm:$0xff]  }
 0x19d   :  { %7184 = vmatprep.subr.bf16.mxu1 %v7597_v49  ;;  %v7609_v42 = vld [vmem:[#allocation7 + $0xb0] sm:$0xff]   ;;  %v7613_v49 = vld [vmem:[#allocation7 + $0xb8] sm:$0xff]  }
 0x19f   :  { %7203 = vmatpush3.bf16.msra.mxu0 %v7592_v45  ;;  %v7610_v45 = vld [vmem:[#allocation7 + $0x78] sm:$0xff]  }
 0x1a0   :  { %7204 = vmatprep.subr.bf16.mxu0 %v7594_v46  ;;  %7185 = vmatpush3.bf16.msra.mxu1 %v7599_v51  ;;  %v7611_v46 = vld [vmem:[#allocation7 + $0xf8] sm:$0xff]   ;;  %v7615_v51 = vld [vmem:[#allocation7 + $0x1c0] sm:$0xff]  }
 0x1a1   :  { %v8312_v40 = vpop.f32.mrb[12].mxu0  ;;  %v8314_v52 = vpop.f32.mrb[12].mxu1  ;;  %7186 = vmatprep.subr.bf16.mxu1 %v7602_v31 }
 0x1a2   :  { %v8316_v53 = vpop.f32.mrb[13].mxu0  ;;  %v8318_v54 = vpop.f32.mrb[13].mxu1 }
 0x1a3   :  { %v8320_v56 = vpop.f32.mrb[14].mxu0  ;;  %7205 = vmatpush3.bf16.msra.mxu0 %v7596_v48  ;;  %v8324_v25 = vpop.f32.mrb[14].mxu1  ;;  %v7612_v48 = vld [vmem:[#allocation7 + $0x38] sm:$0xff]  }
 0x1a4   :  { %v8326_v30 = vpop.f32.mrb[15].mxu0  ;;  %7206 = vmatprep.subr.bf16.mxu0 %v7598_v50  ;;  %v8332_v38 = vpop.f32.mrb[15].mxu1  ;;  %7187 = vmatpush3.bf16.msra.mxu1 %v7604_v39  ;;  %v7614_v50 = vld [vmem:[#allocation7 + $0x140] sm:$0xff]  }
 0x1a5   :  { %7188 = vmatprep.subr.bf16.mxu1 %v7606_v43 }
 0x1a7   :  { %7207 = vmatpush3.bf16.msra.mxu0 %v7600_v13 }
 0x1a8   :  { %7208 = vmatprep.subr.bf16.mxu0 %v7603_v35  ;;  %7189 = vmatpush3.bf16.msra.mxu1 %v7608_v44 }
 0x1a9   :  { %7190 = vmatprep.subr.bf16.mxu1 %v7610_v45 }
 0x1ab   :  { %7209 = vmatpush3.bf16.msra.mxu0 %v7605_v28 }
 0x1ac   :  { %7210 = vmatprep.subr.bf16.mxu0 %v7607_v47  ;;  %7191 = vmatpush3.bf16.msra.mxu1 %v7612_v48  ;;  %v2356_v48 = vshrl.u32 %v2355_v20, 7 }
 0x1ad   :  { %7220 = vmatprep.subr.bf16.mxu1 %v7614_v50 }
 0x1af   :  { %7211 = vmatpush3.bf16.msra.mxu0 %v7609_v42 }
 0x1b0   :  { %7212 = vmatprep.subr.bf16.mxu0 %v7611_v46 }
 0x1b3   :  { %7213 = vmatpush3.bf16.msra.mxu0 %v7613_v49 }
 0x1b4   :  { %7242 = vmatprep.subr.bf16.mxu0 %v7615_v51 }
 0x1c1   :  { %v8336_v13 = vpop.f32.mrb[16].mxu0  ;;  %v8338_v31 = vpop.f32.mrb[16].mxu1 }
 0x1c2   :  { %8859 = vst [vmem:[#allocation15_spill] sm:$0xff] %v8338_v31  ;;  %v8340_v35 = vpop.f32.mrb[17].mxu0  ;;  %v8342_v39 = vpop.f32.mrb[17].mxu1 }
 0x1c3   :  { %8860 = vst [vmem:[#allocation16_spill] sm:$0xff] %v8340_v35  ;;  %8861 = vst [vmem:[#allocation17_spill] sm:$0xff] %v8342_v39  ;;  %v8344_v28 = vpop.f32.mrb[18].mxu0  ;;  %v8348_v47 = vpop.f32.mrb[18].mxu1 }
 0x1c4   :  { %8862 = vst [vmem:[#allocation18_spill] sm:$0xff] %v8348_v47  ;;  %v8350_v44 = vpop.f32.mrb[19].mxu0  ;;  %v8356_v46 = vpop.f32.mrb[19].mxu1 }
 0x1c5   :  { %8863 = vst [vmem:[#allocation19_spill] sm:$0xff] %v8350_v44  ;;  %8864 = vst [vmem:[#allocation20_spill] sm:$0xff] %v8356_v46 }
 0x1e1   :  { %v8360_v49 = vpop.f32.mrb[20].mxu0  ;;  %v8362_v50 = vpop.f32.mrb[20].mxu1 }
 0x1e2   :  { %8865 = vst [vmem:[#allocation21_spill] sm:$0xff] %v8360_v49  ;;  %8866 = vst [vmem:[#allocation22_spill] sm:$0xff] %v8362_v50  ;;  %v8364_v51 = vpop.f32.mrb[21].mxu0  ;;  %v8366_v43 = vpop.f32.mrb[21].mxu1 }
 0x1e3   :  { %8867 = vst [vmem:[#allocation23_spill] sm:$0xff] %v8364_v51  ;;  %8868 = vst [vmem:[#allocation24_spill] sm:$0xff] %v8366_v43  ;;  %v8368_v41 = vpop.f32.mrb[22].mxu0  ;;  %v8372_v37 = vpop.f32.mrb[22].mxu1 }
 0x1e4   :  { %8869 = vst [vmem:[#allocation25_spill] sm:$0xff] %v8368_v41  ;;  %8870 = vst [vmem:[#allocation26_spill] sm:$0xff] %v8372_v37  ;;  %v8374_v45 = vpop.f32.mrb[23].mxu0  ;;  %v8380_v19 = vpop.f32.mrb[23].mxu1 }
 0x1e5   :  { %8871 = vst [vmem:[#allocation27_spill] sm:$0xff] %v8374_v45  ;;  %8872 = vst [vmem:[#allocation28_spill] sm:$0xff] %v8380_v19 }
 0x201   :  { %v8384_v16 = vpop.f32.mrb[24].mxu0  ;;  %v8386_v15 = vpop.f32.mrb[24].mxu1 }
 0x202   :  { %8873 = vst [vmem:[#allocation29_spill] sm:$0xff] %v8384_v16  ;;  %8874 = vst [vmem:[#allocation30_spill] sm:$0xff] %v8386_v15  ;;  %v8388_v42 = vpop.f32.mrb[25].mxu0  ;;  %v8390_v3 = vpop.f32.mrb[25].mxu1  ;;  %v8408_v16 = vsub.s32 %v2354_v26, %v2356_v48  ;;  %v2344_v15 = vld [vmem:[#allocation5 + $0x8] sm:$0xff] }
 0x203   :  { %8875 = vst [vmem:[#allocation31_spill] sm:$0xff] %v8388_v42  ;;  %8876 = vst [vmem:[#allocation32_spill] sm:$0xff] %v8390_v3  ;;  %v8392_v14 = vpop.f32.mrb[26].mxu0  ;;  %v8396_v9 = vpop.f32.mrb[26].mxu1 }
 0x204   :  { %8877 = vst [vmem:[#allocation33_spill] sm:$0xff] %v8392_v14  ;;  %8878 = vst [vmem:[#allocation34_spill] sm:$0xff] %v8396_v9  ;;  %v8398_v36 = vpop.f32.mrb[27].mxu0  ;;  %v8404_v33 = vpop.f32.mrb[27].mxu1  ;;  %v2343_v14 = vld [vmem:[#allocation5] sm:$0xff]  ;;  %v8417_v9 = vsub.s32 0, %v2356_v48 }
 0x205   :  { %8879 = vst [vmem:[#allocation35_spill] sm:$0xff] %v8398_v36  ;;  %8880 = vst [vmem:[#allocation36_spill] sm:$0xff] %v8404_v33  ;;  %v2358_v43 = vrot.slane %v2343_v14, %v8408_v16  ;;  %v2351_v8 = vcombine.high %v2343_v14, %v2343_v14  ;;  %v2407_v36 = vrot.slane %v2344_v15, %v8408_v16 }
 0x206   :  { %v2400_v33 = vcombine.high %v2344_v15, %v2344_v15 }
 0x207   :  { %v2366_v19 = vcombine.high %v2358_v43, %v2358_v43  ;;  %v2365_v51 = vrot.slane %v2351_v8, %v8408_v16  ;;  %v2374_v0 = vrot.slane %v2358_v43, %v8408_v16  ;;  %v2415_v3 = vcombine.high %v2407_v36, %v2407_v36 }
 0x209   :  { %v2388_v10 = vrot.slane %v2366_v19, %v8408_v16  ;;  %v2367_v42 = vcombine.high %v2365_v51, %v2365_v51  ;;  %v2396_v32 = vcombine.high %v2374_v0, %v2374_v0  ;;  %v2381_v26 = vrot.slane %v2365_v51, %v8408_v16 }
 0x20a   :  { %v2548_v14 = vpack.i.b16 %v2374_v0, %v2374_v0  ;;  %v2423_v51 = vrot.slane %v2407_v36, %v8408_v16  ;;  %v2414_v0 = vrot.slane %v2400_v33, %v8408_v16 }
 0x20b   :  { %v2398_v4 = vcombine.high %v2388_v10, %v2388_v10  ;;  %v2395_v20 = vrot.slane %v2367_v42, %v8408_v16  ;;  %v2562_v8 = vpack.i.b16 %v2396_v32, %v2396_v32  ;;  %v2555_v45 = vpack.i.b16 %v2388_v10, %v2388_v10 }
 0x20c   :  { %v2397_v19 = vcombine.high %v2381_v26, %v2381_v26  ;;  %v8427_v42 = vrot.slane %v2415_v3, %v8408_v16  ;;  %v2553_v10 = vrot.slane %v2548_v14, %v8417_v9  ;;  %v2576_v33 = vpack.i.b16 %v2381_v26, %v2381_v26 }
 0x20d   :  { %v2569_v43 = vpack.i.b16 %v2398_v4, %v2398_v4  ;;  %v2399_v37 = vcombine.high %v2395_v20, %v2395_v20  ;;  %v2567_v48 = vrot.slane %v2562_v8, %v8417_v9  ;;  %v2560_v4 = vrot.slane %v2555_v45, %v8417_v9 }
 0x20e   :  { %v2590_v8 = vpack.i.b16 %v2397_v19, %v2397_v19  ;;  %v2583_v45 = vpack.i.b16 %v2395_v20, %v2395_v20  ;;  %v8889_v26 = vpack.c.bf16 %v8137_v24, %v8126_v17  ;;  %v8458_v14 = vrot.slane %v2414_v0, %v8408_v16 }
 0x20f   :  { %v2574_v3 = vrot.slane %v2569_v43, %v8417_v9  ;;  %v2597_v31 = vpack.i.b16 %v2399_v37, %v2399_v37  ;;  %v2416_v43 = vcombine.high %v2414_v0, %v2414_v0  ;;  %v8890_v20 = vpack.c.bf16 %v8141_v27, %v8131_v21 }
 0x210   :  { %v2771_v35 = vadd.bf16 %v2553_v10, %v8889_v26  ;;  %v8891_v19 = vpack.c.bf16 %v8143_v29, %v8133_v22  ;;  %v2595_v24 = vrot.slane %v2590_v8, %v8417_v9  ;;  %v2611_v22 = vpack.i.b16 %v8427_v42, %v8427_v42 }
 0x211   :  { %v2773_v37 = vadd.bf16 %v2567_v48, %v8890_v20  ;;  %v2602_v0 = vrot.slane %v2597_v31, %v8417_v9  ;;  %v8476_v48 = vrot.slane %v2416_v43, %v8408_v16  ;;  %v8893_v31 = vmov 0  }
 0x212   :  { %v2772_v39 = vadd.bf16 %v2560_v4, %v8891_v19  ;;  %v2345_v4 = vld [vmem:[#allocation5 + $0x10] sm:$0xff] }
 0x213   :  { %v2456_v19 = vrot.slane %v2345_v4, %v8408_v16 }
 0x214   :  { %v2804_v43 = vmax.bf16 %v8893_v31, %v2772_v39  ;;  %v8894_v39 = vpack.c.bf16 %v8213_v2, %v8202_v59  ;;  %v2632_v59 = vpack.i.b16 %v8458_v14, %v8458_v14 }
 0x221   :  { %v8419_v50 = vpop.f32.mrb[28].mxu0  ;;  %v8421_v49 = vpop.f32.mrb[28].mxu1 }
 0x222   :  { %8881 = vst [vmem:[#allocation37_spill] sm:$0xff] %v8419_v50  ;;  %8882 = vst [vmem:[#allocation38_spill] sm:$0xff] %v8421_v49  ;;  %v8423_v41 = vpop.f32.mrb[29].mxu0  ;;  %v8430_v15 = vpop.f32.mrb[29].mxu1  ;;  %v2445_v50 = vcombine.high %v2423_v51, %v2423_v51  ;;  %v2604_v49 = vpack.i.b16 %v2423_v51, %v2423_v51  ;;  %v2588_v51 = vrot.slane %v2583_v45, %v8417_v9 }
 0x223   :  { %8883 = vst [vmem:[#allocation39_spill] sm:$0xff] %v8423_v41  ;;  %8884 = vst [vmem:[#allocation40_spill] sm:$0xff] %v8430_v15  ;;  %v8432_v32 = vpop.f32.mrb[30].mxu0  ;;  %v8439_v46 = vpop.f32.mrb[30].mxu1  ;;  %v2581_v15 = vrot.slane %v2576_v33, %v8417_v9  ;;  %v8892_v41 = vpack.c.bf16 %v8149_v34, %v8135_v23 }
 0x224   :  { %8885 = vst [vmem:[#allocation41_spill] sm:$0xff] %v8432_v32  ;;  %8886 = vst [vmem:[#allocation42_spill] sm:$0xff] %v8439_v46  ;;  %v8441_v36 = vpop.f32.mrb[31].mxu0  ;;  %v8448_v44 = vpop.f32.mrb[31].mxu1  ;;  %v2447_v32 = vcombine.high %v8427_v42, %v8427_v42  ;;  %v2618_v27 = vpack.i.b16 %v2445_v50, %v2445_v50  ;;  %v8479_v34 = vrot.slane %v2604_v49, %v8417_v9 }
 0x225   :  { %8887 = vst [vmem:[#allocation43_spill] sm:$0xff] %v8441_v36  ;;  %8888 = vst [vmem:[#allocation44_spill] sm:$0xff] %v8448_v44  ;;  %v2774_v17 = vadd.bf16 %v2574_v3, %v8892_v41  ;;  %v8483_v41 = vcombine.high %v8458_v14, %v8458_v14  ;;  %v2803_v3 = vmax.bf16 %v8893_v31, %v2771_v35 }
 0x226   :  { %v2625_v29 = vpack.i.b16 %v2447_v32, %v2447_v32  ;;  %v2805_v42 = vmax.bf16 %v8893_v31, %v2773_v37  ;;  %v8491_v47 = vrot.slane %v2618_v27, %v8417_v9  ;;  %v8495_v35 = vcombine.high %v8476_v48, %v8476_v48 }
 0x227   :  { %v2806_v36 = vmax.bf16 %v8893_v31, %v2774_v17  ;;  %v7617_v17 = vld [vmem:[#allocation7 + $0x180] sm:$0xff]   ;;  %v8895_v27 = vpack.c.bf16 %v8217_v5, %v8206_v61  ;;  %v2646_v61 = vpack.i.b16 %v8483_v41, %v8483_v41  ;;  %v2464_v5 = vcombine.high %v2456_v19, %v2456_v19 }
 0x228   :  { %v2653_v14 = vpack.i.b16 %v8495_v35, %v8495_v35 }
 0x229   :  { %v3069_v44 = vpop.f32.mrb[32].mxu0  ;;  %v3112_v10 = vpop.f32.mrb[32].mxu1 }
 0x22a   :  { %v3071_v21 = vpop.f32.mrb[33].mxu0  ;;  %v3114_v33 = vpop.f32.mrb[33].mxu1 }
 0x22b   :  { %v3073_v23 = vpop.f32.mrb[34].mxu0  ;;  %v3116_v8 = vpop.f32.mrb[34].mxu1 }
 0x22c   :  { %v3723_v50 = vpack.c.bf16 %v3073_v23, %v3069_v44  ;;  %v3075_v45 = vpop.f32.mrb[35].mxu0  ;;  %v3725_v32 = vpack.c.bf16 %v3116_v8, %v3112_v10  ;;  %v3118_v20 = vpop.f32.mrb[35].mxu1  ;;  %v7616_v10 = vld [vmem:[#allocation7 + $0x100] sm:$0xff]   ;;  %v2616_v23 = vrot.slane %v2611_v22, %v8417_v9  ;;  %v2777_v8 = vadd.bf16 %v2595_v24, %v8895_v27 }
 0x22d   :  { %v3724_v26 = vpack.c.bf16 %v3075_v45, %v3071_v21  ;;  %v3726_v46 = vpack.c.bf16 %v3118_v20, %v3114_v33  ;;  %v2775_v21 = vadd.bf16 %v2581_v15, %v8894_v39  ;;  %v7618_v33 = vld [vmem:[#allocation7 + $0x148] sm:$0xff]   ;;  %v8896_v45 = vpack.c.bf16 %v8219_v6, %v8208_v62 }
 0x22e   :  { %v3755_v49 = vmul.bf16 %v3723_v50, %v2803_v3  ;;  %v3757_v44 = vmul.bf16 %v3725_v32, %v2805_v42  ;;  %v2449_v3 = vcombine.high %v2345_v4, %v2345_v4  ;;  %v2630_v32 = vrot.slane %v2625_v29, %v8417_v9  ;;  %v7619_v15 = vld [vmem:[#allocation7 + $0x1c8] sm:$0xff]  }
 0x22f   :  { %v3756_v37 = vmul.bf16 %v3724_v26, %v2804_v43  ;;  %v3758_v50 = vmul.bf16 %v3726_v46, %v2806_v36  ;;  %v2776_v42 = vadd.bf16 %v2588_v51, %v8896_v45  ;;  %v8897_v46 = vpack.c.bf16 %v8226_v11, %v8211_v1  ;;  %v7620_v11 = vld [vmem:[#allocation7 + $0x108] sm:$0xff]   ;;  %v7622_v26 = vld [vmem:[#allocation7 + $0x150] sm:$0xff]  }
 0x230   :  { %v2639_v6 = vpack.i.b16 %v8476_v48, %v8476_v48  ;;  %v8520_v51 = vrot.slane %v2456_v19, %v8408_v16  ;;  %v2807_v29 = vmax.bf16 %v8893_v31, %v2775_v21  ;;  %v7621_v48 = vld [vmem:[#allocation7 + $0x188] sm:$0xff]   ;;  %v2809_v20 = vmax.bf16 %v8893_v31, %v2777_v8  ;;  %v7624_v8 = vld [vmem:[#allocation7 + $0x110] sm:$0xff]  }
 0x231   :  { %v3155_v2 = vpop.f32.mrb[36].mxu0  ;;  %5949 = vmatprep.mubr.bf16.mxu1 %v3756_v37  ;;  %v2778_v36 = vadd.bf16 %v2602_v0, %v8897_v46  ;;  %v3198_v24 = vpop.f32.mrb[36].mxu1  ;;  %5990 = vmatprep.mubr.bf16.mxu0 %v3758_v50  ;;  %v2463_v0 = vrot.slane %v2449_v3, %v8408_v16  ;;  %v7623_v37 = vld [vmem:[#allocation7 + $0x1d0] sm:$0xff]   ;;  %v2637_v50 = vrot.slane %v2632_v59, %v8417_v9  ;;  %v7626_v59 = vld [vmem:[#allocation7 + $0x158] sm:$0xff]  }
 0x232   :  { %v3157_v62 = vpop.f32.mrb[37].mxu0  ;;  %5950 = vmatmul.mubr.bf16.vlgmr.msra.gmra.mrb[64].mxu1 %v3755_v49  ;;  %v3200_v22 = vpop.f32.mrb[37].mxu1  ;;  %5991 = vmatmul.mubr.bf16.vlgmr.msra.gmra.mrb[68].mxu0 %v3757_v44  ;;  %v2808_v49 = vmax.bf16 %v8893_v31, %v2776_v42  ;;  %v8898_v45 = vpack.c.bf16 %v8277_v63, %v8266_v55  ;;  %v7625_v46 = vld [vmem:[#allocation7 + $0x190] sm:$0xff]   ;;  %v7627_v63 = vld [vmem:[#allocation7 + $0x1d8] sm:$0xff]  }
 0x233   :  { %7221 = vmatpush3.bf16.msra.mxu1 %v7616_v10  ;;  %v3159_v1 = vpop.f32.mrb[38].mxu0  ;;  %7243 = vmatpush3.bf16.msra.mxu0 %v7617_v17  ;;  %v3202_v41 = vpop.f32.mrb[38].mxu1  ;;  %v8527_v10 = vrot.slane %v2464_v5, %v8408_v16  ;;  %v2810_v21 = vmax.bf16 %v8893_v31, %v2778_v36  ;;  %v8535_v17 = vcombine.high %v8520_v51, %v8520_v51 }
 0x234   :  { %v3727_v4 = vpack.c.bf16 %v3159_v1, %v3155_v2  ;;  %v3161_v43 = vpop.f32.mrb[39].mxu0  ;;  %7222 = vmatprep.subr.bf16.mxu1 %v7618_v33  ;;  %v3729_v19 = vpack.c.bf16 %v3202_v41, %v3198_v24  ;;  %v3204_v44 = vpop.f32.mrb[39].mxu1  ;;  %7244 = vmatprep.subr.bf16.mxu0 %v7619_v15  ;;  %v2779_v42 = vadd.bf16 %v8479_v34, %v8898_v45 }
 0x235   :  { %v3728_v35 = vpack.c.bf16 %v3161_v43, %v3157_v62  ;;  %v3730_v3 = vpack.c.bf16 %v3204_v44, %v3200_v22  ;;  %v2465_v2 = vcombine.high %v2463_v0, %v2463_v0  ;;  %v8899_v36 = vpack.c.bf16 %v8281_v7, %v8270_v57  ;;  %v7631_v44 = vld [vmem:[#allocation7 + $0x1e0] sm:$0xff]  }
 0x236   :  { %v8529_v39 = vmul.bf16 %v3727_v4, %v2807_v29  ;;  %v8537_v33 = vmul.bf16 %v3729_v19, %v2809_v20  ;;  %v8900_v24 = vpack.c.bf16 %v8283_v12, %v8272_v58  ;;  %v2651_v22 = vrot.slane %v2646_v61, %v8417_v9  ;;  %v8570_v29 = vld [vmem:[#allocation5 + $0x18] sm:$0xff] }
 0x237   :  { %v3760_v27 = vmul.bf16 %v3728_v35, %v2808_v49  ;;  %7223 = vmatpush3.bf16.msra.mxu1 %v7620_v11  ;;  %v3762_v15 = vmul.bf16 %v3730_v3, %v2810_v21  ;;  %7245 = vmatpush3.bf16.msra.mxu0 %v7621_v48  ;;  %v2781_v5 = vadd.bf16 %v8491_v47, %v8899_v36  ;;  %v7629_v48 = vld [vmem:[#allocation7 + $0x198] sm:$0xff]   ;;  %v7633_v36 = vld [vmem:[#allocation7 + $0x1a0] sm:$0xff]  }
 0x238   :  { %7224 = vmatprep.subr.bf16.mxu1 %v7622_v26  ;;  %v2780_v62 = vadd.bf16 %v2616_v23, %v8900_v24  ;;  %7246 = vmatprep.subr.bf16.mxu0 %v7623_v37  ;;  %v8901_v34 = vpack.c.bf16 %v8290_v18, %v8275_v60  ;;  %v2644_v11 = vrot.slane %v2639_v6, %v8417_v9  ;;  %v7628_v6 = vld [vmem:[#allocation7 + $0x118] sm:$0xff]   ;;  %v7630_v26 = vld [vmem:[#allocation7 + $0x160] sm:$0xff]  }
 0x239   :  { %v3241_v55 = vpop.f32.mrb[40].mxu0  ;;  %6031 = vmatprep.mubr.bf16.mxu1 %v3760_v27  ;;  %v2658_v57 = vrot.slane %v2653_v14, %v8417_v9  ;;  %v2496_v7 = vcombine.high %v8527_v10, %v8527_v10  ;;  %v3284_v47 = vpop.f32.mrb[40].mxu1  ;;  %6072 = vmatprep.mubr.bf16.mxu0 %v3762_v15  ;;  %v2660_v12 = vpack.i.b16 %v8520_v51, %v8520_v51 }
 0x23a   :  { %v2782_v1 = vadd.bf16 %v2630_v32, %v8901_v34  ;;  %v3243_v58 = vpop.f32.mrb[41].mxu0  ;;  %v2674_v23 = vpack.i.b16 %v8535_v17, %v8535_v17  ;;  %v2667_v60 = vpack.i.b16 %v8527_v10, %v8527_v10  ;;  %v8565_v18 = vrot.slane %v2463_v0, %v8408_v16  ;;  %v3286_v32 = vpop.f32.mrb[41].mxu1  ;;  %v7635_v34 = vld [vmem:[#allocation7 + $0x1e8] sm:$0xff]  }
 0x23b   :  { %7225 = vmatpush3.bf16.msra.mxu1 %v7624_v8  ;;  %v3245_v61 = vpop.f32.mrb[42].mxu0  ;;  %v8568_v14 = vrot.slane %v2465_v2, %v8408_v16  ;;  %7247 = vmatpush3.bf16.msra.mxu0 %v7625_v46  ;;  %v2811_v51 = vmax.bf16 %v8893_v31, %v2779_v42  ;;  %v3288_v41 = vpop.f32.mrb[42].mxu1  ;;  %v2813_v0 = vmax.bf16 %v8893_v31, %v2781_v5  ;;  %v7632_v42 = vld [vmem:[#allocation7 + $0x120] sm:$0xff]   ;;  %v7634_v5 = vld [vmem:[#allocation7 + $0x168] sm:$0xff]  }
 0x23c   :  { %v3731_v4 = vpack.c.bf16 %v3245_v61, %v3241_v55  ;;  %v3247_v43 = vpop.f32.mrb[43].mxu0  ;;  %7226 = vmatprep.subr.bf16.mxu1 %v7626_v59  ;;  %v3733_v20 = vpack.c.bf16 %v3288_v41, %v3284_v47  ;;  %v2812_v19 = vmax.bf16 %v8893_v31, %v2780_v62  ;;  %v3290_v35 = vpop.f32.mrb[43].mxu1  ;;  %7248 = vmatprep.subr.bf16.mxu0 %v7627_v63 }
 0x23d   :  { %v3732_v49 = vpack.c.bf16 %v3247_v43, %v3243_v58  ;;  %v2681_v37 = vpack.i.b16 %v2496_v7, %v2496_v7  ;;  %v2814_v21 = vmax.bf16 %v8893_v31, %v2782_v1  ;;  %v3734_v3 = vpack.c.bf16 %v3290_v35, %v3286_v32 }
 0x23e   :  { %v8575_v10 = vmul.bf16 %v3731_v4, %v2811_v51  ;;  %v8580_v17 = vcombine.high %v8565_v18, %v8565_v18  ;;  %v2505_v27 = vrot.slane %v8570_v29, %v8408_v16  ;;  %v8584_v8 = vmul.bf16 %v3733_v20, %v2813_v0 }
 0x23f   :  { %v8586_v45 = vmul.bf16 %v3732_v49, %v2812_v19  ;;  %7227 = vmatpush3.bf16.msra.mxu1 %v7628_v6  ;;  %v8902_v2 = vpack.c.bf16 %v8320_v56, %v8312_v40  ;;  %v8593_v46 = vcombine.high %v8568_v14, %v8568_v14  ;;  %v8595_v59 = vmul.bf16 %v3734_v3, %v2814_v21  ;;  %v7637_v6 = vld [vmem:[#allocation7 + $0x1a8] sm:$0xff]   ;;  %v7640_v3 = vld [vmem:[#allocation7 + $0x130] sm:$0xff]  }
 0x240   :  { %7249 = vmatpush3.bf16.msra.mxu0 %v7629_v48  ;;  %7228 = vmatprep.subr.bf16.mxu1 %v7630_v26  ;;  %v8903_v24 = vpack.c.bf16 %v8324_v25, %v8314_v52  ;;  %v8904_v55 = vpack.c.bf16 %v8326_v30, %v8316_v53  ;;  %v2665_v40 = vrot.slane %v2660_v12, %v8417_v9  ;;  %v7636_v12 = vld [vmem:[#allocation7 + $0x128] sm:$0xff]   ;;  %v7639_v26 = vld [vmem:[#allocation7 + $0x1f0] sm:$0xff]  }
 0x241   :  { %v2783_v15 = vadd.bf16 %v2637_v50, %v8902_v2  ;;  %v2679_v56 = vrot.slane %v2674_v23, %v8417_v9  ;;  %v3327_v50 = vpop.f32.mrb[44].mxu0  ;;  %7250 = vmatprep.subr.bf16.mxu0 %v7631_v44  ;;  %v8905_v1 = vpack.c.bf16 %v8332_v38, %v8318_v54  ;;  %v2672_v47 = vrot.slane %v2667_v60, %v8417_v9  ;;  %v3370_v53 = vpop.f32.mrb[44].mxu1  ;;  %v7642_v2 = vld [vmem:[#allocation7 + $0x178] sm:$0xff]  }
 0x242   :  { %v2785_v62 = vadd.bf16 %v2651_v22, %v8903_v24  ;;  %v2784_v63 = vadd.bf16 %v2644_v11, %v8904_v55  ;;  %v2686_v52 = vrot.slane %v2681_v37, %v8417_v9  ;;  %v2688_v25 = vpack.i.b16 %v8565_v18, %v8565_v18  ;;  %v3329_v30 = vpop.f32.mrb[45].mxu0  ;;  %v3372_v38 = vpop.f32.mrb[45].mxu1  ;;  %v8910_v24 = vld [vmem:[#allocation19_spill] sm:$0xff] }
 0x243   :  { %v2786_v7 = vadd.bf16 %v2658_v57, %v8905_v1  ;;  %v2702_v22 = vpack.i.b16 %v8580_v17, %v8580_v17  ;;  %v2695_v11 = vpack.i.b16 %v8568_v14, %v8568_v14  ;;  %v8617_v58 = vrot.slane %v2505_v27, %v8408_v16  ;;  %7229 = vmatpush3.bf16.msra.mxu1 %v7632_v42  ;;  %v3331_v57 = vpop.f32.mrb[46].mxu0  ;;  %v3374_v32 = vpop.f32.mrb[46].mxu1  ;;  %v7638_v14 = vld [vmem:[#allocation7 + $0x170] sm:$0xff]  }
 0x244   :  { %v2513_v54 = vcombine.high %v2505_v27, %v2505_v27  ;;  %v2709_v23 = vpack.i.b16 %v8593_v46, %v8593_v46  ;;  %7251 = vmatpush3.bf16.msra.mxu0 %v7633_v36  ;;  %v2815_v60 = vmax.bf16 %v8893_v31, %v2783_v15  ;;  %v3735_v18 = vpack.c.bf16 %v3331_v57, %v3327_v50  ;;  %v3333_v61 = vpop.f32.mrb[47].mxu0  ;;  %v3376_v48 = vpop.f32.mrb[47].mxu1  ;;  %v7641_v42 = vld [vmem:[#allocation7 + $0x1b0] sm:$0xff]   ;;  %v8907_v15 = vld [vmem:[#allocation18_spill] sm:$0xff] }
 0x245   :  { %7230 = vmatprep.subr.bf16.mxu1 %v7634_v5  ;;  %v2817_v51 = vmax.bf16 %v8893_v31, %v2785_v62  ;;  %v3737_v4 = vpack.c.bf16 %v3374_v32, %v3370_v53  ;;  %v2816_v41 = vmax.bf16 %v8893_v31, %v2784_v63  ;;  %v3736_v43 = vpack.c.bf16 %v3333_v61, %v3329_v30  ;;  %v8908_v46 = vld [vmem:[#allocation15_spill] sm:$0xff]  ;;  %v8911_v62 = vld [vmem:[#allocation16_spill] sm:$0xff] }
 0x246   :  { %7252 = vmatprep.subr.bf16.mxu0 %v7635_v34  ;;  %v2498_v0 = vcombine.high %v8570_v29, %v8570_v29  ;;  %v8626_v20 = vmul.bf16 %v3735_v18, %v2815_v60  ;;  %v2818_v19 = vmax.bf16 %v8893_v31, %v2786_v7  ;;  %v3738_v49 = vpack.c.bf16 %v3376_v48, %v3372_v38  ;;  %v7644_v60 = vld [vmem:[#allocation7 + $0x138] sm:$0xff]   ;;  %v7647_v48 = vld [vmem:[#allocation7 + $0x2c0] sm:$0xff]  }
 0x247   :  { %v8631_v35 = vcombine.high %v8617_v58, %v8617_v58  ;;  %v8634_v44 = vrot.slane %v2513_v54, %v8408_v16  ;;  %v8636_v37 = vmul.bf16 %v3737_v4, %v2817_v51  ;;  %v8638_v21 = vmul.bf16 %v3736_v43, %v2816_v41  ;;  %7231 = vmatpush3.bf16.msra.mxu1 %v7636_v12 }
 0x248   :  { %v8906_v29 = vpack.c.bf16 %v8344_v28, %v8336_v13  ;;  %v8643_v27 = vmul.bf16 %v3738_v49, %v2818_v19  ;;  %7253 = vmatpush3.bf16.msra.mxu0 %v7637_v6  ;;  %7232 = vmatprep.subr.bf16.mxu1 %v7638_v14  ;;  %v8909_v36 = vpack.c.bf16 %v8907_v15, %v8908_v46  ;;  %v7643_v13 = vld [vmem:[#allocation7 + $0x1f8] sm:$0xff]   ;;  %v7646_v6 = vld [vmem:[#allocation7 + $0x240] sm:$0xff]  }
 0x249   :  { %v8912_v55 = vpack.c.bf16 %v8910_v24, %v8911_v62  ;;  %v2693_v50 = vrot.slane %v2688_v25, %v8417_v9  ;;  %v3413_v34 = vpop.f32.mrb[48].mxu0  ;;  %7254 = vmatprep.subr.bf16.mxu0 %v7639_v26  ;;  %v8913_v28 = vld [vmem:[#allocation20_spill] sm:$0xff]  ;;  %v2707_v53 = vrot.slane %v2702_v22, %v8417_v9  ;;  %v2700_v30 = vrot.slane %v2695_v11, %v8417_v9 }
 0x24a   :  { %v2787_v17 = vadd.bf16 %v2665_v40, %v8906_v29  ;;  %v2789_v5 = vadd.bf16 %v2679_v56, %v8909_v36  ;;  %v8914_v40 = vld [vmem:[#allocation17_spill] sm:$0xff]  ;;  %v2512_v54 = vrot.slane %v2498_v0, %v8408_v16  ;;  %v3456_v56 = vpop.f32.mrb[48].mxu1  ;;  %v3415_v38 = vpop.f32.mrb[49].mxu0  ;;  %v2714_v57 = vrot.slane %v2709_v23, %v8417_v9  ;;  %v8919_v36 = vld [vmem:[#allocation26_spill] sm:$0xff] }
 0x24b   :  { %v2788_v63 = vadd.bf16 %v2672_v47, %v8912_v55  ;;  %v8915_v1 = vpack.c.bf16 %v8913_v28, %v8914_v40  ;;  %v2716_v47 = vpack.i.b16 %v8617_v58, %v8617_v58  ;;  %v2730_v25 = vpack.i.b16 %v8631_v35, %v8631_v35  ;;  %7233 = vmatpush3.bf16.msra.mxu1 %v7640_v3  ;;  %v3417_v22 = vpop.f32.mrb[50].mxu0  ;;  %v7645_v58 = vld [vmem:[#allocation7 + $0x1b8] sm:$0xff]  }
 0x24c   :  { %v2545_v12 = vcombine.high %v8634_v44, %v8634_v44  ;;  %v2723_v11 = vpack.i.b16 %v8634_v44, %v8634_v44  ;;  %7255 = vmatpush3.bf16.msra.mxu0 %v7641_v42  ;;  %v2819_v18 = vmax.bf16 %v8893_v31, %v2787_v17  ;;  %v3739_v23 = vpack.c.bf16 %v3417_v22, %v3413_v34  ;;  %v3419_v61 = vpop.f32.mrb[51].mxu0  ;;  %v7648_v17 = vld [vmem:[#allocation7 + $0x200] sm:$0xff]   ;;  %v8922_v34 = vld [vmem:[#allocation27_spill] sm:$0xff] }
 0x24d   :  { %v2790_v7 = vadd.bf16 %v2686_v52, %v8915_v1  ;;  %v3458_v52 = vpop.f32.mrb[49].mxu1  ;;  %7234 = vmatprep.subr.bf16.mxu1 %v7642_v2  ;;  %v2821_v14 = vmax.bf16 %v8893_v31, %v2789_v5  ;;  %v2820_v4 = vmax.bf16 %v8893_v31, %v2788_v63  ;;  %v3740_v41 = vpack.c.bf16 %v3419_v61, %v3415_v38  ;;  %v8916_v42 = vld [vmem:[#allocation25_spill] sm:$0xff]  ;;  %v8920_v5 = vld [vmem:[#allocation22_spill] sm:$0xff] }
 0x24e   :  { %v3460_v32 = vpop.f32.mrb[50].mxu1  ;;  %7256 = vmatprep.subr.bf16.mxu0 %v7643_v13  ;;  %v2514_v26 = vcombine.high %v2512_v54, %v2512_v54  ;;  %v8670_v0 = vmul.bf16 %v3739_v23, %v2819_v18  ;;  %v2737_v35 = vpack.i.b16 %v2545_v12, %v2545_v12  ;;  %v8674_v44 = vrot.slane %v2512_v54, %v8408_v16  ;;  %v8917_v2 = vld [vmem:[#allocation21_spill] sm:$0xff]  ;;  %v8923_v13 = vld [vmem:[#allocation23_spill] sm:$0xff]  ;;  %v8925_v54 = vld [vmem:[#allocation28_spill] sm:$0xff] }
 0x24f   :  { %v3741_v51 = vpack.c.bf16 %v3460_v32, %v3456_v56  ;;  %v3462_v43 = vpop.f32.mrb[51].mxu1  ;;  %v2822_v19 = vmax.bf16 %v8893_v31, %v2790_v7  ;;  %v8678_v29 = vmul.bf16 %v3740_v41, %v2820_v4  ;;  %7235 = vmatpush3.bf16.msra.mxu1 %v7644_v60  ;;  %v8918_v15 = vpack.c.bf16 %v8916_v42, %v8917_v2  ;;  %v7649_v63 = vld [vmem:[#allocation7 + $0x280] sm:$0xff]   ;;  %v7650_v7 = vld [vmem:[#allocation7 + $0x248] sm:$0xff]   ;;  %v8926_v56 = vld [vmem:[#allocation24_spill] sm:$0xff] }
 0x250   :  { %v3742_v49 = vpack.c.bf16 %v3462_v43, %v3458_v52  ;;  %v8921_v24 = vpack.c.bf16 %v8919_v36, %v8920_v5  ;;  %7257 = vmatpush3.bf16.msra.mxu0 %v7645_v58  ;;  %7264 = vmatprep.subr.bf16.mxu1 %v7646_v6  ;;  %v8924_v28 = vpack.c.bf16 %v8922_v34, %v8923_v13  ;;  %v7651_v18 = vld [vmem:[#allocation7 + $0x2c8] sm:$0xff]   ;;  %v7655_v43 = vld [vmem:[#allocation7 + $0x2d0] sm:$0xff]   ;;  %v8928_v2 = vld [vmem:[#allocation33_spill] sm:$0xff] }
 0x251   :  { %v8676_v3 = vmul.bf16 %v3741_v51, %v2821_v14  ;;  %v2791_v46 = vadd.bf16 %v2693_v50, %v8918_v15  ;;  %v3499_v1 = vpop.f32.mrb[52].mxu0  ;;  %7286 = vmatprep.subr.bf16.mxu0 %v7647_v48  ;;  %v8927_v38 = vpack.c.bf16 %v8925_v54, %v8926_v56  ;;  %v2721_v12 = vrot.slane %v2716_v47, %v8417_v9  ;;  %v3542_v22 = vpop.f32.mrb[52].mxu1  ;;  %v7653_v6 = vld [vmem:[#allocation7 + $0x288] sm:$0xff]   ;;  %v7654_v14 = vld [vmem:[#allocation7 + $0x250] sm:$0xff]   ;;  %v8929_v15 = vld [vmem:[#allocation29_spill] sm:$0xff] }
 0x252   :  { %v2793_v62 = vadd.bf16 %v2707_v53, %v8921_v24  ;;  %v8686_v55 = vmul.bf16 %v3742_v49, %v2822_v19  ;;  %v2792_v40 = vadd.bf16 %v2700_v30, %v8924_v28  ;;  %v2735_v53 = vrot.slane %v2730_v25, %v8417_v9  ;;  %6032 = vmatmul.mubr.bf16.vlgmr.msra.gmra.mrb[68].mxu1 %v8529_v39  ;;  %v3501_v60 = vpop.f32.mrb[53].mxu0  ;;  %v7652_v25 = vld [vmem:[#allocation7 + $0x208] sm:$0xff]   ;;  %v7656_v42 = vld [vmem:[#allocation7 + $0x210] sm:$0xff]  }
 0x253   :  { %v2794_v50 = vadd.bf16 %v2714_v57, %v8927_v38  ;;  %v8697_v52 = vrot.slane %v2514_v26, %v8408_v16  ;;  %v2728_v30 = vrot.slane %v2723_v11, %v8417_v9  ;;  %v2742_v23 = vrot.slane %v2737_v35, %v8417_v9  ;;  %6073 = vmatmul.mubr.bf16.vlgmr.msra.gmra.mrb[72].mxu0 %v8537_v33  ;;  %v3544_v57 = vpop.f32.mrb[53].mxu1  ;;  %v3503_v47 = vpop.f32.mrb[54].mxu0  ;;  %v8932_v34 = vld [vmem:[#allocation30_spill] sm:$0xff]  ;;  %v7659_v38 = vld [vmem:[#allocation7 + $0x2d8] sm:$0xff]  }
 0x254   :  { %v2544_v32 = vcombine.high %v8674_v44, %v8674_v44  ;;  %7265 = vmatpush3.bf16.msra.mxu1 %v7648_v17  ;;  %6113 = vmatprep.mubr.bf16.mxu1 %v8586_v45  ;;  %v2823_v16 = vmax.bf16 %v8893_v31, %v2791_v46  ;;  %v3743_v39 = vpack.c.bf16 %v3503_v47, %v3499_v1  ;;  %v3546_v11 = vpop.f32.mrb[54].mxu1  ;;  %v3505_v58 = vpop.f32.mrb[55].mxu0  ;;  %v8935_v1 = vld [vmem:[#allocation31_spill] sm:$0xff] }
 0x255   :  { %7287 = vmatpush3.bf16.msra.mxu0 %v7649_v63  ;;  %v2825_v61 = vmax.bf16 %v8893_v31, %v2793_v62  ;;  %6154 = vmatprep.mubr.bf16.mxu0 %v8595_v59  ;;  %v3745_v51 = vpack.c.bf16 %v3546_v11, %v3542_v22  ;;  %v2824_v33 = vmax.bf16 %v8893_v31, %v2792_v40  ;;  %v3548_v41 = vpop.f32.mrb[55].mxu1  ;;  %v7657_v62 = vld [vmem:[#allocation7 + $0x290] sm:$0xff]   ;;  %v8931_v63 = vld [vmem:[#allocation34_spill] sm:$0xff] }
 0x256   :  { %v3744_v4 = vpack.c.bf16 %v3505_v58, %v3501_v60  ;;  %7266 = vmatprep.subr.bf16.mxu1 %v7650_v7  ;;  %v2546_v45 = vcombine.high %v8697_v52, %v8697_v52  ;;  %v8712_v48 = vmul.bf16 %v3743_v39, %v2823_v16  ;;  %v2826_v26 = vmax.bf16 %v8893_v31, %v2794_v50  ;;  %v8934_v40 = vld [vmem:[#allocation35_spill] sm:$0xff]  ;;  %v8937_v50 = vld [vmem:[#allocation36_spill] sm:$0xff] }
 0x257   :  { %v3746_v19 = vpack.c.bf16 %v3548_v41, %v3544_v57  ;;  %7288 = vmatprep.subr.bf16.mxu0 %v7651_v18  ;;  %v2744_v49 = vpack.i.b16 %v8674_v44, %v8674_v44  ;;  %v2758_v59 = vpack.i.b16 %v2544_v32, %v2544_v32  ;;  %v8717_v35 = vmul.bf16 %v3745_v51, %v2825_v61  ;;  %v7658_v44 = vld [vmem:[#allocation7 + $0x258] sm:$0xff]  }
 0x258   :  { %v8719_v17 = vmul.bf16 %v3744_v4, %v2824_v33  ;;  %7267 = vmatpush3.bf16.msra.mxu1 %v7652_v25  ;;  %v8930_v46 = vpack.c.bf16 %v8928_v2, %v8929_v15  ;;  %v2751_v5 = vpack.i.b16 %v8697_v52, %v8697_v52  ;;  %v8933_v13 = vpack.c.bf16 %v8931_v63, %v8932_v34  ;;  %v7660_v16 = vld [vmem:[#allocation7 + $0x218] sm:$0xff]   ;;  %v7664_v2 = vld [vmem:[#allocation7 + $0x220] sm:$0xff]   ;;  %v8943_v63 = vld [vmem:[#allocation42_spill] sm:$0xff] }
 0x259   :  { %v8726_v24 = vmul.bf16 %v3746_v19, %v2826_v26  ;;  %7289 = vmatpush3.bf16.msra.mxu0 %v7653_v6  ;;  %7268 = vmatprep.subr.bf16.mxu1 %v7654_v14  ;;  %v8936_v7 = vpack.c.bf16 %v8934_v40, %v8935_v1  ;;  %v3585_v56 = vpop.f32.mrb[56].mxu0  ;;  %v2765_v60 = vpack.i.b16 %v2546_v45, %v2546_v45  ;;  %v3628_v18 = vpop.f32.mrb[56].mxu1  ;;  %v7662_v6 = vld [vmem:[#allocation7 + $0x260] sm:$0xff]   ;;  %v8944_v34 = vld [vmem:[#allocation38_spill] sm:$0xff]  ;;  %v8946_v40 = vld [vmem:[#allocation43_spill] sm:$0xff] }
 0x25a   :  { %v2795_v36 = vadd.bf16 %v2721_v12, %v8930_v46  ;;  %v2797_v28 = vadd.bf16 %v2735_v53, %v8933_v13  ;;  %7290 = vmatprep.subr.bf16.mxu0 %v7655_v43  ;;  %v8938_v12 = vld [vmem:[#allocation32_spill] sm:$0xff]  ;;  %v3587_v32 = vpop.f32.mrb[57].mxu0  ;;  %v2749_v57 = vrot.slane %v2744_v49, %v8417_v9  ;;  %v2763_v47 = vrot.slane %v2758_v59, %v8417_v9  ;;  %v3630_v25 = vpop.f32.mrb[57].mxu1  ;;  %v7663_v43 = vld [vmem:[#allocation7 + $0x2e0] sm:$0xff]   ;;  %v8947_v1 = vld [vmem:[#allocation39_spill] sm:$0xff] }
 0x25b   :  { %v2796_v54 = vadd.bf16 %v2728_v30, %v8936_v7  ;;  %v8939_v52 = vpack.c.bf16 %v8937_v50, %v8938_v12  ;;  %v3589_v53 = vpop.f32.mrb[58].mxu0  ;;  %v2756_v30 = vrot.slane %v2751_v5, %v8417_v9  ;;  %v3632_v11 = vpop.f32.mrb[58].mxu1  ;;  %v2770_v45 = vrot.slane %v2765_v60, %v8417_v9  ;;  %v8940_v15 = vld [vmem:[#allocation41_spill] sm:$0xff]  ;;  %v8949_v50 = vld [vmem:[#allocation44_spill] sm:$0xff] }
 0x25c   :  { %7269 = vmatpush3.bf16.msra.mxu1 %v7656_v42  ;;  %v2827_v39 = vmax.bf16 %v8893_v31, %v2795_v36  ;;  %v3747_v61 = vpack.c.bf16 %v3589_v53, %v3585_v56  ;;  %v3591_v58 = vpop.f32.mrb[59].mxu0  ;;  %v2829_v14 = vmax.bf16 %v8893_v31, %v2797_v28  ;;  %v3749_v51 = vpack.c.bf16 %v3632_v11, %v3628_v18  ;;  %v3634_v41 = vpop.f32.mrb[59].mxu1  ;;  %v8941_v46 = vld [vmem:[#allocation37_spill] sm:$0xff]  ;;  %v8950_v12 = vld [vmem:[#allocation40_spill] sm:$0xff] }
 0x25d   :  { %v2798_v22 = vadd.bf16 %v2742_v23, %v8939_v52  ;;  %7291 = vmatpush3.bf16.msra.mxu0 %v7657_v62  ;;  %7270 = vmatprep.subr.bf16.mxu1 %v7658_v44  ;;  %v7661_v23 = vld [vmem:[#allocation7 + $0x298] sm:$0xff]   ;;  %v2828_v33 = vmax.bf16 %v8893_v31, %v2796_v54  ;;  %v3748_v4 = vpack.c.bf16 %v3591_v58, %v3587_v32  ;;  %v7665_v9 = vld [vmem:[#allocation7 + $0x2a0] sm:$0xff]   ;;  %v7666_v44 = vld [vmem:[#allocation7 + $0x268] sm:$0xff]  }
 0x25e   :  { %7292 = vmatprep.subr.bf16.mxu0 %v7659_v38  ;;  %v8744_v26 = vmul.bf16 %v3747_v61, %v2827_v39  ;;  %v3750_v49 = vpack.c.bf16 %v3634_v41, %v3630_v25  ;;  %v8747_v59 = vmul.bf16 %v3749_v51, %v2829_v14  ;;  %v8942_v36 = vpack.c.bf16 %v8940_v15, %v8941_v46  ;;  %v7667_v38 = vld [vmem:[#allocation7 + $0x2e8] sm:$0xff]   ;;  %v7670_v61 = vld [vmem:[#allocation7 + $0x270] sm:$0xff]   ;;  %v7674_v15 = vld [vmem:[#allocation7 + $0x278] sm:$0xff]  }
 0x25f   :  { %v2830_v19 = vmax.bf16 %v8893_v31, %v2798_v22  ;;  %v8749_v42 = vmul.bf16 %v3748_v4, %v2828_v33  ;;  %v8945_v13 = vpack.c.bf16 %v8943_v63, %v8944_v34  ;;  %v8948_v7 = vpack.c.bf16 %v8946_v40, %v8947_v1  ;;  %v7668_v25 = vld [vmem:[#allocation7 + $0x228] sm:$0xff]   ;;  %v7671_v51 = vld [vmem:[#allocation7 + $0x2f0] sm:$0xff]   ;;  %v7675_v46 = vld [vmem:[#allocation7 + $0x2f8] sm:$0xff]  }
 0x260   :  { %7271 = vmatpush3.bf16.msra.mxu1 %v7660_v16  ;;  %v2799_v5 = vadd.bf16 %v2749_v57, %v8942_v36  ;;  %v8951_v52 = vpack.c.bf16 %v8949_v50, %v8950_v12  ;;  %v7679_v63 = vld [vmem:[#allocation7 + $0x3c0] sm:$0xff]   ;;  %v7683_v40 = vld [vmem:[#allocation7 + $0x3c8] sm:$0xff]   ;;  %v7690_v50 = vld [vmem:[#allocation7 + $0x358] sm:$0xff]  }
 0x261   :  { %v8754_v62 = vmul.bf16 %v3750_v49, %v2830_v19  ;;  %7293 = vmatpush3.bf16.msra.mxu0 %v7661_v23  ;;  %7272 = vmatprep.subr.bf16.mxu1 %v7662_v6  ;;  %v2801_v28 = vadd.bf16 %v2763_v47, %v8945_v13  ;;  %v2800_v54 = vadd.bf16 %v2756_v30, %v8948_v7  ;;  %v3671_v56 = vpop.f32.mrb[60].mxu0  ;;  %v3714_v60 = vpop.f32.mrb[60].mxu1  ;;  %v7669_v30 = vld [vmem:[#allocation7 + $0x2a8] sm:$0xff]   ;;  %v7672_v19 = vld [vmem:[#allocation7 + $0x230] sm:$0xff]   ;;  %v7680_v34 = vld [vmem:[#allocation7 + $0x300] sm:$0xff]  }
 0x262   :  { %7294 = vmatprep.subr.bf16.mxu0 %v7663_v43  ;;  %v2802_v22 = vadd.bf16 %v2770_v45, %v8951_v52  ;;  %v3673_v18 = vpop.f32.mrb[61].mxu0  ;;  %v3716_v32 = vpop.f32.mrb[61].mxu1  ;;  %v2831_v47 = vmax.bf16 %v8893_v31, %v2799_v5  ;;  %v7681_v13 = vld [vmem:[#allocation7 + $0x380] sm:$0xff]   ;;  %v7684_v1 = vld [vmem:[#allocation7 + $0x308] sm:$0xff]   ;;  %v7692_v12 = vld [vmem:[#allocation7 + $0x318] sm:$0xff]  }
 0x263   :  { %v3675_v57 = vpop.f32.mrb[62].mxu0  ;;  %v3718_v16 = vpop.f32.mrb[62].mxu1  ;;  %v2833_v11 = vmax.bf16 %v8893_v31, %v2801_v28  ;;  %v2832_v23 = vmax.bf16 %v8893_v31, %v2800_v54  ;;  %v7682_v28 = vld [vmem:[#allocation7 + $0x348] sm:$0xff]   ;;  %v7686_v54 = vld [vmem:[#allocation7 + $0x350] sm:$0xff]   ;;  %v7694_v52 = vld [vmem:[#allocation7 + $0x360] sm:$0xff]  }
 0x264   :  { %7273 = vmatpush3.bf16.msra.mxu1 %v7664_v2  ;;  %v3751_v53 = vpack.c.bf16 %v3675_v57, %v3671_v56  ;;  %v3677_v39 = vpop.f32.mrb[63].mxu0  ;;  %v3753_v58 = vpack.c.bf16 %v3718_v16, %v3714_v60  ;;  %v3720_v14 = vpop.f32.mrb[63].mxu1  ;;  %v2834_v4 = vmax.bf16 %v8893_v31, %v2802_v22  ;;  %v7673_v2 = vld [vmem:[#allocation7 + $0x2b0] sm:$0xff]   ;;  %v7676_v31 = vld [vmem:[#allocation7 + $0x238] sm:$0xff]   ;;  %v7685_v7 = vld [vmem:[#allocation7 + $0x388] sm:$0xff]  }
 0x265   :  { %7295 = vmatpush3.bf16.msra.mxu0 %v7665_v9  ;;  %7274 = vmatprep.subr.bf16.mxu1 %v7666_v44  ;;  %v3752_v6 = vpack.c.bf16 %v3677_v39, %v3673_v18  ;;  %v3754_v41 = vpack.c.bf16 %v3720_v14, %v3716_v32  ;;  %v7677_v9 = vld [vmem:[#allocation7 + $0x2b8] sm:$0xff]   ;;  %v7678_v44 = vld [vmem:[#allocation7 + $0x340] sm:$0xff]   ;;  %v7687_v56 = vld [vmem:[#allocation7 + $0x3d0] sm:$0xff]  }
 0x266   :  { %7296 = vmatprep.subr.bf16.mxu0 %v7667_v38  ;;  %v8768_v33 = vmul.bf16 %v3751_v53, %v2831_v47  ;;  %v8771_v43 = vmul.bf16 %v3753_v58, %v2833_v11  ;;  %v7688_v38 = vld [vmem:[#allocation7 + $0x310] sm:$0xff]   ;;  %v7695_v22 = vld [vmem:[#allocation7 + $0x3e0] sm:$0xff]   ;;  %v7698_v18 = vld [vmem:[#allocation7 + $0x368] sm:$0xff]  }
 0x267   :  { %v8773_v45 = vmul.bf16 %v3752_v6, %v2832_v23  ;;  %v8775_v49 = vmul.bf16 %v3754_v41, %v2834_v4  ;;  %v7697_v60 = vld [vmem:[#allocation7 + $0x3a0] sm:$0xff]   ;;  %v7699_v32 = vld [vmem:[#allocation7 + $0x3e8] sm:$0xff]   ;;  %v7702_v47 = vld [vmem:[#allocation7 + $0x370] sm:$0xff]  }
 0x268   :  { %7275 = vmatpush3.bf16.msra.mxu1 %v7668_v25  ;;  %v7700_v57 = vld [vmem:[#allocation7 + $0x328] sm:$0xff]   ;;  %v7703_v53 = vld [vmem:[#allocation7 + $0x3f0] sm:$0xff]   ;;  %v7708_v11 = vld [vmem:[#allocation7 + $0x338] sm:$0xff]  }
 0x269   :  { %7297 = vmatpush3.bf16.msra.mxu0 %v7669_v30  ;;  %7276 = vmatprep.subr.bf16.mxu1 %v7670_v61  ;;  %v8777_v36 = vpop.f32.mrb[64].mxu0  ;;  %v7701_v25 = vld [vmem:[#allocation7 + $0x3a8] sm:$0xff]   ;;  %v7704_v16 = vld [vmem:[#allocation7 + $0x330] sm:$0xff]   ;;  %v7706_v30 = vld [vmem:[#allocation7 + $0x378] sm:$0xff]  }
 0x26a   :  { %7298 = vmatprep.subr.bf16.mxu0 %v7671_v51  ;;  %v8779_v5 = vpop.f32.mrb[65].mxu0  ;;  %v7705_v39 = vld [vmem:[#allocation7 + $0x3b0] sm:$0xff]   ;;  %v7707_v61 = vld [vmem:[#allocation7 + $0x3f8] sm:$0xff]   ;;  %v7710_v23 = vld [vmem:[#allocation7 + $0x440] sm:$0xff]  }
 0x26b   :  { %v7709_v58 = vld [vmem:[#allocation7 + $0x3b8] sm:$0xff]   ;;  %v7711_v6 = vld [vmem:[#allocation7 + $0x4c0] sm:$0xff]   ;;  %v7714_v4 = vld [vmem:[#allocation7 + $0x448] sm:$0xff]  }
 0x26c   :  { %7277 = vmatpush3.bf16.msra.mxu1 %v7672_v19  ;;  %v7712_v14 = vld [vmem:[#allocation7 + $0x400] sm:$0xff]   ;;  %v7715_v41 = vld [vmem:[#allocation7 + $0x4c8] sm:$0xff]  }
 0x26d   :  { %7299 = vmatpush3.bf16.msra.mxu0 %v7673_v2  ;;  %7278 = vmatprep.subr.bf16.mxu1 %v7674_v15  ;;  %v7713_v51 = vld [vmem:[#allocation7 + $0x480] sm:$0xff]   ;;  %v7716_v19 = vld [vmem:[#allocation7 + $0x408] sm:$0xff]   ;;  %v7718_v15 = vld [vmem:[#allocation7 + $0x450] sm:$0xff]  }
 0x26e   :  { %7300 = vmatprep.subr.bf16.mxu0 %v7675_v46  ;;  %v7717_v2 = vld [vmem:[#allocation7 + $0x488] sm:$0xff]   ;;  %v7719_v46 = vld [vmem:[#allocation7 + $0x4d0] sm:$0xff]  }
 0x270   :  { %7279 = vmatpush3.bf16.msra.mxu1 %v7676_v31  ;;  %v7720_v31 = vld [vmem:[#allocation7 + $0x410] sm:$0xff]  }
 0x271   :  { %7301 = vmatpush3.bf16.msra.mxu0 %v7677_v9  ;;  %7308 = vmatprep.subr.bf16.mxu1 %v7678_v44  ;;  %v7722_v9 = vld [vmem:[#allocation7 + $0x458] sm:$0xff]  }
 0x272   :  { %7330 = vmatprep.subr.bf16.mxu0 %v7679_v63  ;;  %v7724_v44 = vld [vmem:[#allocation7 + $0x418] sm:$0xff]   ;;  %v7726_v63 = vld [vmem:[#allocation7 + $0x460] sm:$0xff]  }
 0x273   :  { %6114 = vmatmul.mubr.bf16.vlgmr.msra.gmra.mrb[72].mxu1 %v8575_v10  ;;  %v7689_v10 = vld [vmem:[#allocation7 + $0x390] sm:$0xff]  }
 0x274   :  { %6155 = vmatmul.mubr.bf16.vlgmr.msra.gmra.mrb[76].mxu0 %v8584_v8  ;;  %7309 = vmatpush3.bf16.msra.mxu1 %v7680_v34  ;;  %v7691_v8 = vld [vmem:[#allocation7 + $0x3d8] sm:$0xff]   ;;  %v7727_v34 = vld [vmem:[#allocation7 + $0x4e0] sm:$0xff]  }
 0x275   :  { %6195 = vmatprep.mubr.bf16.mxu1 %v8638_v21  ;;  %7331 = vmatpush3.bf16.msra.mxu0 %v7681_v13  ;;  %v7693_v21 = vld [vmem:[#allocation7 + $0x398] sm:$0xff]   ;;  %v7729_v13 = vld [vmem:[#allocation7 + $0x4a0] sm:$0xff]  }
 0x276   :  { %6236 = vmatprep.mubr.bf16.mxu0 %v8643_v27  ;;  %7310 = vmatprep.subr.bf16.mxu1 %v7682_v28  ;;  %v7696_v27 = vld [vmem:[#allocation7 + $0x320] sm:$0xff]   ;;  %v7730_v28 = vld [vmem:[#allocation7 + $0x468] sm:$0xff]  }
 0x277   :  { %7332 = vmatprep.subr.bf16.mxu0 %v7683_v40  ;;  %v7731_v40 = vld [vmem:[#allocation7 + $0x4e8] sm:$0xff]  }
 0x278   :  { %7311 = vmatpush3.bf16.msra.mxu1 %v7684_v1  ;;  %v7732_v1 = vld [vmem:[#allocation7 + $0x428] sm:$0xff]  }
 0x279   :  { %7333 = vmatpush3.bf16.msra.mxu0 %v7685_v7  ;;  %7312 = vmatprep.subr.bf16.mxu1 %v7686_v54  ;;  %v7733_v7 = vld [vmem:[#allocation7 + $0x4a8] sm:$0xff]   ;;  %v7734_v54 = vld [vmem:[#allocation7 + $0x470] sm:$0xff]  }
 0x27a   :  { %7334 = vmatprep.subr.bf16.mxu0 %v7687_v56  ;;  %v7735_v56 = vld [vmem:[#allocation7 + $0x4f0] sm:$0xff]  }
 0x27c   :  { %7313 = vmatpush3.bf16.msra.mxu1 %v7688_v38  ;;  %v7736_v38 = vld [vmem:[#allocation7 + $0x430] sm:$0xff]  }
 0x27d   :  { %7335 = vmatpush3.bf16.msra.mxu0 %v7689_v10  ;;  %7314 = vmatprep.subr.bf16.mxu1 %v7690_v50  ;;  %v7737_v10 = vld [vmem:[#allocation7 + $0x4b0] sm:$0xff]   ;;  %v7738_v50 = vld [vmem:[#allocation7 + $0x478] sm:$0xff]  }
 0x27e   :  { %7336 = vmatprep.subr.bf16.mxu0 %v7691_v8  ;;  %v7739_v8 = vld [vmem:[#allocation7 + $0x4f8] sm:$0xff]  }
 0x280   :  { %7315 = vmatpush3.bf16.msra.mxu1 %v7692_v12  ;;  %v7740_v12 = vld [vmem:[#allocation7 + $0x438] sm:$0xff]  }
 0x281   :  { %7337 = vmatpush3.bf16.msra.mxu0 %v7693_v21  ;;  %7316 = vmatprep.subr.bf16.mxu1 %v7694_v52  ;;  %v7741_v21 = vld [vmem:[#allocation7 + $0x4b8] sm:$0xff]   ;;  %v7742_v52 = vld [vmem:[#allocation7 + $0x540] sm:$0xff]  }
 0x282   :  { %7338 = vmatprep.subr.bf16.mxu0 %v7695_v22  ;;  %v7743_v22 = vld [vmem:[#allocation7 + $0x5c0] sm:$0xff]  }
 0x284   :  { %7317 = vmatpush3.bf16.msra.mxu1 %v7696_v27  ;;  %v7744_v27 = vld [vmem:[#allocation7 + $0x500] sm:$0xff]  }
 0x285   :  { %7339 = vmatpush3.bf16.msra.mxu0 %v7697_v60  ;;  %7318 = vmatprep.subr.bf16.mxu1 %v7698_v18  ;;  %v7745_v60 = vld [vmem:[#allocation7 + $0x580] sm:$0xff]   ;;  %v7746_v18 = vld [vmem:[#allocation7 + $0x548] sm:$0xff]  }
 0x286   :  { %7340 = vmatprep.subr.bf16.mxu0 %v7699_v32  ;;  %v7747_v32 = vld [vmem:[#allocation7 + $0x5c8] sm:$0xff]  }
 0x288   :  { %7319 = vmatpush3.bf16.msra.mxu1 %v7700_v57  ;;  %v7748_v57 = vld [vmem:[#allocation7 + $0x508] sm:$0xff]  }
 0x289   :  { %7341 = vmatpush3.bf16.msra.mxu0 %v7701_v25  ;;  %7320 = vmatprep.subr.bf16.mxu1 %v7702_v47  ;;  %v7749_v25 = vld [vmem:[#allocation7 + $0x588] sm:$0xff]   ;;  %v7750_v47 = vld [vmem:[#allocation7 + $0x550] sm:$0xff]  }
 0x28a   :  { %7342 = vmatprep.subr.bf16.mxu0 %v7703_v53  ;;  %v7751_v53 = vld [vmem:[#allocation7 + $0x5d0] sm:$0xff]  }
 0x28c   :  { %7321 = vmatpush3.bf16.msra.mxu1 %v7704_v16  ;;  %v7752_v16 = vld [vmem:[#allocation7 + $0x510] sm:$0xff]  }
 0x28d   :  { %7343 = vmatpush3.bf16.msra.mxu0 %v7705_v39  ;;  %7322 = vmatprep.subr.bf16.mxu1 %v7706_v30  ;;  %v7754_v39 = vld [vmem:[#allocation7 + $0x558] sm:$0xff]  }
 0x28e   :  { %7344 = vmatprep.subr.bf16.mxu0 %v7707_v61  ;;  %v7756_v30 = vld [vmem:[#allocation7 + $0x518] sm:$0xff]   ;;  %v7758_v61 = vld [vmem:[#allocation7 + $0x560] sm:$0xff]  }
 0x290   :  { %7323 = vmatpush3.bf16.msra.mxu1 %v7708_v11  ;;  %v7759_v11 = vld [vmem:[#allocation7 + $0x5e0] sm:$0xff]  }
 0x291   :  { %7345 = vmatpush3.bf16.msra.mxu0 %v7709_v58  ;;  %7352 = vmatprep.subr.bf16.mxu1 %v7710_v23  ;;  %v7761_v58 = vld [vmem:[#allocation7 + $0x5a0] sm:$0xff]   ;;  %v7762_v23 = vld [vmem:[#allocation7 + $0x568] sm:$0xff]  }
 0x292   :  { %7374 = vmatprep.subr.bf16.mxu0 %v7711_v6  ;;  %v7763_v6 = vld [vmem:[#allocation7 + $0x5e8] sm:$0xff]  }
 0x293   :  { %6196 = vmatmul.mubr.bf16.vlgmr.msra.gmra.mrb[76].mxu1 %v8626_v20  ;;  %v7721_v20 = vld [vmem:[#allocation7 + $0x490] sm:$0xff]  }
 0x294   :  { %6237 = vmatmul.mubr.bf16.vlgmr.msra.gmra.mrb[80].mxu0 %v8636_v37  ;;  %7353 = vmatpush3.bf16.msra.mxu1 %v7712_v14  ;;  %v7723_v37 = vld [vmem:[#allocation7 + $0x4d8] sm:$0xff]   ;;  %v7764_v14 = vld [vmem:[#allocation7 + $0x528] sm:$0xff]  }
 0x295   :  { %6277 = vmatprep.mubr.bf16.mxu1 %v8678_v29  ;;  %7375 = vmatpush3.bf16.msra.mxu0 %v7713_v51  ;;  %v7725_v29 = vld [vmem:[#allocation7 + $0x498] sm:$0xff]   ;;  %v7765_v51 = vld [vmem:[#allocation7 + $0x5a8] sm:$0xff]  }
 0x296   :  { %6318 = vmatprep.mubr.bf16.mxu0 %v8686_v55  ;;  %7354 = vmatprep.subr.bf16.mxu1 %v7714_v4  ;;  %v7728_v55 = vld [vmem:[#allocation7 + $0x420] sm:$0xff]   ;;  %v7766_v4 = vld [vmem:[#allocation7 + $0x570] sm:$0xff]  }
 0x297   :  { %7376 = vmatprep.subr.bf16.mxu0 %v7715_v41  ;;  %v7767_v41 = vld [vmem:[#allocation7 + $0x5f0] sm:$0xff]  }
 0x298   :  { %7355 = vmatpush3.bf16.msra.mxu1 %v7716_v19  ;;  %v7768_v19 = vld [vmem:[#allocation7 + $0x530] sm:$0xff]  }
 0x299   :  { %7377 = vmatpush3.bf16.msra.mxu0 %v7717_v2  ;;  %7356 = vmatprep.subr.bf16.mxu1 %v7718_v15  ;;  %v7769_v2 = vld [vmem:[#allocation7 + $0x5b0] sm:$0xff]   ;;  %v7770_v15 = vld [vmem:[#allocation7 + $0x578] sm:$0xff]  }
 0x29a   :  { %7378 = vmatprep.subr.bf16.mxu0 %v7719_v46  ;;  %v7771_v46 = vld [vmem:[#allocation7 + $0x5f8] sm:$0xff]  }
 0x29c   :  { %7357 = vmatpush3.bf16.msra.mxu1 %v7720_v31  ;;  %v7772_v31 = vld [vmem:[#allocation7 + $0x538] sm:$0xff]  }
 0x29d   :  { %7379 = vmatpush3.bf16.msra.mxu0 %v7721_v20  ;;  %7358 = vmatprep.subr.bf16.mxu1 %v7722_v9  ;;  %v7773_v20 = vld [vmem:[#allocation7 + $0x5b8] sm:$0xff]   ;;  %v7774_v9 = vld [vmem:[#allocation7 + $0x640] sm:$0xff]  }
 0x29e   :  { %7380 = vmatprep.subr.bf16.mxu0 %v7723_v37  ;;  %v7775_v37 = vld [vmem:[#allocation7 + $0x6c0] sm:$0xff]  }
 0x2a0   :  { %7359 = vmatpush3.bf16.msra.mxu1 %v7724_v44  ;;  %v7776_v44 = vld [vmem:[#allocation7 + $0x600] sm:$0xff]  }
 0x2a1   :  { %7381 = vmatpush3.bf16.msra.mxu0 %v7725_v29  ;;  %7360 = vmatprep.subr.bf16.mxu1 %v7726_v63  ;;  %v7777_v29 = vld [vmem:[#allocation7 + $0x680] sm:$0xff]   ;;  %v7778_v63 = vld [vmem:[#allocation7 + $0x648] sm:$0xff]  }
 0x2a2   :  { %7382 = vmatprep.subr.bf16.mxu0 %v7727_v34  ;;  %v7779_v34 = vld [vmem:[#allocation7 + $0x6c8] sm:$0xff]  }
 0x2a4   :  { %7361 = vmatpush3.bf16.msra.mxu1 %v7728_v55  ;;  %v7780_v55 = vld [vmem:[#allocation7 + $0x608] sm:$0xff]  }
 0x2a5   :  { %7383 = vmatpush3.bf16.msra.mxu0 %v7729_v13  ;;  %7362 = vmatprep.subr.bf16.mxu1 %v7730_v28  ;;  %v7781_v13 = vld [vmem:[#allocation7 + $0x688] sm:$0xff]   ;;  %v7782_v28 = vld [vmem:[#allocation7 + $0x650] sm:$0xff]  }
 0x2a6   :  { %7384 = vmatprep.subr.bf16.mxu0 %v7731_v40  ;;  %v7783_v40 = vld [vmem:[#allocation7 + $0x6d0] sm:$0xff]  }
 0x2a8   :  { %7363 = vmatpush3.bf16.msra.mxu1 %v7732_v1  ;;  %v7784_v1 = vld [vmem:[#allocation7 + $0x610] sm:$0xff]  }
 0x2a9   :  { %7385 = vmatpush3.bf16.msra.mxu0 %v7733_v7  ;;  %7364 = vmatprep.subr.bf16.mxu1 %v7734_v54  ;;  %v7786_v7 = vld [vmem:[#allocation7 + $0x658] sm:$0xff]  }
 0x2aa   :  { %7386 = vmatprep.subr.bf16.mxu0 %v7735_v56  ;;  %v7788_v54 = vld [vmem:[#allocation7 + $0x618] sm:$0xff]   ;;  %v7790_v56 = vld [vmem:[#allocation7 + $0x660] sm:$0xff]  }
 0x2ac   :  { %7365 = vmatpush3.bf16.msra.mxu1 %v7736_v38  ;;  %v7791_v38 = vld [vmem:[#allocation7 + $0x6e0] sm:$0xff]  }
 0x2ad   :  { %7387 = vmatpush3.bf16.msra.mxu0 %v7737_v10  ;;  %7366 = vmatprep.subr.bf16.mxu1 %v7738_v50  ;;  %v7793_v10 = vld [vmem:[#allocation7 + $0x6a0] sm:$0xff]   ;;  %v7794_v50 = vld [vmem:[#allocation7 + $0x668] sm:$0xff]  }
 0x2ae   :  { %7388 = vmatprep.subr.bf16.mxu0 %v7739_v8  ;;  %v7795_v8 = vld [vmem:[#allocation7 + $0x6e8] sm:$0xff]  }
 0x2b0   :  { %7367 = vmatpush3.bf16.msra.mxu1 %v7740_v12  ;;  %v7796_v12 = vld [vmem:[#allocation7 + $0x628] sm:$0xff]  }
 0x2b1   :  { %7389 = vmatpush3.bf16.msra.mxu0 %v7741_v21  ;;  %7396 = vmatprep.subr.bf16.mxu1 %v7742_v52  ;;  %v7797_v21 = vld [vmem:[#allocation7 + $0x6a8] sm:$0xff]   ;;  %v7798_v52 = vld [vmem:[#allocation7 + $0x670] sm:$0xff]  }
 0x2b2   :  { %7418 = vmatprep.subr.bf16.mxu0 %v7743_v22  ;;  %v7799_v22 = vld [vmem:[#allocation7 + $0x6f0] sm:$0xff]  }
 0x2b3   :  { %6278 = vmatmul.mubr.bf16.vlgmr.msra.gmra.mrb[80].mxu1 %v8670_v0  ;;  %v7753_v0 = vld [vmem:[#allocation7 + $0x590] sm:$0xff]  }
 0x2b4   :  { %6319 = vmatmul.mubr.bf16.vlgmr.msra.gmra.mrb[84].mxu0 %v8676_v3  ;;  %7397 = vmatpush3.bf16.msra.mxu1 %v7744_v27  ;;  %v7755_v3 = vld [vmem:[#allocation7 + $0x5d8] sm:$0xff]   ;;  %v7800_v27 = vld [vmem:[#allocation7 + $0x630] sm:$0xff]  }
 0x2b5   :  { %6359 = vmatprep.mubr.bf16.mxu1 %v8719_v17  ;;  %7419 = vmatpush3.bf16.msra.mxu0 %v7745_v60  ;;  %v7757_v17 = vld [vmem:[#allocation7 + $0x598] sm:$0xff]   ;;  %v7801_v60 = vld [vmem:[#allocation7 + $0x6b0] sm:$0xff]  }
 0x2b6   :  { %6400 = vmatprep.mubr.bf16.mxu0 %v8726_v24  ;;  %7398 = vmatprep.subr.bf16.mxu1 %v7746_v18  ;;  %v7760_v24 = vld [vmem:[#allocation7 + $0x520] sm:$0xff]   ;;  %v7802_v18 = vld [vmem:[#allocation7 + $0x678] sm:$0xff]  }
 0x2b7   :  { %7420 = vmatprep.subr.bf16.mxu0 %v7747_v32  ;;  %v7803_v32 = vld [vmem:[#allocation7 + $0x6f8] sm:$0xff]  }
 0x2b8   :  { %7399 = vmatpush3.bf16.msra.mxu1 %v7748_v57  ;;  %v7804_v57 = vld [vmem:[#allocation7 + $0x638] sm:$0xff]  }
 0x2b9   :  { %7421 = vmatpush3.bf16.msra.mxu0 %v7749_v25  ;;  %7400 = vmatprep.subr.bf16.mxu1 %v7750_v47  ;;  %v7805_v25 = vld [vmem:[#allocation7 + $0x6b8] sm:$0xff]   ;;  %v7806_v47 = vld [vmem:[#allocation7 + $0x740] sm:$0xff]  }
 0x2ba   :  { %7422 = vmatprep.subr.bf16.mxu0 %v7751_v53  ;;  %v7807_v53 = vld [vmem:[#allocation7 + $0x7c0] sm:$0xff]  }
 0x2bc   :  { %7401 = vmatpush3.bf16.msra.mxu1 %v7752_v16  ;;  %v7808_v16 = vld [vmem:[#allocation7 + $0x700] sm:$0xff]  }
 0x2bd   :  { %7423 = vmatpush3.bf16.msra.mxu0 %v7753_v0  ;;  %7402 = vmatprep.subr.bf16.mxu1 %v7754_v39  ;;  %v7809_v0 = vld [vmem:[#allocation7 + $0x780] sm:$0xff]   ;;  %v7810_v39 = vld [vmem:[#allocation7 + $0x748] sm:$0xff]  }
 0x2be   :  { %7424 = vmatprep.subr.bf16.mxu0 %v7755_v3  ;;  %v7811_v3 = vld [vmem:[#allocation7 + $0x7c8] sm:$0xff]  }
 0x2c0   :  { %7403 = vmatpush3.bf16.msra.mxu1 %v7756_v30  ;;  %v7812_v30 = vld [vmem:[#allocation7 + $0x708] sm:$0xff]  }
 0x2c1   :  { %7425 = vmatpush3.bf16.msra.mxu0 %v7757_v17  ;;  %7404 = vmatprep.subr.bf16.mxu1 %v7758_v61  ;;  %v7813_v17 = vld [vmem:[#allocation7 + $0x788] sm:$0xff]   ;;  %v7814_v61 = vld [vmem:[#allocation7 + $0x750] sm:$0xff]  }
 0x2c2   :  { %7426 = vmatprep.subr.bf16.mxu0 %v7759_v11  ;;  %v7815_v11 = vld [vmem:[#allocation7 + $0x7d0] sm:$0xff]  }
 0x2c4   :  { %7405 = vmatpush3.bf16.msra.mxu1 %v7760_v24  ;;  %v7816_v24 = vld [vmem:[#allocation7 + $0x710] sm:$0xff]  }
 0x2c5   :  { %7427 = vmatpush3.bf16.msra.mxu0 %v7761_v58  ;;  %7406 = vmatprep.subr.bf16.mxu1 %v7762_v23  ;;  %v7818_v58 = vld [vmem:[#allocation7 + $0x758] sm:$0xff]  }
 0x2c6   :  { %7428 = vmatprep.subr.bf16.mxu0 %v7763_v6  ;;  %v7820_v23 = vld [vmem:[#allocation7 + $0x718] sm:$0xff]   ;;  %v7822_v6 = vld [vmem:[#allocation7 + $0x760] sm:$0xff]  }
 0x2c8   :  { %7407 = vmatpush3.bf16.msra.mxu1 %v7764_v14  ;;  %v7823_v14 = vld [vmem:[#allocation7 + $0x7e0] sm:$0xff]  }
 0x2c9   :  { %7429 = vmatpush3.bf16.msra.mxu0 %v7765_v51  ;;  %7408 = vmatprep.subr.bf16.mxu1 %v7766_v4  ;;  %v7825_v51 = vld [vmem:[#allocation7 + $0x7a0] sm:$0xff]   ;;  %v7826_v4 = vld [vmem:[#allocation7 + $0x768] sm:$0xff]  }
 0x2ca   :  { %7430 = vmatprep.subr.bf16.mxu0 %v7767_v41  ;;  %v7827_v41 = vld [vmem:[#allocation7 + $0x7e8] sm:$0xff]  }
 0x2cc   :  { %7409 = vmatpush3.bf16.msra.mxu1 %v7768_v19  ;;  %v7828_v19 = vld [vmem:[#allocation7 + $0x728] sm:$0xff]  }
 0x2cd   :  { %7431 = vmatpush3.bf16.msra.mxu0 %v7769_v2  ;;  %7410 = vmatprep.subr.bf16.mxu1 %v7770_v15  ;;  %v7829_v2 = vld [vmem:[#allocation7 + $0x7a8] sm:$0xff]   ;;  %v7830_v15 = vld [vmem:[#allocation7 + $0x770] sm:$0xff]  }
 0x2ce   :  { %7432 = vmatprep.subr.bf16.mxu0 %v7771_v46 }
 0x2d0   :  { %7411 = vmatpush3.bf16.msra.mxu1 %v7772_v31  ;;  %v7831_v31 = vld [vmem:[#allocation7 + $0x7f0] sm:$0xff]  }
 0x2d1   :  { %7433 = vmatpush3.bf16.msra.mxu0 %v7773_v20  ;;  %7440 = vmatprep.subr.bf16.mxu1 %v7774_v9 }
 0x2d2   :  { %7462 = vmatprep.subr.bf16.mxu0 %v7775_v37 }
 0x2d3   :  { %6360 = vmatmul.mubr.bf16.vlgmr.msra.gmra.mrb[84].mxu1 %v8712_v48  ;;  %v7785_v48 = vld [vmem:[#allocation7 + $0x690] sm:$0xff]  }
 0x2d4   :  { %6401 = vmatmul.mubr.bf16.vlgmr.msra.gmra.mrb[88].mxu0 %v8717_v35  ;;  %7441 = vmatpush3.bf16.msra.mxu1 %v7776_v44  ;;  %v7787_v35 = vld [vmem:[#allocation7 + $0x6d8] sm:$0xff]  }
 0x2d5   :  { %6441 = vmatprep.mubr.bf16.mxu1 %v8749_v42  ;;  %7463 = vmatpush3.bf16.msra.mxu0 %v7777_v29  ;;  %v7789_v42 = vld [vmem:[#allocation7 + $0x698] sm:$0xff]  }
 0x2d6   :  { %6482 = vmatprep.mubr.bf16.mxu0 %v8754_v62  ;;  %7442 = vmatprep.subr.bf16.mxu1 %v7778_v63  ;;  %v7792_v62 = vld [vmem:[#allocation7 + $0x620] sm:$0xff]   ;;  %v7832_v63 = vld [vmem:[#allocation7 + $0x730] sm:$0xff]  }
 0x2d7   :  { %7464 = vmatprep.subr.bf16.mxu0 %v7779_v34 }
 0x2d8   :  { %7443 = vmatpush3.bf16.msra.mxu1 %v7780_v55 }
 0x2d9   :  { %7465 = vmatpush3.bf16.msra.mxu0 %v7781_v13  ;;  %7444 = vmatprep.subr.bf16.mxu1 %v7782_v28  ;;  %v7833_v28 = vld [vmem:[#allocation7 + $0x7b0] sm:$0xff]  }
 0x2da   :  { %7466 = vmatprep.subr.bf16.mxu0 %v7783_v40  ;;  %v7834_v40 = vld [vmem:[#allocation7 + $0x778] sm:$0xff]  }
 0x2dc   :  { %7445 = vmatpush3.bf16.msra.mxu1 %v7784_v1 }
 0x2dd   :  { %7467 = vmatpush3.bf16.msra.mxu0 %v7785_v48  ;;  %7446 = vmatprep.subr.bf16.mxu1 %v7786_v7 }
 0x2de   :  { %7468 = vmatprep.subr.bf16.mxu0 %v7787_v35  ;;  %v7835_v35 = vld [vmem:[#allocation7 + $0x7f8] sm:$0xff]  }
 0x2e0   :  { %7447 = vmatpush3.bf16.msra.mxu1 %v7788_v54 }
 0x2e1   :  { %7469 = vmatpush3.bf16.msra.mxu0 %v7789_v42  ;;  %7448 = vmatprep.subr.bf16.mxu1 %v7790_v56 }
 0x2e2   :  { %7470 = vmatprep.subr.bf16.mxu0 %v7791_v38  ;;  %v7836_v38 = vld [vmem:[#allocation7 + $0x738] sm:$0xff]  }
 0x2e4   :  { %7449 = vmatpush3.bf16.msra.mxu1 %v7792_v62  ;;  %v7837_v62 = vld [vmem:[#allocation7 + $0x7b8] sm:$0xff]  }
 0x2e5   :  { %7471 = vmatpush3.bf16.msra.mxu0 %v7793_v10  ;;  %7450 = vmatprep.subr.bf16.mxu1 %v7794_v50 }
 0x2e6   :  { %7472 = vmatprep.subr.bf16.mxu0 %v7795_v8 }
 0x2e8   :  { %7451 = vmatpush3.bf16.msra.mxu1 %v7796_v12 }
 0x2e9   :  { %7473 = vmatpush3.bf16.msra.mxu0 %v7797_v21  ;;  %7452 = vmatprep.subr.bf16.mxu1 %v7798_v52 }
 0x2ea   :  { %7474 = vmatprep.subr.bf16.mxu0 %v7799_v22 }
 0x2ec   :  { %7453 = vmatpush3.bf16.msra.mxu1 %v7800_v27 }
 0x2ed   :  { %7475 = vmatpush3.bf16.msra.mxu0 %v7801_v60  ;;  %7454 = vmatprep.subr.bf16.mxu1 %v7802_v18 }
 0x2ee   :  { %7476 = vmatprep.subr.bf16.mxu0 %v7803_v32 }
 0x2f0   :  { %7455 = vmatpush3.bf16.msra.mxu1 %v7804_v57 }
 0x2f1   :  { %7477 = vmatpush3.bf16.msra.mxu0 %v7805_v25  ;;  %7484 = vmatprep.subr.bf16.mxu1 %v7806_v47 }
 0x2f2   :  { %7506 = vmatprep.subr.bf16.mxu0 %v7807_v53 }
 0x2f3   :  { %6442 = vmatmul.mubr.bf16.vlgmr.msra.gmra.mrb[88].mxu1 %v8744_v26  ;;  %v7817_v26 = vld [vmem:[#allocation7 + $0x790] sm:$0xff]  }
 0x2f4   :  { %6483 = vmatmul.mubr.bf16.vlgmr.msra.gmra.mrb[92].mxu0 %v8747_v59  ;;  %7485 = vmatpush3.bf16.msra.mxu1 %v7808_v16  ;;  %v7819_v59 = vld [vmem:[#allocation7 + $0x7d8] sm:$0xff]  }
 0x2f5   :  { %6523 = vmatprep.mubr.bf16.mxu1 %v8773_v45  ;;  %7507 = vmatpush3.bf16.msra.mxu0 %v7809_v0  ;;  %v7821_v45 = vld [vmem:[#allocation7 + $0x798] sm:$0xff]  }
 0x2f6   :  { %6564 = vmatprep.mubr.bf16.mxu0 %v8775_v49  ;;  %7486 = vmatprep.subr.bf16.mxu1 %v7810_v39  ;;  %v7824_v49 = vld [vmem:[#allocation7 + $0x720] sm:$0xff]  }
 0x2f7   :  { %7508 = vmatprep.subr.bf16.mxu0 %v7811_v3 }
 0x2f8   :  { %7487 = vmatpush3.bf16.msra.mxu1 %v7812_v30 }
 0x2f9   :  { %7509 = vmatpush3.bf16.msra.mxu0 %v7813_v17  ;;  %7488 = vmatprep.subr.bf16.mxu1 %v7814_v61 }
 0x2fa   :  { %7510 = vmatprep.subr.bf16.mxu0 %v7815_v11 }
 0x2fc   :  { %7489 = vmatpush3.bf16.msra.mxu1 %v7816_v24 }
 0x2fd   :  { %7511 = vmatpush3.bf16.msra.mxu0 %v7817_v26  ;;  %7490 = vmatprep.subr.bf16.mxu1 %v7818_v58 }
 0x2fe   :  { %7512 = vmatprep.subr.bf16.mxu0 %v7819_v59 }
 0x300   :  { %7491 = vmatpush3.bf16.msra.mxu1 %v7820_v23 }
 0x301   :  { %7513 = vmatpush3.bf16.msra.mxu0 %v7821_v45  ;;  %7492 = vmatprep.subr.bf16.mxu1 %v7822_v6 }
 0x302   :  { %7514 = vmatprep.subr.bf16.mxu0 %v7823_v14 }
 0x304   :  { %7493 = vmatpush3.bf16.msra.mxu1 %v7824_v49 }
 0x305   :  { %7515 = vmatpush3.bf16.msra.mxu0 %v7825_v51  ;;  %7494 = vmatprep.subr.bf16.mxu1 %v7826_v4  ;;  %v7192_v46 = vpop.f32.mrb[64].mxu1  ;;  %v7214_v20 = vpop.f32.mrb[68].mxu0 }
 0x306   :  { %7516 = vmatprep.subr.bf16.mxu0 %v7827_v41  ;;  %v7193_v9 = vpop.f32.mrb[65].mxu1  ;;  %v7215_v44 = vpop.f32.mrb[69].mxu0 }
 0x307   :  { %v7194_v37 = vadd.f32 %v7193_v9, %v7192_v46  ;;  %v7195_v29 = vpop.f32.mrb[66].mxu1  ;;  %v7216_v34 = vadd.f32 %v7215_v44, %v7214_v20  ;;  %v7217_v55 = vpop.f32.mrb[70].mxu0 }
 0x308   :  { %7495 = vmatpush3.bf16.msra.mxu1 %v7828_v19  ;;  %v7196_v13 = vpop.f32.mrb[67].mxu1  ;;  %v7218_v7 = vpop.f32.mrb[71].mxu0 }
 0x309   :  { %7517 = vmatpush3.bf16.msra.mxu0 %v7829_v2  ;;  %7496 = vmatprep.subr.bf16.mxu1 %v7830_v15  ;;  %v5952_v1 = vadd.f32 %v7194_v37, %v8779_v5  ;;  %v7197_v48 = vadd.f32 %v7196_v13, %v7195_v29  ;;  %v7219_v54 = vadd.f32 %v7218_v7, %v7217_v55 }
 0x30a   :  { %7518 = vmatprep.subr.bf16.mxu0 %v7831_v31 }
 0x30b   :  { %v5993_v42 = vadd.f32 %v7216_v34, %v5952_v1  ;;  %v5955_v56 = vadd.f32 %v8777_v36, %v7197_v48 }
 0x30c   :  { %7497 = vmatpush3.bf16.msra.mxu1 %v7832_v63 }
 0x30d   :  { %7519 = vmatpush3.bf16.msra.mxu0 %v7833_v28  ;;  %7498 = vmatprep.subr.bf16.mxu1 %v7834_v40  ;;  %v5996_v10 = vadd.f32 %v7219_v54, %v5955_v56 }
 0x30e   :  { %7520 = vmatprep.subr.bf16.mxu0 %v7835_v35 }
 0x310   :  { %7499 = vmatpush3.bf16.msra.mxu1 %v7836_v38 }
 0x311   :  { %7521 = vmatpush3.bf16.msra.mxu0 %v7837_v62 }
 0x313   :  { %6524 = vmatmul.mubr.bf16.vlgmr.msra.gmra.mrb[92].mxu1 %v8768_v33 }
 0x314   :  { %6565 = vmatmul.mubr.bf16.vlgmr.msra.gmra.mrb[96].mxu0 %v8771_v43 }
 0x325   :  { %v7236_v5 = vpop.f32.mrb[68].mxu1 }
 0x326   :  { %v7258_v50 = vpop.f32.mrb[72].mxu0  ;;  %v7237_v8 = vpop.f32.mrb[69].mxu1 }
 0x327   :  { %v7238_v12 = vadd.f32 %v7237_v8, %v7236_v5  ;;  %v7259_v21 = vpop.f32.mrb[73].mxu0  ;;  %v7239_v52 = vpop.f32.mrb[70].mxu1 }
 0x328   :  { %v7260_v36 = vadd.f32 %v7259_v21, %v7258_v50  ;;  %v7261_v22 = vpop.f32.mrb[74].mxu0  ;;  %v7240_v27 = vpop.f32.mrb[71].mxu1 }
 0x329   :  { %v6034_v60 = vadd.f32 %v7238_v12, %v5993_v42  ;;  %v7241_v18 = vadd.f32 %v7240_v27, %v7239_v52  ;;  %v7262_v32 = vpop.f32.mrb[75].mxu0 }
 0x32a   :  { %v7263_v57 = vadd.f32 %v7262_v32, %v7261_v22 }
 0x32b   :  { %v6075_v25 = vadd.f32 %v7260_v36, %v6034_v60  ;;  %v6037_v47 = vadd.f32 %v7241_v18, %v5996_v10 }
 0x32d   :  { %v6078_v53 = vadd.f32 %v7263_v57, %v6037_v47 }
 0x346   :  { %v7280_v16 = vpop.f32.mrb[72].mxu1 }
 0x347   :  { %v7302_v33 = vpop.f32.mrb[76].mxu0  ;;  %v7281_v0 = vpop.f32.mrb[73].mxu1 }
 0x348   :  { %v7282_v43 = vadd.f32 %v7281_v0, %v7280_v16  ;;  %v7303_v39 = vpop.f32.mrb[77].mxu0  ;;  %v7283_v3 = vpop.f32.mrb[74].mxu1 }
 0x349   :  { %v7304_v30 = vadd.f32 %v7303_v39, %v7302_v33  ;;  %v7305_v17 = vpop.f32.mrb[78].mxu0  ;;  %v7284_v61 = vpop.f32.mrb[75].mxu1 }
 0x34a   :  { %v6116_v11 = vadd.f32 %v7282_v43, %v6075_v25  ;;  %v7285_v24 = vadd.f32 %v7284_v61, %v7283_v3  ;;  %v7306_v26 = vpop.f32.mrb[79].mxu0 }
 0x34b   :  { %v7307_v58 = vadd.f32 %v7306_v26, %v7305_v17 }
 0x34c   :  { %v6157_v59 = vadd.f32 %v7304_v30, %v6116_v11  ;;  %v6119_v23 = vadd.f32 %v7285_v24, %v6078_v53 }
 0x34e   :  { %v6160_v45 = vadd.f32 %v7307_v58, %v6119_v23 }
 0x366   :  { %v7324_v6 = vpop.f32.mrb[76].mxu1 }
 0x367   :  { %v7346_v14 = vpop.f32.mrb[80].mxu0  ;;  %v7325_v49 = vpop.f32.mrb[77].mxu1 }
 0x368   :  { %v7326_v51 = vadd.f32 %v7325_v49, %v7324_v6  ;;  %v7347_v4 = vpop.f32.mrb[81].mxu0  ;;  %v7327_v41 = vpop.f32.mrb[78].mxu1 }
 0x369   :  { %v7348_v19 = vadd.f32 %v7347_v4, %v7346_v14  ;;  %v7349_v2 = vpop.f32.mrb[82].mxu0  ;;  %v7328_v15 = vpop.f32.mrb[79].mxu1 }
 0x36a   :  { %v6198_v46 = vadd.f32 %v7326_v51, %v6157_v59  ;;  %v7329_v31 = vadd.f32 %v7328_v15, %v7327_v41  ;;  %v7350_v20 = vpop.f32.mrb[83].mxu0 }
 0x36b   :  { %v7351_v9 = vadd.f32 %v7350_v20, %v7349_v2 }
 0x36c   :  { %v6239_v37 = vadd.f32 %v7348_v19, %v6198_v46  ;;  %v6201_v44 = vadd.f32 %v7329_v31, %v6160_v45 }
 0x36e   :  { %v6242_v29 = vadd.f32 %v7351_v9, %v6201_v44 }
 0x386   :  { %v7368_v63 = vpop.f32.mrb[80].mxu1 }
 0x387   :  { %v7390_v34 = vpop.f32.mrb[84].mxu0  ;;  %v7369_v55 = vpop.f32.mrb[81].mxu1 }
 0x388   :  { %v7370_v13 = vadd.f32 %v7369_v55, %v7368_v63  ;;  %v7391_v28 = vpop.f32.mrb[85].mxu0  ;;  %v7371_v40 = vpop.f32.mrb[82].mxu1 }
 0x389   :  { %v7392_v1 = vadd.f32 %v7391_v28, %v7390_v34  ;;  %v7393_v48 = vpop.f32.mrb[86].mxu0  ;;  %v7372_v7 = vpop.f32.mrb[83].mxu1 }
 0x38a   :  { %v6280_v35 = vadd.f32 %v7370_v13, %v6239_v37  ;;  %v7373_v54 = vadd.f32 %v7372_v7, %v7371_v40  ;;  %v7394_v42 = vpop.f32.mrb[87].mxu0 }
 0x38b   :  { %v7395_v56 = vadd.f32 %v7394_v42, %v7393_v48 }
 0x38c   :  { %v6321_v38 = vadd.f32 %v7392_v1, %v6280_v35  ;;  %v6283_v62 = vadd.f32 %v7373_v54, %v6242_v29 }
 0x38e   :  { %v6324_v10 = vadd.f32 %v7395_v56, %v6283_v62 }
 0x3a6   :  { %v7412_v5 = vpop.f32.mrb[84].mxu1 }
 0x3a7   :  { %v7434_v50 = vpop.f32.mrb[88].mxu0  ;;  %v7413_v8 = vpop.f32.mrb[85].mxu1 }
 0x3a8   :  { %v7414_v12 = vadd.f32 %v7413_v8, %v7412_v5  ;;  %v7435_v21 = vpop.f32.mrb[89].mxu0  ;;  %v7415_v52 = vpop.f32.mrb[86].mxu1 }
 0x3a9   :  { %v7436_v36 = vadd.f32 %v7435_v21, %v7434_v50  ;;  %v7437_v22 = vpop.f32.mrb[90].mxu0  ;;  %v7416_v27 = vpop.f32.mrb[87].mxu1 }
 0x3aa   :  { %v6362_v60 = vadd.f32 %v7414_v12, %v6321_v38  ;;  %v7417_v18 = vadd.f32 %v7416_v27, %v7415_v52  ;;  %v7438_v32 = vpop.f32.mrb[91].mxu0 }
 0x3ab   :  { %v7439_v57 = vadd.f32 %v7438_v32, %v7437_v22 }
 0x3ac   :  { %v6403_v25 = vadd.f32 %v7436_v36, %v6362_v60  ;;  %v6365_v47 = vadd.f32 %v7417_v18, %v6324_v10 }
 0x3ae   :  { %v6406_v53 = vadd.f32 %v7439_v57, %v6365_v47 }
 0x3c6   :  { %v7456_v16 = vpop.f32.mrb[88].mxu1 }
 0x3c7   :  { %v7478_v33 = vpop.f32.mrb[92].mxu0  ;;  %v7457_v0 = vpop.f32.mrb[89].mxu1 }
 0x3c8   :  { %v7458_v43 = vadd.f32 %v7457_v0, %v7456_v16  ;;  %v7479_v39 = vpop.f32.mrb[93].mxu0  ;;  %v7459_v3 = vpop.f32.mrb[90].mxu1 }
 0x3c9   :  { %v7480_v30 = vadd.f32 %v7479_v39, %v7478_v33  ;;  %v7481_v17 = vpop.f32.mrb[94].mxu0  ;;  %v7460_v61 = vpop.f32.mrb[91].mxu1 }
 0x3ca   :  { %v6444_v11 = vadd.f32 %v7458_v43, %v6403_v25  ;;  %v7461_v24 = vadd.f32 %v7460_v61, %v7459_v3  ;;  %v7482_v26 = vpop.f32.mrb[95].mxu0 }
 0x3cb   :  { %v7483_v58 = vadd.f32 %v7482_v26, %v7481_v17 }
 0x3cc   :  { %v6485_v59 = vadd.f32 %v7480_v30, %v6444_v11  ;;  %v6447_v23 = vadd.f32 %v7461_v24, %v6406_v53 }
 0x3ce   :  { %v6488_v45 = vadd.f32 %v7483_v58, %v6447_v23 }
 0x3e6   :  { %v7500_v6 = vpop.f32.mrb[92].mxu1 }
 0x3e7   :  { %v7522_v14 = vpop.f32.mrb[96].mxu0  ;;  %v7501_v49 = vpop.f32.mrb[93].mxu1 }
 0x3e8   :  { %v7502_v51 = vadd.f32 %v7501_v49, %v7500_v6  ;;  %v7523_v4 = vpop.f32.mrb[97].mxu0  ;;  %v7503_v41 = vpop.f32.mrb[94].mxu1 }
 0x3e9   :  { %v7524_v19 = vadd.f32 %v7523_v4, %v7522_v14  ;;  %v7525_v2 = vpop.f32.mrb[98].mxu0  ;;  %v7504_v15 = vpop.f32.mrb[95].mxu1 }
 0x3ea   :  { %v6526_v46 = vadd.f32 %v7502_v51, %v6485_v59  ;;  %v7505_v31 = vadd.f32 %v7504_v15, %v7503_v41  ;;  %v7526_v20 = vpop.f32.mrb[99].mxu0 }
 0x3eb   :  { %v7527_v9 = vadd.f32 %v7526_v20, %v7525_v2 }
 0x3ec   :  { %v6567_v37 = vadd.f32 %v7524_v19, %v6526_v46  ;;  %v6529_v44 = vadd.f32 %v7505_v31, %v6488_v45 }
 0x3ee   :  { %6573 = vst [vmem:[#allocation10] sm:$0xff] %v6567_v37  ;;  %v6570_v29 = vadd.f32 %v7527_v9, %v6529_v44 }
 0x3f0   :  { %6574 = vst [vmem:[#allocation10 + $0x8] sm:$0xff] %v6570_v29 }
 0x3f1   :  { %7939 = shalt.err (!%p7936_p8)
}
 0x3f2   :  { %s7940_s16 = scalar_lea.hbm %s8826_s7, 256 }
 0x3f3   :  { %p7941_p9 = scmp.ne.s32.totalorder %s8826_s7, %s7940_s16  ;;  %p7944_p10 = scmp.lt.u32.totalorder %s7940_s16, %s8826_s7 }
 0x3f5   :  { %p7946_p11 = pnand %p7944_p10, %p7941_p9 }
 0x3f7   :  { %7949 = shalt.err (!%p7946_p11)
}
 0x3f8   :  { %s7969_s21 = smov 8  }
 0x3f9   :  { %6586 = dma.vmem_to_hbm [thread:$0]  %s6581_s1, 256, %s8826_s7, [#allocation4], %s7961_s23, %s7961_s23, %s7969_s21  }
 0x3fa   :  { %7956 = dma.done.wait [#allocation4], 256  }
 0x3fb   :  { %7957 = vsyncadd [#allocation4], 4294967040 }
 0x3fc   :  { %6590 = vsyncpa [#allocation3], 1 }
 0x3fd   :  { %6591 = vsyncpa [#allocation6], 1 }
 0x3fe   :  { %6592 = vsyncpa [#allocation9], 1 }
 0x3ff   :  { %6593 = vsyncpa [#allocation4], 1 }

</bundles_post_ra>
